<compile_context>
chip_gen: v7x
topology: tpu7x:2x2x1
jax: 0.10.0
libtpu: 0.0.40
codegen_flags: <defaults>
</compile_context>

<pallas_src>
import functools

import jax
import jax.numpy as jnp
from jax.experimental import pallas as pl
from jax.experimental.pallas import tpu as pltpu


_TRANSCENDENTAL_ACTS = ("elu", "gelu", "tanh", "sigmoid")


def _activation(x, activation):
    if activation is None:
        return x
    if activation == "relu":
        return jnp.maximum(x, 0.0)
    if activation == "leakyrelu":
        # ConvNormAct explicitly constructs nn.LeakyReLU(0.2).
        return jnp.where(x >= 0, x, 0.2 * x)
    if activation == "elu":
        # exp only on the clamped (negative) branch: no inf in the unselected lane.
        return jnp.where(x >= 0, x, jnp.exp(jnp.minimum(x, 0.0)) - 1.0)
    if activation == "gelu":
        # PyTorch nn.GELU() default = exact erf form.
        return 0.5 * x * (1.0 + jax.lax.erf(x / jnp.sqrt(jnp.float32(2.0))))
    if activation == "tanh":
        return jnp.tanh(x)
    if activation == "sigmoid":
        return jax.nn.sigmoid(x)
    raise ValueError(f"activation {activation} is not valid.")


def _foreach(n, body, unroll_threshold=64):
    """Unrolled Python loop for short trip counts, lax.fori_loop otherwise."""
    if n <= unroll_threshold:
        for idx in range(n):
            body(idx)
    else:
        def loop_body(idx, carry):
            body(idx)
            return carry
        jax.lax.fori_loop(0, n, loop_body, 0)


def _conv_kernel(*refs, cin, kh, kw, stride, padding, h, w, h_out, w_out,
                 has_bias, emit_stats, fuse_activation):
    """Direct conv via in-VMEM im2col + one fused-K MXU matmul.

    refs (in order):
      x_ref    : (1, Cin, H, W)         input block (BlockSpec-pipelined)
      w_ref    : (Cout_t, K)            fused weights, K = KH*KW*Cin (tap-major)
      b_ref    : (Cout_t, 1)            only when has_bias
      y_ref    : (1, Cout_t, Ho*Wo)     conv(+bias)(+act) output (lane-dense)
      ssum_ref : (1, Cout_t, 1)         per-channel sum      (only emit_stats)
      ssq_ref  : (1, Cout_t, 1)         per-channel sum(y^2) (only emit_stats)
      xpad_ref : (Cin, Hp, Wp)          VMEM scratch, zero-padded input plane
      col_ref  : (K, Ho*Wo)             VMEM scratch, im2col staging
    """
    n_in = 3 if has_bias else 2
    x_ref, w_ref = refs[0], refs[1]
    b_ref = refs[2] if has_bias else None
    y_ref = refs[n_in]
    if emit_stats:
        ssum_ref, ssq_ref = refs[n_in + 1], refs[n_in + 2]
    xpad_ref, col_ref = refs[-2], refs[-1]

    # --- in-kernel zero padding (replaces the wrapper jnp.pad HBM pass) -------
    if padding > 0:
        xpad_ref[...] = jnp.zeros(xpad_ref.shape, xpad_ref.dtype)

    def copy_row(r):
        xpad_ref[:, padding + r, pl.ds(padding, w)] = x_ref[0, :, r, :]

    _foreach(h, copy_row)

    # --- im2col staging: one fused K = Cin*KH*KW contraction for the MXU ------
    def stage_row(r):
        base = r * w_out
        for i in range(kh):
            row = i + r * stride
            for j in range(kw):
                tap = i * kw + j
                col_idx = pl.ds(j, w_out) if stride == 1 else pl.ds(j, w_out, stride)
                col_ref[pl.ds(tap * cin, cin), pl.ds(base, w_out)] = (
                    xpad_ref[:, row, col_idx])

    _foreach(h_out, stage_row)

    # --- single MXU matmul: (Cout_t, K) @ (K, Ho*Wo), f32 accumulation --------
    acc = jnp.dot(w_ref[...], col_ref[...], preferred_element_type=jnp.float32)
    if has_bias:
        acc = acc + b_ref[...].astype(jnp.float32)       # (Cout_t, 1) broadcast

    if emit_stats:
        # BN batch statistics fused into the conv epilogue (pre-activation, f32).
        # Note: stats use the f32 pre-cast values; for bf16 outputs this differs
        # negligibly from normalizing the cast activations (exact for f32).
        ssum_ref[0] = jnp.sum(acc, axis=-1, keepdims=True)
        ssq_ref[0] = jnp.sum(acc * acc, axis=-1, keepdims=True)
    elif fuse_activation is not None:
        acc = _activation(acc, fuse_activation)

    y_ref[0] = acc.astype(y_ref.dtype)                   # clean lane-dense store


def _scale_shift_act_kernel(y_ref, scale_ref, shift_ref, o_ref, *, activation):
    """Apply precomputed BN scale/shift + activation (lane-dense, in place)."""
    y = y_ref[0].astype(jnp.float32)                     # (Cout_t, Ho*Wo)
    out = y * scale_ref[...] + shift_ref[...]            # (Cout_t, 1) broadcast
    out = _activation(out, activation)
    o_ref[0] = out.astype(o_ref.dtype)


def conv_norm_act(x, weight, bias, *, stride, padding, norm=None,
                  activation=None, gamma=None, beta=None, eps=1e-5):
    n, cin, h, w = x.shape
    cout, cin_w, kh, kw = weight.shape
    assert cin == cin_w
    if norm not in (None, "bn"):
        raise ValueError(f"norm {norm} is not valid.")

    h_out = (h + 2 * padding - kh) // stride + 1
    w_out = (w + 2 * padding - kw) // stride + 1
    hp, wp = h + 2 * padding, w + 2 * padding
    hw_out = h_out * w_out
    k_dim = kh * kw * cin

    emit_stats = norm == "bn"
    fuse_act = None if emit_stats else activation
    # A conv bias is exactly cancelled by BN mean subtraction -> skip DMA + add.
    has_bias = not emit_stats

    # Fused weight (Cout, KH*KW*Cin), tap-major / Cin-minor, matching the im2col
    # staging order so the whole conv is ONE MXU contraction per grid step.
    w2d = jnp.transpose(weight, (0, 2, 3, 1)).reshape(cout, k_dim)

    # Cout tiling: second parallel grid axis + bounds the live f32 accumulator.
    cout_t = cout
    for cand in (256, 128, 64):
        if cout > cand and cout % cand == 0:
            cout_t = cand
            break
    n_ct = cout // cout_t

    itemsize = jnp.dtype(x.dtype).itemsize

    def _up(a, b):
        return -(-a // b) * b

    vmem_bytes = int(
        2 * (cin * h * w + cout_t * k_dim + (cout_t if has_bias else 0)) * itemsize
        + 2 * (cout_t * hw_out * itemsize + (8 * cout_t if emit_stats else 0))
        + cin * _up(hp, 8) * _up(wp, 128) * itemsize
        + _up(k_dim, 8) * _up(hw_out, 128) * itemsize
        + (4 << 20))
    vmem_limit = int(max(32 << 20, min(vmem_bytes, 112 << 20)))

    in_specs = [
        pl.BlockSpec((1, cin, h, w), lambda i, j: (i, 0, 0, 0)),
        pl.BlockSpec((cout_t, k_dim), lambda i, j: (j, 0)),
    ]
    args = [x, w2d]
    if has_bias:
        in_specs.append(pl.BlockSpec((cout_t, 1), lambda i, j: (j, 0)))
        args.append(bias.reshape(cout, 1))

    out_shape = [jax.ShapeDtypeStruct((n, cout, hw_out), x.dtype)]
    out_specs = [pl.BlockSpec((1, cout_t, hw_out), lambda i, j: (i, j, 0))]
    if emit_stats:
        out_shape += [jax.ShapeDtypeStruct((n, cout, 1), jnp.float32)] * 2
        out_specs += [pl.BlockSpec((1, cout_t, 1), lambda i, j: (i, j, 0))] * 2

    y_bytes = n * cout * hw_out * itemsize
    conv_flops = 2 * n * cout * k_dim * hw_out
    conv_trans = n * cout * hw_out if fuse_act in _TRANSCENDENTAL_ACTS else 0
    conv_bytes = ((x.size + w2d.size + (cout if has_bias else 0)) * itemsize
                  + y_bytes + (8 * n * cout if emit_stats else 0))

    kernel = functools.partial(
        _conv_kernel, cin=cin, kh=kh, kw=kw, stride=stride, padding=padding,
        h=h, w=w, h_out=h_out, w_out=w_out, has_bias=has_bias,
        emit_stats=emit_stats, fuse_activation=fuse_act)

    results = pl.pallas_call(
        kernel,
        out_shape=tuple(out_shape) if emit_stats else out_shape[0],
        grid=(n, n_ct),
        in_specs=in_specs,
        out_specs=tuple(out_specs) if emit_stats else out_specs[0],
        scratch_shapes=[
            pltpu.VMEM((cin, hp, wp), x.dtype),       # zero-padded input plane
            pltpu.VMEM((k_dim, hw_out), x.dtype),     # im2col staging (fused K)
        ],
        compiler_params=pltpu.CompilerParams(
            dimension_semantics=("parallel", "parallel"),
            vmem_limit_bytes=vmem_limit),
        cost_estimate=pl.CostEstimate(
            flops=conv_flops, transcendentals=conv_trans,
            bytes_accessed=conv_bytes),
    )(*args)

    if emit_stats:
        y, ssum, ssq = results
        cnt = jnp.float32(n * hw_out)
        mean = jnp.sum(ssum, axis=0) / cnt                          # (Cout, 1)
        var = jnp.maximum(jnp.sum(ssq, axis=0) / cnt - mean * mean, 0.0)
        inv = jax.lax.rsqrt(var + jnp.float32(eps))
        scale = gamma.reshape(cout, 1).astype(jnp.float32) * inv
        shift = beta.reshape(cout, 1).astype(jnp.float32) - mean * scale

        apply_trans = (n * cout * hw_out
                       if activation in _TRANSCENDENTAL_ACTS else 0)
        y = pl.pallas_call(
            functools.partial(_scale_shift_act_kernel, activation=activation),
            out_shape=jax.ShapeDtypeStruct((n, cout, hw_out), y.dtype),
            grid=(n, n_ct),
            in_specs=[
                pl.BlockSpec((1, cout_t, hw_out), lambda i, j: (i, j, 0)),
                pl.BlockSpec((cout_t, 1), lambda i, j: (j, 0)),
                pl.BlockSpec((cout_t, 1), lambda i, j: (j, 0)),
            ],
            out_specs=pl.BlockSpec((1, cout_t, hw_out), lambda i, j: (i, j, 0)),
            input_output_aliases={0: 0},     # update y in place (no extra HBM buf)
            compiler_params=pltpu.CompilerParams(
                dimension_semantics=("parallel", "parallel"),
                vmem_limit_bytes=vmem_limit),
            cost_estimate=pl.CostEstimate(
                flops=2 * n * cout * hw_out, transcendentals=apply_trans,
                bytes_accessed=2 * y_bytes),
        )(y, scale, shift)
    else:
        y = results

    # Free reshape back to NCHW (no transpose pass).
    return y.reshape(n, cout, h_out, w_out)


def _reference(x, weight, bias, *, stride, padding, norm, activation,
               gamma, beta, eps=1e-5):
    y = jax.lax.conv_general_dilated(
        x, weight, window_strides=(stride, stride),
        padding=[(padding, padding), (padding, padding)],
        dimension_numbers=("NCHW", "OIHW", "NCHW"))
    y = y + bias.reshape(1, -1, 1, 1)
    if norm == "bn":
        mean = jnp.mean(y, axis=(0, 2, 3), keepdims=True)
        var = jnp.mean((y - mean) ** 2, axis=(0, 2, 3), keepdims=True)
        y = (y - mean) * jax.lax.rsqrt(var + eps)
        y = y * gamma.reshape(1, -1, 1, 1) + beta.reshape(1, -1, 1, 1)
    return _activation(y, activation)


if __name__ == "__main__":
    # ConvNormAct(in_channels=4, out_channels=8, kernel_size=3, stride=1,
    #             padding=1, norm='bn', activation='relu', init_type='normal')
    in_ch, out_ch, ksize, stride, padding = 4, 8, 3, 1, 1
    norm, activation = "bn", "relu"

    key = jax.random.PRNGKey(0)
    k_x, k_w = jax.random.split(key)

    x = jax.random.normal(k_x, (2, in_ch, 16, 16), jnp.float32)
    # init_type='normal' -> conv weight ~ N(0, 0.02), bias = 0.
    weight = 0.02 * jax.random.normal(k_w, (out_ch, in_ch, ksize, ksize),
                                      jnp.float32)
    bias = jnp.zeros((out_ch,), jnp.float32)
    # BatchNorm2d default init (init_weights only touches self.conv).
    gamma = jnp.ones((out_ch,), jnp.float32)
    beta = jnp.zeros((out_ch,), jnp.float32)

    run = jax.jit(functools.partial(conv_norm_act, stride=stride,
                                    padding=padding, norm=norm,
                                    activation=activation))
    out = jax.block_until_ready(run(x, weight, bias, gamma=gamma, beta=beta))
    ref = _reference(x, weight, bias, stride=stride, padding=padding, norm=norm,
                     activation=activation, gamma=gamma, beta=beta)
    assert out.shape == (2, out_ch, 16, 16)
    assert jnp.allclose(out, ref, rtol=1e-3, atol=1e-4), (
        float(jnp.max(jnp.abs(out - ref))))

    # Second config: no norm, fused LeakyReLU, padding=0 (exercises the
    # bias + fused-activation path and the unpadded staging path).
    bias2 = 0.02 * jax.random.normal(jax.random.PRNGKey(1), (out_ch,),
                                     jnp.float32)
    run2 = jax.jit(functools.partial(conv_norm_act, stride=1, padding=0,
                                     norm=None, activation="leakyrelu"))
    out2 = jax.block_until_ready(run2(x, weight, bias2))
    ref2 = _reference(x, weight, bias2, stride=1, padding=0, norm=None,
                      activation="leakyrelu", gamma=None, beta=None)
    assert out2.shape == (2, out_ch, 14, 14)
    assert jnp.allclose(out2, ref2, rtol=1e-3, atol=1e-5), (
        float(jnp.max(jnp.abs(out2 - ref2))))

    print("KERNEL_OK")
</pallas_src>

<mosaic_0001>
module attributes {stable_mosaic.version = 11 : i64} {
  func.func @_conv_kernel(%arg0: i32, %arg1: i32, %arg2: memref<1x4x16x16xf32, #tpu.memory_space<vmem>>, %arg3: memref<8x36xf32, #tpu.memory_space<vmem>>, %arg4: memref<1x8x256xf32, #tpu.memory_space<vmem>>, %arg5: memref<1x8x1xf32, #tpu.memory_space<vmem>>, %arg6: memref<1x8x1xf32, #tpu.memory_space<vmem>>, %arg7: memref<4x18x18xf32, #tpu.memory_space<vmem>>, %arg8: memref<36x256xf32, #tpu.memory_space<vmem>>) attributes {dimension_semantics = [#tpu.dimension_semantics<parallel>, #tpu.dimension_semantics<parallel>], iteration_bounds = array<i64: 2, 1>, scalar_prefetch = 0 : i64, scratch_operands = 2 : i64, tpu.core_type = #tpu.core_type<tc>, window_params = [{transform_indices = @transform_0, window_bounds = array<i64: 1, 4, 16, 16>}, {transform_indices = @transform_1, window_bounds = array<i64: 8, 36>}, {transform_indices = @transform_2, window_bounds = array<i64: 1, 8, 256>}, {transform_indices = @transform_3, window_bounds = array<i64: 1, 8, 1>}, {transform_indices = @transform_4, window_bounds = array<i64: 1, 8, 1>}]} {
    %cst = arith.constant 0.000000e+00 : f32
    %0 = vector.broadcast %cst : f32 to vector<4x18x18xf32>
    %c0 = arith.constant 0 : index
    %c0_0 = arith.constant 0 : index
    %c0_1 = arith.constant 0 : index
    %1 = vector.load %arg7[%c0, %c0_0, %c0_1] : memref<4x18x18xf32, #tpu.memory_space<vmem>>, vector<4x18x18xf32>
    tpu.vector_store %arg7[%c0, %c0_0, %c0_1], %0 {strides = array<i32>} : memref<4x18x18xf32, #tpu.memory_space<vmem>>, vector<4x18x18xf32>,
    %c0_2 = arith.constant 0 : index
    %c0_3 = arith.constant 0 : index
    %c0_4 = arith.constant 0 : index
    %c0_5 = arith.constant 0 : index
    %2 = vector.load %arg2[%c0_2, %c0_3, %c0_4, %c0_5] : memref<1x4x16x16xf32, #tpu.memory_space<vmem>>, vector<1x4x1x16xf32>
    %3 = vector.shape_cast %2 : vector<1x4x1x16xf32> to vector<4x16xf32>
    %c0_6 = arith.constant 0 : index
    %c1 = arith.constant 1 : index
    %c1_7 = arith.constant 1 : index
    %4 = vector.load %arg7[%c0_6, %c1, %c1_7] : memref<4x18x18xf32, #tpu.memory_space<vmem>>, vector<4x1x16xf32>
    %5 = vector.shape_cast %4 : vector<4x1x16xf32> to vector<4x16xf32>
    %6 = vector.shape_cast %3 : vector<4x16xf32> to vector<4x1x16xf32>
    tpu.vector_store %arg7[%c0_6, %c1, %c1_7], %6 {strides = array<i32>} : memref<4x18x18xf32, #tpu.memory_space<vmem>>, vector<4x1x16xf32>,
    %c0_8 = arith.constant 0 : index
    %c0_9 = arith.constant 0 : index
    %c1_10 = arith.constant 1 : index
    %c0_11 = arith.constant 0 : index
    %7 = vector.load %arg2[%c0_8, %c0_9, %c1_10, %c0_11] : memref<1x4x16x16xf32, #tpu.memory_space<vmem>>, vector<1x4x1x16xf32>
    %8 = vector.shape_cast %7 : vector<1x4x1x16xf32> to vector<4x16xf32>
    %c0_12 = arith.constant 0 : index
    %c2 = arith.constant 2 : index
    %c1_13 = arith.constant 1 : index
    %9 = vector.load %arg7[%c0_12, %c2, %c1_13] : memref<4x18x18xf32, #tpu.memory_space<vmem>>, vector<4x1x16xf32>
    %10 = vector.shape_cast %9 : vector<4x1x16xf32> to vector<4x16xf32>
    %11 = vector.shape_cast %8 : vector<4x16xf32> to vector<4x1x16xf32>
    tpu.vector_store %arg7[%c0_12, %c2, %c1_13], %11 {strides = array<i32>} : memref<4x18x18xf32, #tpu.memory_space<vmem>>, vector<4x1x16xf32>,
    %c0_14 = arith.constant 0 : index
    %c0_15 = arith.constant 0 : index
    %c2_16 = arith.constant 2 : index
    %c0_17 = arith.constant 0 : index
    %12 = vector.load %arg2[%c0_14, %c0_15, %c2_16, %c0_17] : memref<1x4x16x16xf32, #tpu.memory_space<vmem>>, vector<1x4x1x16xf32>
    %13 = vector.shape_cast %12 : vector<1x4x1x16xf32> to vector<4x16xf32>
    %c0_18 = arith.constant 0 : index
    %c3 = arith.constant 3 : index
    %c1_19 = arith.constant 1 : index
    %14 = vector.load %arg7[%c0_18, %c3, %c1_19] : memref<4x18x18xf32, #tpu.memory_space<vmem>>, vector<4x1x16xf32>
    %15 = vector.shape_cast %14 : vector<4x1x16xf32> to vector<4x16xf32>
    %16 = vector.shape_cast %13 : vector<4x16xf32> to vector<4x1x16xf32>
    tpu.vector_store %arg7[%c0_18, %c3, %c1_19], %16 {strides = array<i32>} : memref<4x18x18xf32, #tpu.memory_space<vmem>>, vector<4x1x16xf32>,
    %c0_20 = arith.constant 0 : index
    %c0_21 = arith.constant 0 : index
    %c3_22 = arith.constant 3 : index
    %c0_23 = arith.constant 0 : index
    %17 = vector.load %arg2[%c0_20, %c0_21, %c3_22, %c0_23] : memref<1x4x16x16xf32, #tpu.memory_space<vmem>>, vector<1x4x1x16xf32>
    %18 = vector.shape_cast %17 : vector<1x4x1x16xf32> to vector<4x16xf32>
    %c0_24 = arith.constant 0 : index
    %c4 = arith.constant 4 : index
    %c1_25 = arith.constant 1 : index
    %19 = vector.load %arg7[%c0_24, %c4, %c1_25] : memref<4x18x18xf32, #tpu.memory_space<vmem>>, vector<4x1x16xf32>
    %20 = vector.shape_cast %19 : vector<4x1x16xf32> to vector<4x16xf32>
    %21 = vector.shape_cast %18 : vector<4x16xf32> to vector<4x1x16xf32>
    tpu.vector_store %arg7[%c0_24, %c4, %c1_25], %21 {strides = array<i32>} : memref<4x18x18xf32, #tpu.memory_space<vmem>>, vector<4x1x16xf32>,
    %c0_26 = arith.constant 0 : index
    %c0_27 = arith.constant 0 : index
    %c4_28 = arith.constant 4 : index
    %c0_29 = arith.constant 0 : index
    %22 = vector.load %arg2[%c0_26, %c0_27, %c4_28, %c0_29] : memref<1x4x16x16xf32, #tpu.memory_space<vmem>>, vector<1x4x1x16xf32>
    %23 = vector.shape_cast %22 : vector<1x4x1x16xf32> to vector<4x16xf32>
    %c0_30 = arith.constant 0 : index
    %c5 = arith.constant 5 : index
    %c1_31 = arith.constant 1 : index
    %24 = vector.load %arg7[%c0_30, %c5, %c1_31] : memref<4x18x18xf32, #tpu.memory_space<vmem>>, vector<4x1x16xf32>
    %25 = vector.shape_cast %24 : vector<4x1x16xf32> to vector<4x16xf32>
    %26 = vector.shape_cast %23 : vector<4x16xf32> to vector<4x1x16xf32>
    tpu.vector_store %arg7[%c0_30, %c5, %c1_31], %26 {strides = array<i32>} : memref<4x18x18xf32, #tpu.memory_space<vmem>>, vector<4x1x16xf32>,
    %c0_32 = arith.constant 0 : index
    %c0_33 = arith.constant 0 : index
    %c5_34 = arith.constant 5 : index
    %c0_35 = arith.constant 0 : index
    %27 = vector.load %arg2[%c0_32, %c0_33, %c5_34, %c0_35] : memref<1x4x16x16xf32, #tpu.memory_space<vmem>>, vector<1x4x1x16xf32>
    %28 = vector.shape_cast %27 : vector<1x4x1x16xf32> to vector<4x16xf32>
    %c0_36 = arith.constant 0 : index
    %c6 = arith.constant 6 : index
    %c1_37 = arith.constant 1 : index
    %29 = vector.load %arg7[%c0_36, %c6, %c1_37] : memref<4x18x18xf32, #tpu.memory_space<vmem>>, vector<4x1x16xf32>
    %30 = vector.shape_cast %29 : vector<4x1x16xf32> to vector<4x16xf32>
    %31 = vector.shape_cast %28 : vector<4x16xf32> to vector<4x1x16xf32>
    tpu.vector_store %arg7[%c0_36, %c6, %c1_37], %31 {strides = array<i32>} : memref<4x18x18xf32, #tpu.memory_space<vmem>>, vector<4x1x16xf32>,
    %c0_38 = arith.constant 0 : index
    %c0_39 = arith.constant 0 : index
    %c6_40 = arith.constant 6 : index
    %c0_41 = arith.constant 0 : index
    %32 = vector.load %arg2[%c0_38, %c0_39, %c6_40, %c0_41] : memref<1x4x16x16xf32, #tpu.memory_space<vmem>>, vector<1x4x1x16xf32>
    %33 = vector.shape_cast %32 : vector<1x4x1x16xf32> to vector<4x16xf32>
    %c0_42 = arith.constant 0 : index
    %c7 = arith.constant 7 : index
    %c1_43 = arith.constant 1 : index
    %34 = vector.load %arg7[%c0_42, %c7, %c1_43] : memref<4x18x18xf32, #tpu.memory_space<vmem>>, vector<4x1x16xf32>
    %35 = vector.shape_cast %34 : vector<4x1x16xf32> to vector<4x16xf32>
    %36 = vector.shape_cast %33 : vector<4x16xf32> to vector<4x1x16xf32>
    tpu.vector_store %arg7[%c0_42, %c7, %c1_43], %36 {strides = array<i32>} : memref<4x18x18xf32, #tpu.memory_space<vmem>>, vector<4x1x16xf32>,
    %c0_44 = arith.constant 0 : index
    %c0_45 = arith.constant 0 : index
    %c7_46 = arith.constant 7 : index
    %c0_47 = arith.constant 0 : index
    %37 = vector.load %arg2[%c0_44, %c0_45, %c7_46, %c0_47] : memref<1x4x16x16xf32, #tpu.memory_space<vmem>>, vector<1x4x1x16xf32>
    %38 = vector.shape_cast %37 : vector<1x4x1x16xf32> to vector<4x16xf32>
    %c0_48 = arith.constant 0 : index
    %c8 = arith.constant 8 : index
    %c1_49 = arith.constant 1 : index
    %39 = vector.load %arg7[%c0_48, %c8, %c1_49] : memref<4x18x18xf32, #tpu.memory_space<vmem>>, vector<4x1x16xf32>
    %40 = vector.shape_cast %39 : vector<4x1x16xf32> to vector<4x16xf32>
    %41 = vector.shape_cast %38 : vector<4x16xf32> to vector<4x1x16xf32>
    tpu.vector_store %arg7[%c0_48, %c8, %c1_49], %41 {strides = array<i32>} : memref<4x18x18xf32, #tpu.memory_space<vmem>>, vector<4x1x16xf32>,
    %c0_50 = arith.constant 0 : index
    %c0_51 = arith.constant 0 : index
    %c8_52 = arith.constant 8 : index
    %c0_53 = arith.constant 0 : index
    %42 = vector.load %arg2[%c0_50, %c0_51, %c8_52, %c0_53] : memref<1x4x16x16xf32, #tpu.memory_space<vmem>>, vector<1x4x1x16xf32>
    %43 = vector.shape_cast %42 : vector<1x4x1x16xf32> to vector<4x16xf32>
    %c0_54 = arith.constant 0 : index
    %c9 = arith.constant 9 : index
    %c1_55 = arith.constant 1 : index
    %44 = vector.load %arg7[%c0_54, %c9, %c1_55] : memref<4x18x18xf32, #tpu.memory_space<vmem>>, vector<4x1x16xf32>
    %45 = vector.shape_cast %44 : vector<4x1x16xf32> to vector<4x16xf32>
    %46 = vector.shape_cast %43 : vector<4x16xf32> to vector<4x1x16xf32>
    tpu.vector_store %arg7[%c0_54, %c9, %c1_55], %46 {strides = array<i32>} : memref<4x18x18xf32, #tpu.memory_space<vmem>>, vector<4x1x16xf32>,
    %c0_56 = arith.constant 0 : index
    %c0_57 = arith.constant 0 : index
    %c9_58 = arith.constant 9 : index
    %c0_59 = arith.constant 0 : index
    %47 = vector.load %arg2[%c0_56, %c0_57, %c9_58, %c0_59] : memref<1x4x16x16xf32, #tpu.memory_space<vmem>>, vector<1x4x1x16xf32>
    %48 = vector.shape_cast %47 : vector<1x4x1x16xf32> to vector<4x16xf32>
    %c0_60 = arith.constant 0 : index
    %c10 = arith.constant 10 : index
    %c1_61 = arith.constant 1 : index
    %49 = vector.load %arg7[%c0_60, %c10, %c1_61] : memref<4x18x18xf32, #tpu.memory_space<vmem>>, vector<4x1x16xf32>
    %50 = vector.shape_cast %49 : vector<4x1x16xf32> to vector<4x16xf32>
    %51 = vector.shape_cast %48 : vector<4x16xf32> to vector<4x1x16xf32>
    tpu.vector_store %arg7[%c0_60, %c10, %c1_61], %51 {strides = array<i32>} : memref<4x18x18xf32, #tpu.memory_space<vmem>>, vector<4x1x16xf32>,
    %c0_62 = arith.constant 0 : index
    %c0_63 = arith.constant 0 : index
    %c10_64 = arith.constant 10 : index
    %c0_65 = arith.constant 0 : index
    %52 = vector.load %arg2[%c0_62, %c0_63, %c10_64, %c0_65] : memref<1x4x16x16xf32, #tpu.memory_space<vmem>>, vector<1x4x1x16xf32>
    %53 = vector.shape_cast %52 : vector<1x4x1x16xf32> to vector<4x16xf32>
    %c0_66 = arith.constant 0 : index
    %c11 = arith.constant 11 : index
    %c1_67 = arith.constant 1 : index
    %54 = vector.load %arg7[%c0_66, %c11, %c1_67] : memref<4x18x18xf32, #tpu.memory_space<vmem>>, vector<4x1x16xf32>
    %55 = vector.shape_cast %54 : vector<4x1x16xf32> to vector<4x16xf32>
    %56 = vector.shape_cast %53 : vector<4x16xf32> to vector<4x1x16xf32>
    tpu.vector_store %arg7[%c0_66, %c11, %c1_67], %56 {strides = array<i32>} : memref<4x18x18xf32, #tpu.memory_space<vmem>>, vector<4x1x16xf32>,
    %c0_68 = arith.constant 0 : index
    %c0_69 = arith.constant 0 : index
    %c11_70 = arith.constant 11 : index
    %c0_71 = arith.constant 0 : index
    %57 = vector.load %arg2[%c0_68, %c0_69, %c11_70, %c0_71] : memref<1x4x16x16xf32, #tpu.memory_space<vmem>>, vector<1x4x1x16xf32>
    %58 = vector.shape_cast %57 : vector<1x4x1x16xf32> to vector<4x16xf32>
    %c0_72 = arith.constant 0 : index
    %c12 = arith.constant 12 : index
    %c1_73 = arith.constant 1 : index
    %59 = vector.load %arg7[%c0_72, %c12, %c1_73] : memref<4x18x18xf32, #tpu.memory_space<vmem>>, vector<4x1x16xf32>
    %60 = vector.shape_cast %59 : vector<4x1x16xf32> to vector<4x16xf32>
    %61 = vector.shape_cast %58 : vector<4x16xf32> to vector<4x1x16xf32>
    tpu.vector_store %arg7[%c0_72, %c12, %c1_73], %61 {strides = array<i32>} : memref<4x18x18xf32, #tpu.memory_space<vmem>>, vector<4x1x16xf32>,
    %c0_74 = arith.constant 0 : index
    %c0_75 = arith.constant 0 : index
    %c12_76 = arith.constant 12 : index
    %c0_77 = arith.constant 0 : index
    %62 = vector.load %arg2[%c0_74, %c0_75, %c12_76, %c0_77] : memref<1x4x16x16xf32, #tpu.memory_space<vmem>>, vector<1x4x1x16xf32>
    %63 = vector.shape_cast %62 : vector<1x4x1x16xf32> to vector<4x16xf32>
    %c0_78 = arith.constant 0 : index
    %c13 = arith.constant 13 : index
    %c1_79 = arith.constant 1 : index
    %64 = vector.load %arg7[%c0_78, %c13, %c1_79] : memref<4x18x18xf32, #tpu.memory_space<vmem>>, vector<4x1x16xf32>
    %65 = vector.shape_cast %64 : vector<4x1x16xf32> to vector<4x16xf32>
    %66 = vector.shape_cast %63 : vector<4x16xf32> to vector<4x1x16xf32>
    tpu.vector_store %arg7[%c0_78, %c13, %c1_79], %66 {strides = array<i32>} : memref<4x18x18xf32, #tpu.memory_space<vmem>>, vector<4x1x16xf32>,
    %c0_80 = arith.constant 0 : index
    %c0_81 = arith.constant 0 : index
    %c13_82 = arith.constant 13 : index
    %c0_83 = arith.constant 0 : index
    %67 = vector.load %arg2[%c0_80, %c0_81, %c13_82, %c0_83] : memref<1x4x16x16xf32, #tpu.memory_space<vmem>>, vector<1x4x1x16xf32>
    %68 = vector.shape_cast %67 : vector<1x4x1x16xf32> to vector<4x16xf32>
    %c0_84 = arith.constant 0 : index
    %c14 = arith.constant 14 : index
    %c1_85 = arith.constant 1 : index
    %69 = vector.load %arg7[%c0_84, %c14, %c1_85] : memref<4x18x18xf32, #tpu.memory_space<vmem>>, vector<4x1x16xf32>
    %70 = vector.shape_cast %69 : vector<4x1x16xf32> to vector<4x16xf32>
    %71 = vector.shape_cast %68 : vector<4x16xf32> to vector<4x1x16xf32>
    tpu.vector_store %arg7[%c0_84, %c14, %c1_85], %71 {strides = array<i32>} : memref<4x18x18xf32, #tpu.memory_space<vmem>>, vector<4x1x16xf32>,
    %c0_86 = arith.constant 0 : index
    %c0_87 = arith.constant 0 : index
    %c14_88 = arith.constant 14 : index
    %c0_89 = arith.constant 0 : index
    %72 = vector.load %arg2[%c0_86, %c0_87, %c14_88, %c0_89] : memref<1x4x16x16xf32, #tpu.memory_space<vmem>>, vector<1x4x1x16xf32>
    %73 = vector.shape_cast %72 : vector<1x4x1x16xf32> to vector<4x16xf32>
    %c0_90 = arith.constant 0 : index
    %c15 = arith.constant 15 : index
    %c1_91 = arith.constant 1 : index
    %74 = vector.load %arg7[%c0_90, %c15, %c1_91] : memref<4x18x18xf32, #tpu.memory_space<vmem>>, vector<4x1x16xf32>
    %75 = vector.shape_cast %74 : vector<4x1x16xf32> to vector<4x16xf32>
    %76 = vector.shape_cast %73 : vector<4x16xf32> to vector<4x1x16xf32>
    tpu.vector_store %arg7[%c0_90, %c15, %c1_91], %76 {strides = array<i32>} : memref<4x18x18xf32, #tpu.memory_space<vmem>>, vector<4x1x16xf32>,
    %c0_92 = arith.constant 0 : index
    %c0_93 = arith.constant 0 : index
    %c15_94 = arith.constant 15 : index
    %c0_95 = arith.constant 0 : index
    %77 = vector.load %arg2[%c0_92, %c0_93, %c15_94, %c0_95] : memref<1x4x16x16xf32, #tpu.memory_space<vmem>>, vector<1x4x1x16xf32>
    %78 = vector.shape_cast %77 : vector<1x4x1x16xf32> to vector<4x16xf32>
    %c0_96 = arith.constant 0 : index
    %c16 = arith.constant 16 : index
    %c1_97 = arith.constant 1 : index
    %79 = vector.load %arg7[%c0_96, %c16, %c1_97] : memref<4x18x18xf32, #tpu.memory_space<vmem>>, vector<4x1x16xf32>
    %80 = vector.shape_cast %79 : vector<4x1x16xf32> to vector<4x16xf32>
    %81 = vector.shape_cast %78 : vector<4x16xf32> to vector<4x1x16xf32>
    tpu.vector_store %arg7[%c0_96, %c16, %c1_97], %81 {strides = array<i32>} : memref<4x18x18xf32, #tpu.memory_space<vmem>>, vector<4x1x16xf32>,
    %c0_98 = arith.constant 0 : index
    %c0_99 = arith.constant 0 : index
    %c0_100 = arith.constant 0 : index
    %82 = vector.load %arg7[%c0_98, %c0_99, %c0_100] : memref<4x18x18xf32, #tpu.memory_space<vmem>>, vector<4x1x16xf32>
    %83 = vector.shape_cast %82 : vector<4x1x16xf32> to vector<4x16xf32>
    %c0_101 = arith.constant 0 : index
    %c0_102 = arith.constant 0 : index
    %84 = vector.load %arg8[%c0_101, %c0_102] : memref<36x256xf32, #tpu.memory_space<vmem>>, vector<4x16xf32>
    tpu.vector_store %arg8[%c0_101, %c0_102], %83 {strides = array<i32>} : memref<36x256xf32, #tpu.memory_space<vmem>>, vector<4x16xf32>,
    %c0_103 = arith.constant 0 : index
    %c0_104 = arith.constant 0 : index
    %c1_105 = arith.constant 1 : index
    %85 = vector.load %arg7[%c0_103, %c0_104, %c1_105] : memref<4x18x18xf32, #tpu.memory_space<vmem>>, vector<4x1x16xf32>
    %86 = vector.shape_cast %85 : vector<4x1x16xf32> to vector<4x16xf32>
    %c4_106 = arith.constant 4 : index
    %c0_107 = arith.constant 0 : index
    %87 = vector.load %arg8[%c4_106, %c0_107] : memref<36x256xf32, #tpu.memory_space<vmem>>, vector<4x16xf32>
    tpu.vector_store %arg8[%c4_106, %c0_107], %86 {strides = array<i32>} : memref<36x256xf32, #tpu.memory_space<vmem>>, vector<4x16xf32>,
    %c0_108 = arith.constant 0 : index
    %c0_109 = arith.constant 0 : index
    %c2_110 = arith.constant 2 : index
    %88 = vector.load %arg7[%c0_108, %c0_109, %c2_110] : memref<4x18x18xf32, #tpu.memory_space<vmem>>, vector<4x1x16xf32>
    %89 = vector.shape_cast %88 : vector<4x1x16xf32> to vector<4x16xf32>
    %c8_111 = arith.constant 8 : index
    %c0_112 = arith.constant 0 : index
    %90 = vector.load %arg8[%c8_111, %c0_112] : memref<36x256xf32, #tpu.memory_space<vmem>>, vector<4x16xf32>
    tpu.vector_store %arg8[%c8_111, %c0_112], %89 {strides = array<i32>} : memref<36x256xf32, #tpu.memory_space<vmem>>, vector<4x16xf32>,
    %c0_113 = arith.constant 0 : index
    %c1_114 = arith.constant 1 : index
    %c0_115 = arith.constant 0 : index
    %91 = vector.load %arg7[%c0_113, %c1_114, %c0_115] : memref<4x18x18xf32, #tpu.memory_space<vmem>>, vector<4x1x16xf32>
    %92 = vector.shape_cast %91 : vector<4x1x16xf32> to vector<4x16xf32>
    %c12_116 = arith.constant 12 : index
    %c0_117 = arith.constant 0 : index
    %93 = vector.load %arg8[%c12_116, %c0_117] : memref<36x256xf32, #tpu.memory_space<vmem>>, vector<4x16xf32>
    tpu.vector_store %arg8[%c12_116, %c0_117], %92 {strides = array<i32>} : memref<36x256xf32, #tpu.memory_space<vmem>>, vector<4x16xf32>,
    %c0_118 = arith.constant 0 : index
    %c1_119 = arith.constant 1 : index
    %c1_120 = arith.constant 1 : index
    %94 = vector.load %arg7[%c0_118, %c1_119, %c1_120] : memref<4x18x18xf32, #tpu.memory_space<vmem>>, vector<4x1x16xf32>
    %95 = vector.shape_cast %94 : vector<4x1x16xf32> to vector<4x16xf32>
    %c16_121 = arith.constant 16 : index
    %c0_122 = arith.constant 0 : index
    %96 = vector.load %arg8[%c16_121, %c0_122] : memref<36x256xf32, #tpu.memory_space<vmem>>, vector<4x16xf32>
    tpu.vector_store %arg8[%c16_121, %c0_122], %95 {strides = array<i32>} : memref<36x256xf32, #tpu.memory_space<vmem>>, vector<4x16xf32>,
    %c0_123 = arith.constant 0 : index
    %c1_124 = arith.constant 1 : index
    %c2_125 = arith.constant 2 : index
    %97 = vector.load %arg7[%c0_123, %c1_124, %c2_125] : memref<4x18x18xf32, #tpu.memory_space<vmem>>, vector<4x1x16xf32>
    %98 = vector.shape_cast %97 : vector<4x1x16xf32> to vector<4x16xf32>
    %c20 = arith.constant 20 : index
    %c0_126 = arith.constant 0 : index
    %99 = vector.load %arg8[%c20, %c0_126] : memref<36x256xf32, #tpu.memory_space<vmem>>, vector<4x16xf32>
    tpu.vector_store %arg8[%c20, %c0_126], %98 {strides = array<i32>} : memref<36x256xf32, #tpu.memory_space<vmem>>, vector<4x16xf32>,
    %c0_127 = arith.constant 0 : index
    %c2_128 = arith.constant 2 : index
    %c0_129 = arith.constant 0 : index
    %100 = vector.load %arg7[%c0_127, %c2_128, %c0_129] : memref<4x18x18xf32, #tpu.memory_space<vmem>>, vector<4x1x16xf32>
    %101 = vector.shape_cast %100 : vector<4x1x16xf32> to vector<4x16xf32>
    %c24 = arith.constant 24 : index
    %c0_130 = arith.constant 0 : index
    %102 = vector.load %arg8[%c24, %c0_130] : memref<36x256xf32, #tpu.memory_space<vmem>>, vector<4x16xf32>
    tpu.vector_store %arg8[%c24, %c0_130], %101 {strides = array<i32>} : memref<36x256xf32, #tpu.memory_space<vmem>>, vector<4x16xf32>,
    %c0_131 = arith.constant 0 : index
    %c2_132 = arith.constant 2 : index
    %c1_133 = arith.constant 1 : index
    %103 = vector.load %arg7[%c0_131, %c2_132, %c1_133] : memref<4x18x18xf32, #tpu.memory_space<vmem>>, vector<4x1x16xf32>
    %104 = vector.shape_cast %103 : vector<4x1x16xf32> to vector<4x16xf32>
    %c28 = arith.constant 28 : index
    %c0_134 = arith.constant 0 : index
    %105 = vector.load %arg8[%c28, %c0_134] : memref<36x256xf32, #tpu.memory_space<vmem>>, vector<4x16xf32>
    tpu.vector_store %arg8[%c28, %c0_134], %104 {strides = array<i32>} : memref<36x256xf32, #tpu.memory_space<vmem>>, vector<4x16xf32>,
    %c0_135 = arith.constant 0 : index
    %c2_136 = arith.constant 2 : index
    %c2_137 = arith.constant 2 : index
    %106 = vector.load %arg7[%c0_135, %c2_136, %c2_137] : memref<4x18x18xf32, #tpu.memory_space<vmem>>, vector<4x1x16xf32>
    %107 = vector.shape_cast %106 : vector<4x1x16xf32> to vector<4x16xf32>
    %c32 = arith.constant 32 : index
    %c0_138 = arith.constant 0 : index
    %108 = vector.load %arg8[%c32, %c0_138] : memref<36x256xf32, #tpu.memory_space<vmem>>, vector<4x16xf32>
    tpu.vector_store %arg8[%c32, %c0_138], %107 {strides = array<i32>} : memref<36x256xf32, #tpu.memory_space<vmem>>, vector<4x16xf32>,
    %c0_139 = arith.constant 0 : index
    %c1_140 = arith.constant 1 : index
    %c0_141 = arith.constant 0 : index
    %109 = vector.load %arg7[%c0_139, %c1_140, %c0_141] : memref<4x18x18xf32, #tpu.memory_space<vmem>>, vector<4x1x16xf32>
    %110 = vector.shape_cast %109 : vector<4x1x16xf32> to vector<4x16xf32>
    %c0_142 = arith.constant 0 : index
    %c16_143 = arith.constant 16 : index
    %111 = vector.load %arg8[%c0_142, %c16_143] : memref<36x256xf32, #tpu.memory_space<vmem>>, vector<4x16xf32>
    tpu.vector_store %arg8[%c0_142, %c16_143], %110 {strides = array<i32>} : memref<36x256xf32, #tpu.memory_space<vmem>>, vector<4x16xf32>,
    %c0_144 = arith.constant 0 : index
    %c1_145 = arith.constant 1 : index
    %c1_146 = arith.constant 1 : index
    %112 = vector.load %arg7[%c0_144, %c1_145, %c1_146] : memref<4x18x18xf32, #tpu.memory_space<vmem>>, vector<4x1x16xf32>
    %113 = vector.shape_cast %112 : vector<4x1x16xf32> to vector<4x16xf32>
    %c4_147 = arith.constant 4 : index
    %c16_148 = arith.constant 16 : index
    %114 = vector.load %arg8[%c4_147, %c16_148] : memref<36x256xf32, #tpu.memory_space<vmem>>, vector<4x16xf32>
    tpu.vector_store %arg8[%c4_147, %c16_148], %113 {strides = array<i32>} : memref<36x256xf32, #tpu.memory_space<vmem>>, vector<4x16xf32>,
    %c0_149 = arith.constant 0 : index
    %c1_150 = arith.constant 1 : index
    %c2_151 = arith.constant 2 : index
    %115 = vector.load %arg7[%c0_149, %c1_150, %c2_151] : memref<4x18x18xf32, #tpu.memory_space<vmem>>, vector<4x1x16xf32>
    %116 = vector.shape_cast %115 : vector<4x1x16xf32> to vector<4x16xf32>
    %c8_152 = arith.constant 8 : index
    %c16_153 = arith.constant 16 : index
    %117 = vector.load %arg8[%c8_152, %c16_153] : memref<36x256xf32, #tpu.memory_space<vmem>>, vector<4x16xf32>
    tpu.vector_store %arg8[%c8_152, %c16_153], %116 {strides = array<i32>} : memref<36x256xf32, #tpu.memory_space<vmem>>, vector<4x16xf32>,
    %c0_154 = arith.constant 0 : index
    %c2_155 = arith.constant 2 : index
    %c0_156 = arith.constant 0 : index
    %118 = vector.load %arg7[%c0_154, %c2_155, %c0_156] : memref<4x18x18xf32, #tpu.memory_space<vmem>>, vector<4x1x16xf32>
    %119 = vector.shape_cast %118 : vector<4x1x16xf32> to vector<4x16xf32>
    %c12_157 = arith.constant 12 : index
    %c16_158 = arith.constant 16 : index
    %120 = vector.load %arg8[%c12_157, %c16_158] : memref<36x256xf32, #tpu.memory_space<vmem>>, vector<4x16xf32>
    tpu.vector_store %arg8[%c12_157, %c16_158], %119 {strides = array<i32>} : memref<36x256xf32, #tpu.memory_space<vmem>>, vector<4x16xf32>,
    %c0_159 = arith.constant 0 : index
    %c2_160 = arith.constant 2 : index
    %c1_161 = arith.constant 1 : index
    %121 = vector.load %arg7[%c0_159, %c2_160, %c1_161] : memref<4x18x18xf32, #tpu.memory_space<vmem>>, vector<4x1x16xf32>
    %122 = vector.shape_cast %121 : vector<4x1x16xf32> to vector<4x16xf32>
    %c16_162 = arith.constant 16 : index
    %c16_163 = arith.constant 16 : index
    %123 = vector.load %arg8[%c16_162, %c16_163] : memref<36x256xf32, #tpu.memory_space<vmem>>, vector<4x16xf32>
    tpu.vector_store %arg8[%c16_162, %c16_163], %122 {strides = array<i32>} : memref<36x256xf32, #tpu.memory_space<vmem>>, vector<4x16xf32>,
    %c0_164 = arith.constant 0 : index
    %c2_165 = arith.constant 2 : index
    %c2_166 = arith.constant 2 : index
    %124 = vector.load %arg7[%c0_164, %c2_165, %c2_166] : memref<4x18x18xf32, #tpu.memory_space<vmem>>, vector<4x1x16xf32>
    %125 = vector.shape_cast %124 : vector<4x1x16xf32> to vector<4x16xf32>
    %c20_167 = arith.constant 20 : index
    %c16_168 = arith.constant 16 : index
    %126 = vector.load %arg8[%c20_167, %c16_168] : memref<36x256xf32, #tpu.memory_space<vmem>>, vector<4x16xf32>
    tpu.vector_store %arg8[%c20_167, %c16_168], %125 {strides = array<i32>} : memref<36x256xf32, #tpu.memory_space<vmem>>, vector<4x16xf32>,
    %c0_169 = arith.constant 0 : index
    %c3_170 = arith.constant 3 : index
    %c0_171 = arith.constant 0 : index
    %127 = vector.load %arg7[%c0_169, %c3_170, %c0_171] : memref<4x18x18xf32, #tpu.memory_space<vmem>>, vector<4x1x16xf32>
    %128 = vector.shape_cast %127 : vector<4x1x16xf32> to vector<4x16xf32>
    %c24_172 = arith.constant 24 : index
    %c16_173 = arith.constant 16 : index
    %129 = vector.load %arg8[%c24_172, %c16_173] : memref<36x256xf32, #tpu.memory_space<vmem>>, vector<4x16xf32>
    tpu.vector_store %arg8[%c24_172, %c16_173], %128 {strides = array<i32>} : memref<36x256xf32, #tpu.memory_space<vmem>>, vector<4x16xf32>,
    %c0_174 = arith.constant 0 : index
    %c3_175 = arith.constant 3 : index
    %c1_176 = arith.constant 1 : index
    %130 = vector.load %arg7[%c0_174, %c3_175, %c1_176] : memref<4x18x18xf32, #tpu.memory_space<vmem>>, vector<4x1x16xf32>
    %131 = vector.shape_cast %130 : vector<4x1x16xf32> to vector<4x16xf32>
    %c28_177 = arith.constant 28 : index
    %c16_178 = arith.constant 16 : index
    %132 = vector.load %arg8[%c28_177, %c16_178] : memref<36x256xf32, #tpu.memory_space<vmem>>, vector<4x16xf32>
    tpu.vector_store %arg8[%c28_177, %c16_178], %131 {strides = array<i32>} : memref<36x256xf32, #tpu.memory_space<vmem>>, vector<4x16xf32>,
    %c0_179 = arith.constant 0 : index
    %c3_180 = arith.constant 3 : index
    %c2_181 = arith.constant 2 : index
    %133 = vector.load %arg7[%c0_179, %c3_180, %c2_181] : memref<4x18x18xf32, #tpu.memory_space<vmem>>, vector<4x1x16xf32>
    %134 = vector.shape_cast %133 : vector<4x1x16xf32> to vector<4x16xf32>
    %c32_182 = arith.constant 32 : index
    %c16_183 = arith.constant 16 : index
    %135 = vector.load %arg8[%c32_182, %c16_183] : memref<36x256xf32, #tpu.memory_space<vmem>>, vector<4x16xf32>
    tpu.vector_store %arg8[%c32_182, %c16_183], %134 {strides = array<i32>} : memref<36x256xf32, #tpu.memory_space<vmem>>, vector<4x16xf32>,
    %c0_184 = arith.constant 0 : index
    %c2_185 = arith.constant 2 : index
    %c0_186 = arith.constant 0 : index
    %136 = vector.load %arg7[%c0_184, %c2_185, %c0_186] : memref<4x18x18xf32, #tpu.memory_space<vmem>>, vector<4x1x16xf32>
    %137 = vector.shape_cast %136 : vector<4x1x16xf32> to vector<4x16xf32>
    %c0_187 = arith.constant 0 : index
    %c32_188 = arith.constant 32 : index
    %138 = vector.load %arg8[%c0_187, %c32_188] : memref<36x256xf32, #tpu.memory_space<vmem>>, vector<4x16xf32>
    tpu.vector_store %arg8[%c0_187, %c32_188], %137 {strides = array<i32>} : memref<36x256xf32, #tpu.memory_space<vmem>>, vector<4x16xf32>,
    %c0_189 = arith.constant 0 : index
    %c2_190 = arith.constant 2 : index
    %c1_191 = arith.constant 1 : index
    %139 = vector.load %arg7[%c0_189, %c2_190, %c1_191] : memref<4x18x18xf32, #tpu.memory_space<vmem>>, vector<4x1x16xf32>
    %140 = vector.shape_cast %139 : vector<4x1x16xf32> to vector<4x16xf32>
    %c4_192 = arith.constant 4 : index
    %c32_193 = arith.constant 32 : index
    %141 = vector.load %arg8[%c4_192, %c32_193] : memref<36x256xf32, #tpu.memory_space<vmem>>, vector<4x16xf32>
    tpu.vector_store %arg8[%c4_192, %c32_193], %140 {strides = array<i32>} : memref<36x256xf32, #tpu.memory_space<vmem>>, vector<4x16xf32>,
    %c0_194 = arith.constant 0 : index
    %c2_195 = arith.constant 2 : index
    %c2_196 = arith.constant 2 : index
    %142 = vector.load %arg7[%c0_194, %c2_195, %c2_196] : memref<4x18x18xf32, #tpu.memory_space<vmem>>, vector<4x1x16xf32>
    %143 = vector.shape_cast %142 : vector<4x1x16xf32> to vector<4x16xf32>
    %c8_197 = arith.constant 8 : index
    %c32_198 = arith.constant 32 : index
    %144 = vector.load %arg8[%c8_197, %c32_198] : memref<36x256xf32, #tpu.memory_space<vmem>>, vector<4x16xf32>
    tpu.vector_store %arg8[%c8_197, %c32_198], %143 {strides = array<i32>} : memref<36x256xf32, #tpu.memory_space<vmem>>, vector<4x16xf32>,
    %c0_199 = arith.constant 0 : index
    %c3_200 = arith.constant 3 : index
    %c0_201 = arith.constant 0 : index
    %145 = vector.load %arg7[%c0_199, %c3_200, %c0_201] : memref<4x18x18xf32, #tpu.memory_space<vmem>>, vector<4x1x16xf32>
    %146 = vector.shape_cast %145 : vector<4x1x16xf32> to vector<4x16xf32>
    %c12_202 = arith.constant 12 : index
    %c32_203 = arith.constant 32 : index
    %147 = vector.load %arg8[%c12_202, %c32_203] : memref<36x256xf32, #tpu.memory_space<vmem>>, vector<4x16xf32>
    tpu.vector_store %arg8[%c12_202, %c32_203], %146 {strides = array<i32>} : memref<36x256xf32, #tpu.memory_space<vmem>>, vector<4x16xf32>,
    %c0_204 = arith.constant 0 : index
    %c3_205 = arith.constant 3 : index
    %c1_206 = arith.constant 1 : index
    %148 = vector.load %arg7[%c0_204, %c3_205, %c1_206] : memref<4x18x18xf32, #tpu.memory_space<vmem>>, vector<4x1x16xf32>
    %149 = vector.shape_cast %148 : vector<4x1x16xf32> to vector<4x16xf32>
    %c16_207 = arith.constant 16 : index
    %c32_208 = arith.constant 32 : index
    %150 = vector.load %arg8[%c16_207, %c32_208] : memref<36x256xf32, #tpu.memory_space<vmem>>, vector<4x16xf32>
    tpu.vector_store %arg8[%c16_207, %c32_208], %149 {strides = array<i32>} : memref<36x256xf32, #tpu.memory_space<vmem>>, vector<4x16xf32>,
    %c0_209 = arith.constant 0 : index
    %c3_210 = arith.constant 3 : index
    %c2_211 = arith.constant 2 : index
    %151 = vector.load %arg7[%c0_209, %c3_210, %c2_211] : memref<4x18x18xf32, #tpu.memory_space<vmem>>, vector<4x1x16xf32>
    %152 = vector.shape_cast %151 : vector<4x1x16xf32> to vector<4x16xf32>
    %c20_212 = arith.constant 20 : index
    %c32_213 = arith.constant 32 : index
    %153 = vector.load %arg8[%c20_212, %c32_213] : memref<36x256xf32, #tpu.memory_space<vmem>>, vector<4x16xf32>
    tpu.vector_store %arg8[%c20_212, %c32_213], %152 {strides = array<i32>} : memref<36x256xf32, #tpu.memory_space<vmem>>, vector<4x16xf32>,
    %c0_214 = arith.constant 0 : index
    %c4_215 = arith.constant 4 : index
    %c0_216 = arith.constant 0 : index
    %154 = vector.load %arg7[%c0_214, %c4_215, %c0_216] : memref<4x18x18xf32, #tpu.memory_space<vmem>>, vector<4x1x16xf32>
    %155 = vector.shape_cast %154 : vector<4x1x16xf32> to vector<4x16xf32>
    %c24_217 = arith.constant 24 : index
    %c32_218 = arith.constant 32 : index
    %156 = vector.load %arg8[%c24_217, %c32_218] : memref<36x256xf32, #tpu.memory_space<vmem>>, vector<4x16xf32>
    tpu.vector_store %arg8[%c24_217, %c32_218], %155 {strides = array<i32>} : memref<36x256xf32, #tpu.memory_space<vmem>>, vector<4x16xf32>,
    %c0_219 = arith.constant 0 : index
    %c4_220 = arith.constant 4 : index
    %c1_221 = arith.constant 1 : index
    %157 = vector.load %arg7[%c0_219, %c4_220, %c1_221] : memref<4x18x18xf32, #tpu.memory_space<vmem>>, vector<4x1x16xf32>
    %158 = vector.shape_cast %157 : vector<4x1x16xf32> to vector<4x16xf32>
    %c28_222 = arith.constant 28 : index
    %c32_223 = arith.constant 32 : index
    %159 = vector.load %arg8[%c28_222, %c32_223] : memref<36x256xf32, #tpu.memory_space<vmem>>, vector<4x16xf32>
    tpu.vector_store %arg8[%c28_222, %c32_223], %158 {strides = array<i32>} : memref<36x256xf32, #tpu.memory_space<vmem>>, vector<4x16xf32>,
    %c0_224 = arith.constant 0 : index
    %c4_225 = arith.constant 4 : index
    %c2_226 = arith.constant 2 : index
    %160 = vector.load %arg7[%c0_224, %c4_225, %c2_226] : memref<4x18x18xf32, #tpu.memory_space<vmem>>, vector<4x1x16xf32>
    %161 = vector.shape_cast %160 : vector<4x1x16xf32> to vector<4x16xf32>
    %c32_227 = arith.constant 32 : index
    %c32_228 = arith.constant 32 : index
    %162 = vector.load %arg8[%c32_227, %c32_228] : memref<36x256xf32, #tpu.memory_space<vmem>>, vector<4x16xf32>
    tpu.vector_store %arg8[%c32_227, %c32_228], %161 {strides = array<i32>} : memref<36x256xf32, #tpu.memory_space<vmem>>, vector<4x16xf32>,
    %c0_229 = arith.constant 0 : index
    %c3_230 = arith.constant 3 : index
    %c0_231 = arith.constant 0 : index
    %163 = vector.load %arg7[%c0_229, %c3_230, %c0_231] : memref<4x18x18xf32, #tpu.memory_space<vmem>>, vector<4x1x16xf32>
    %164 = vector.shape_cast %163 : vector<4x1x16xf32> to vector<4x16xf32>
    %c0_232 = arith.constant 0 : index
    %c48 = arith.constant 48 : index
    %165 = vector.load %arg8[%c0_232, %c48] : memref<36x256xf32, #tpu.memory_space<vmem>>, vector<4x16xf32>
    tpu.vector_store %arg8[%c0_232, %c48], %164 {strides = array<i32>} : memref<36x256xf32, #tpu.memory_space<vmem>>, vector<4x16xf32>,
    %c0_233 = arith.constant 0 : index
    %c3_234 = arith.constant 3 : index
    %c1_235 = arith.constant 1 : index
    %166 = vector.load %arg7[%c0_233, %c3_234, %c1_235] : memref<4x18x18xf32, #tpu.memory_space<vmem>>, vector<4x1x16xf32>
    %167 = vector.shape_cast %166 : vector<4x1x16xf32> to vector<4x16xf32>
    %c4_236 = arith.constant 4 : index
    %c48_237 = arith.constant 48 : index
    %168 = vector.load %arg8[%c4_236, %c48_237] : memref<36x256xf32, #tpu.memory_space<vmem>>, vector<4x16xf32>
    tpu.vector_store %arg8[%c4_236, %c48_237], %167 {strides = array<i32>} : memref<36x256xf32, #tpu.memory_space<vmem>>, vector<4x16xf32>,
    %c0_238 = arith.constant 0 : index
    %c3_239 = arith.constant 3 : index
    %c2_240 = arith.constant 2 : index
    %169 = vector.load %arg7[%c0_238, %c3_239, %c2_240] : memref<4x18x18xf32, #tpu.memory_space<vmem>>, vector<4x1x16xf32>
    %170 = vector.shape_cast %169 : vector<4x1x16xf32> to vector<4x16xf32>
    %c8_241 = arith.constant 8 : index
    %c48_242 = arith.constant 48 : index
    %171 = vector.load %arg8[%c8_241, %c48_242] : memref<36x256xf32, #tpu.memory_space<vmem>>, vector<4x16xf32>
    tpu.vector_store %arg8[%c8_241, %c48_242], %170 {strides = array<i32>} : memref<36x256xf32, #tpu.memory_space<vmem>>, vector<4x16xf32>,
    %c0_243 = arith.constant 0 : index
    %c4_244 = arith.constant 4 : index
    %c0_245 = arith.constant 0 : index
    %172 = vector.load %arg7[%c0_243, %c4_244, %c0_245] : memref<4x18x18xf32, #tpu.memory_space<vmem>>, vector<4x1x16xf32>
    %173 = vector.shape_cast %172 : vector<4x1x16xf32> to vector<4x16xf32>
    %c12_246 = arith.constant 12 : index
    %c48_247 = arith.constant 48 : index
    %174 = vector.load %arg8[%c12_246, %c48_247] : memref<36x256xf32, #tpu.memory_space<vmem>>, vector<4x16xf32>
    tpu.vector_store %arg8[%c12_246, %c48_247], %173 {strides = array<i32>} : memref<36x256xf32, #tpu.memory_space<vmem>>, vector<4x16xf32>,
    %c0_248 = arith.constant 0 : index
    %c4_249 = arith.constant 4 : index
    %c1_250 = arith.constant 1 : index
    %175 = vector.load %arg7[%c0_248, %c4_249, %c1_250] : memref<4x18x18xf32, #tpu.memory_space<vmem>>, vector<4x1x16xf32>
    %176 = vector.shape_cast %175 : vector<4x1x16xf32> to vector<4x16xf32>
    %c16_251 = arith.constant 16 : index
    %c48_252 = arith.constant 48 : index
    %177 = vector.load %arg8[%c16_251, %c48_252] : memref<36x256xf32, #tpu.memory_space<vmem>>, vector<4x16xf32>
    tpu.vector_store %arg8[%c16_251, %c48_252], %176 {strides = array<i32>} : memref<36x256xf32, #tpu.memory_space<vmem>>, vector<4x16xf32>,
    %c0_253 = arith.constant 0 : index
    %c4_254 = arith.constant 4 : index
    %c2_255 = arith.constant 2 : index
    %178 = vector.load %arg7[%c0_253, %c4_254, %c2_255] : memref<4x18x18xf32, #tpu.memory_space<vmem>>, vector<4x1x16xf32>
    %179 = vector.shape_cast %178 : vector<4x1x16xf32> to vector<4x16xf32>
    %c20_256 = arith.constant 20 : index
    %c48_257 = arith.constant 48 : index
    %180 = vector.load %arg8[%c20_256, %c48_257] : memref<36x256xf32, #tpu.memory_space<vmem>>, vector<4x16xf32>
    tpu.vector_store %arg8[%c20_256, %c48_257], %179 {strides = array<i32>} : memref<36x256xf32, #tpu.memory_space<vmem>>, vector<4x16xf32>,
    %c0_258 = arith.constant 0 : index
    %c5_259 = arith.constant 5 : index
    %c0_260 = arith.constant 0 : index
    %181 = vector.load %arg7[%c0_258, %c5_259, %c0_260] : memref<4x18x18xf32, #tpu.memory_space<vmem>>, vector<4x1x16xf32>
    %182 = vector.shape_cast %181 : vector<4x1x16xf32> to vector<4x16xf32>
    %c24_261 = arith.constant 24 : index
    %c48_262 = arith.constant 48 : index
    %183 = vector.load %arg8[%c24_261, %c48_262] : memref<36x256xf32, #tpu.memory_space<vmem>>, vector<4x16xf32>
    tpu.vector_store %arg8[%c24_261, %c48_262], %182 {strides = array<i32>} : memref<36x256xf32, #tpu.memory_space<vmem>>, vector<4x16xf32>,
    %c0_263 = arith.constant 0 : index
    %c5_264 = arith.constant 5 : index
    %c1_265 = arith.constant 1 : index
    %184 = vector.load %arg7[%c0_263, %c5_264, %c1_265] : memref<4x18x18xf32, #tpu.memory_space<vmem>>, vector<4x1x16xf32>
    %185 = vector.shape_cast %184 : vector<4x1x16xf32> to vector<4x16xf32>
    %c28_266 = arith.constant 28 : index
    %c48_267 = arith.constant 48 : index
    %186 = vector.load %arg8[%c28_266, %c48_267] : memref<36x256xf32, #tpu.memory_space<vmem>>, vector<4x16xf32>
    tpu.vector_store %arg8[%c28_266, %c48_267], %185 {strides = array<i32>} : memref<36x256xf32, #tpu.memory_space<vmem>>, vector<4x16xf32>,
    %c0_268 = arith.constant 0 : index
    %c5_269 = arith.constant 5 : index
    %c2_270 = arith.constant 2 : index
    %187 = vector.load %arg7[%c0_268, %c5_269, %c2_270] : memref<4x18x18xf32, #tpu.memory_space<vmem>>, vector<4x1x16xf32>
    %188 = vector.shape_cast %187 : vector<4x1x16xf32> to vector<4x16xf32>
    %c32_271 = arith.constant 32 : index
    %c48_272 = arith.constant 48 : index
    %189 = vector.load %arg8[%c32_271, %c48_272] : memref<36x256xf32, #tpu.memory_space<vmem>>, vector<4x16xf32>
    tpu.vector_store %arg8[%c32_271, %c48_272], %188 {strides = array<i32>} : memref<36x256xf32, #tpu.memory_space<vmem>>, vector<4x16xf32>,
    %c0_273 = arith.constant 0 : index
    %c4_274 = arith.constant 4 : index
    %c0_275 = arith.constant 0 : index
    %190 = vector.load %arg7[%c0_273, %c4_274, %c0_275] : memref<4x18x18xf32, #tpu.memory_space<vmem>>, vector<4x1x16xf32>
    %191 = vector.shape_cast %190 : vector<4x1x16xf32> to vector<4x16xf32>
    %c0_276 = arith.constant 0 : index
    %c64 = arith.constant 64 : index
    %192 = vector.load %arg8[%c0_276, %c64] : memref<36x256xf32, #tpu.memory_space<vmem>>, vector<4x16xf32>
    tpu.vector_store %arg8[%c0_276, %c64], %191 {strides = array<i32>} : memref<36x256xf32, #tpu.memory_space<vmem>>, vector<4x16xf32>,
    %c0_277 = arith.constant 0 : index
    %c4_278 = arith.constant 4 : index
    %c1_279 = arith.constant 1 : index
    %193 = vector.load %arg7[%c0_277, %c4_278, %c1_279] : memref<4x18x18xf32, #tpu.memory_space<vmem>>, vector<4x1x16xf32>
    %194 = vector.shape_cast %193 : vector<4x1x16xf32> to vector<4x16xf32>
    %c4_280 = arith.constant 4 : index
    %c64_281 = arith.constant 64 : index
    %195 = vector.load %arg8[%c4_280, %c64_281] : memref<36x256xf32, #tpu.memory_space<vmem>>, vector<4x16xf32>
    tpu.vector_store %arg8[%c4_280, %c64_281], %194 {strides = array<i32>} : memref<36x256xf32, #tpu.memory_space<vmem>>, vector<4x16xf32>,
    %c0_282 = arith.constant 0 : index
    %c4_283 = arith.constant 4 : index
    %c2_284 = arith.constant 2 : index
    %196 = vector.load %arg7[%c0_282, %c4_283, %c2_284] : memref<4x18x18xf32, #tpu.memory_space<vmem>>, vector<4x1x16xf32>
    %197 = vector.shape_cast %196 : vector<4x1x16xf32> to vector<4x16xf32>
    %c8_285 = arith.constant 8 : index
    %c64_286 = arith.constant 64 : index
    %198 = vector.load %arg8[%c8_285, %c64_286] : memref<36x256xf32, #tpu.memory_space<vmem>>, vector<4x16xf32>
    tpu.vector_store %arg8[%c8_285, %c64_286], %197 {strides = array<i32>} : memref<36x256xf32, #tpu.memory_space<vmem>>, vector<4x16xf32>,
    %c0_287 = arith.constant 0 : index
    %c5_288 = arith.constant 5 : index
    %c0_289 = arith.constant 0 : index
    %199 = vector.load %arg7[%c0_287, %c5_288, %c0_289] : memref<4x18x18xf32, #tpu.memory_space<vmem>>, vector<4x1x16xf32>
    %200 = vector.shape_cast %199 : vector<4x1x16xf32> to vector<4x16xf32>
    %c12_290 = arith.constant 12 : index
    %c64_291 = arith.constant 64 : index
    %201 = vector.load %arg8[%c12_290, %c64_291] : memref<36x256xf32, #tpu.memory_space<vmem>>, vector<4x16xf32>
    tpu.vector_store %arg8[%c12_290, %c64_291], %200 {strides = array<i32>} : memref<36x256xf32, #tpu.memory_space<vmem>>, vector<4x16xf32>,
    %c0_292 = arith.constant 0 : index
    %c5_293 = arith.constant 5 : index
    %c1_294 = arith.constant 1 : index
    %202 = vector.load %arg7[%c0_292, %c5_293, %c1_294] : memref<4x18x18xf32, #tpu.memory_space<vmem>>, vector<4x1x16xf32>
    %203 = vector.shape_cast %202 : vector<4x1x16xf32> to vector<4x16xf32>
    %c16_295 = arith.constant 16 : index
    %c64_296 = arith.constant 64 : index
    %204 = vector.load %arg8[%c16_295, %c64_296] : memref<36x256xf32, #tpu.memory_space<vmem>>, vector<4x16xf32>
    tpu.vector_store %arg8[%c16_295, %c64_296], %203 {strides = array<i32>} : memref<36x256xf32, #tpu.memory_space<vmem>>, vector<4x16xf32>,
    %c0_297 = arith.constant 0 : index
    %c5_298 = arith.constant 5 : index
    %c2_299 = arith.constant 2 : index
    %205 = vector.load %arg7[%c0_297, %c5_298, %c2_299] : memref<4x18x18xf32, #tpu.memory_space<vmem>>, vector<4x1x16xf32>
    %206 = vector.shape_cast %205 : vector<4x1x16xf32> to vector<4x16xf32>
    %c20_300 = arith.constant 20 : index
    %c64_301 = arith.constant 64 : index
    %207 = vector.load %arg8[%c20_300, %c64_301] : memref<36x256xf32, #tpu.memory_space<vmem>>, vector<4x16xf32>
    tpu.vector_store %arg8[%c20_300, %c64_301], %206 {strides = array<i32>} : memref<36x256xf32, #tpu.memory_space<vmem>>, vector<4x16xf32>,
    %c0_302 = arith.constant 0 : index
    %c6_303 = arith.constant 6 : index
    %c0_304 = arith.constant 0 : index
    %208 = vector.load %arg7[%c0_302, %c6_303, %c0_304] : memref<4x18x18xf32, #tpu.memory_space<vmem>>, vector<4x1x16xf32>
    %209 = vector.shape_cast %208 : vector<4x1x16xf32> to vector<4x16xf32>
    %c24_305 = arith.constant 24 : index
    %c64_306 = arith.constant 64 : index
    %210 = vector.load %arg8[%c24_305, %c64_306] : memref<36x256xf32, #tpu.memory_space<vmem>>, vector<4x16xf32>
    tpu.vector_store %arg8[%c24_305, %c64_306], %209 {strides = array<i32>} : memref<36x256xf32, #tpu.memory_space<vmem>>, vector<4x16xf32>,
    %c0_307 = arith.constant 0 : index
    %c6_308 = arith.constant 6 : index
    %c1_309 = arith.constant 1 : index
    %211 = vector.load %arg7[%c0_307, %c6_308, %c1_309] : memref<4x18x18xf32, #tpu.memory_space<vmem>>, vector<4x1x16xf32>
    %212 = vector.shape_cast %211 : vector<4x1x16xf32> to vector<4x16xf32>
    %c28_310 = arith.constant 28 : index
    %c64_311 = arith.constant 64 : index
    %213 = vector.load %arg8[%c28_310, %c64_311] : memref<36x256xf32, #tpu.memory_space<vmem>>, vector<4x16xf32>
    tpu.vector_store %arg8[%c28_310, %c64_311], %212 {strides = array<i32>} : memref<36x256xf32, #tpu.memory_space<vmem>>, vector<4x16xf32>,
    %c0_312 = arith.constant 0 : index
    %c6_313 = arith.constant 6 : index
    %c2_314 = arith.constant 2 : index
    %214 = vector.load %arg7[%c0_312, %c6_313, %c2_314] : memref<4x18x18xf32, #tpu.memory_space<vmem>>, vector<4x1x16xf32>
    %215 = vector.shape_cast %214 : vector<4x1x16xf32> to vector<4x16xf32>
    %c32_315 = arith.constant 32 : index
    %c64_316 = arith.constant 64 : index
    %216 = vector.load %arg8[%c32_315, %c64_316] : memref<36x256xf32, #tpu.memory_space<vmem>>, vector<4x16xf32>
    tpu.vector_store %arg8[%c32_315, %c64_316], %215 {strides = array<i32>} : memref<36x256xf32, #tpu.memory_space<vmem>>, vector<4x16xf32>,
    %c0_317 = arith.constant 0 : index
    %c5_318 = arith.constant 5 : index
    %c0_319 = arith.constant 0 : index
    %217 = vector.load %arg7[%c0_317, %c5_318, %c0_319] : memref<4x18x18xf32, #tpu.memory_space<vmem>>, vector<4x1x16xf32>
    %218 = vector.shape_cast %217 : vector<4x1x16xf32> to vector<4x16xf32>
    %c0_320 = arith.constant 0 : index
    %c80 = arith.constant 80 : index
    %219 = vector.load %arg8[%c0_320, %c80] : memref<36x256xf32, #tpu.memory_space<vmem>>, vector<4x16xf32>
    tpu.vector_store %arg8[%c0_320, %c80], %218 {strides = array<i32>} : memref<36x256xf32, #tpu.memory_space<vmem>>, vector<4x16xf32>,
    %c0_321 = arith.constant 0 : index
    %c5_322 = arith.constant 5 : index
    %c1_323 = arith.constant 1 : index
    %220 = vector.load %arg7[%c0_321, %c5_322, %c1_323] : memref<4x18x18xf32, #tpu.memory_space<vmem>>, vector<4x1x16xf32>
    %221 = vector.shape_cast %220 : vector<4x1x16xf32> to vector<4x16xf32>
    %c4_324 = arith.constant 4 : index
    %c80_325 = arith.constant 80 : index
    %222 = vector.load %arg8[%c4_324, %c80_325] : memref<36x256xf32, #tpu.memory_space<vmem>>, vector<4x16xf32>
    tpu.vector_store %arg8[%c4_324, %c80_325], %221 {strides = array<i32>} : memref<36x256xf32, #tpu.memory_space<vmem>>, vector<4x16xf32>,
    %c0_326 = arith.constant 0 : index
    %c5_327 = arith.constant 5 : index
    %c2_328 = arith.constant 2 : index
    %223 = vector.load %arg7[%c0_326, %c5_327, %c2_328] : memref<4x18x18xf32, #tpu.memory_space<vmem>>, vector<4x1x16xf32>
    %224 = vector.shape_cast %223 : vector<4x1x16xf32> to vector<4x16xf32>
    %c8_329 = arith.constant 8 : index
    %c80_330 = arith.constant 80 : index
    %225 = vector.load %arg8[%c8_329, %c80_330] : memref<36x256xf32, #tpu.memory_space<vmem>>, vector<4x16xf32>
    tpu.vector_store %arg8[%c8_329, %c80_330], %224 {strides = array<i32>} : memref<36x256xf32, #tpu.memory_space<vmem>>, vector<4x16xf32>,
    %c0_331 = arith.constant 0 : index
    %c6_332 = arith.constant 6 : index
    %c0_333 = arith.constant 0 : index
    %226 = vector.load %arg7[%c0_331, %c6_332, %c0_333] : memref<4x18x18xf32, #tpu.memory_space<vmem>>, vector<4x1x16xf32>
    %227 = vector.shape_cast %226 : vector<4x1x16xf32> to vector<4x16xf32>
    %c12_334 = arith.constant 12 : index
    %c80_335 = arith.constant 80 : index
    %228 = vector.load %arg8[%c12_334, %c80_335] : memref<36x256xf32, #tpu.memory_space<vmem>>, vector<4x16xf32>
    tpu.vector_store %arg8[%c12_334, %c80_335], %227 {strides = array<i32>} : memref<36x256xf32, #tpu.memory_space<vmem>>, vector<4x16xf32>,
    %c0_336 = arith.constant 0 : index
    %c6_337 = arith.constant 6 : index
    %c1_338 = arith.constant 1 : index
    %229 = vector.load %arg7[%c0_336, %c6_337, %c1_338] : memref<4x18x18xf32, #tpu.memory_space<vmem>>, vector<4x1x16xf32>
    %230 = vector.shape_cast %229 : vector<4x1x16xf32> to vector<4x16xf32>
    %c16_339 = arith.constant 16 : index
    %c80_340 = arith.constant 80 : index
    %231 = vector.load %arg8[%c16_339, %c80_340] : memref<36x256xf32, #tpu.memory_space<vmem>>, vector<4x16xf32>
    tpu.vector_store %arg8[%c16_339, %c80_340], %230 {strides = array<i32>} : memref<36x256xf32, #tpu.memory_space<vmem>>, vector<4x16xf32>,
    %c0_341 = arith.constant 0 : index
    %c6_342 = arith.constant 6 : index
    %c2_343 = arith.constant 2 : index
    %232 = vector.load %arg7[%c0_341, %c6_342, %c2_343] : memref<4x18x18xf32, #tpu.memory_space<vmem>>, vector<4x1x16xf32>
    %233 = vector.shape_cast %232 : vector<4x1x16xf32> to vector<4x16xf32>
    %c20_344 = arith.constant 20 : index
    %c80_345 = arith.constant 80 : index
    %234 = vector.load %arg8[%c20_344, %c80_345] : memref<36x256xf32, #tpu.memory_space<vmem>>, vector<4x16xf32>
    tpu.vector_store %arg8[%c20_344, %c80_345], %233 {strides = array<i32>} : memref<36x256xf32, #tpu.memory_space<vmem>>, vector<4x16xf32>,
    %c0_346 = arith.constant 0 : index
    %c7_347 = arith.constant 7 : index
    %c0_348 = arith.constant 0 : index
    %235 = vector.load %arg7[%c0_346, %c7_347, %c0_348] : memref<4x18x18xf32, #tpu.memory_space<vmem>>, vector<4x1x16xf32>
    %236 = vector.shape_cast %235 : vector<4x1x16xf32> to vector<4x16xf32>
    %c24_349 = arith.constant 24 : index
    %c80_350 = arith.constant 80 : index
    %237 = vector.load %arg8[%c24_349, %c80_350] : memref<36x256xf32, #tpu.memory_space<vmem>>, vector<4x16xf32>
    tpu.vector_store %arg8[%c24_349, %c80_350], %236 {strides = array<i32>} : memref<36x256xf32, #tpu.memory_space<vmem>>, vector<4x16xf32>,
    %c0_351 = arith.constant 0 : index
    %c7_352 = arith.constant 7 : index
    %c1_353 = arith.constant 1 : index
    %238 = vector.load %arg7[%c0_351, %c7_352, %c1_353] : memref<4x18x18xf32, #tpu.memory_space<vmem>>, vector<4x1x16xf32>
    %239 = vector.shape_cast %238 : vector<4x1x16xf32> to vector<4x16xf32>
    %c28_354 = arith.constant 28 : index
    %c80_355 = arith.constant 80 : index
    %240 = vector.load %arg8[%c28_354, %c80_355] : memref<36x256xf32, #tpu.memory_space<vmem>>, vector<4x16xf32>
    tpu.vector_store %arg8[%c28_354, %c80_355], %239 {strides = array<i32>} : memref<36x256xf32, #tpu.memory_space<vmem>>, vector<4x16xf32>,
    %c0_356 = arith.constant 0 : index
    %c7_357 = arith.constant 7 : index
    %c2_358 = arith.constant 2 : index
    %241 = vector.load %arg7[%c0_356, %c7_357, %c2_358] : memref<4x18x18xf32, #tpu.memory_space<vmem>>, vector<4x1x16xf32>
    %242 = vector.shape_cast %241 : vector<4x1x16xf32> to vector<4x16xf32>
    %c32_359 = arith.constant 32 : index
    %c80_360 = arith.constant 80 : index
    %243 = vector.load %arg8[%c32_359, %c80_360] : memref<36x256xf32, #tpu.memory_space<vmem>>, vector<4x16xf32>
    tpu.vector_store %arg8[%c32_359, %c80_360], %242 {strides = array<i32>} : memref<36x256xf32, #tpu.memory_space<vmem>>, vector<4x16xf32>,
    %c0_361 = arith.constant 0 : index
    %c6_362 = arith.constant 6 : index
    %c0_363 = arith.constant 0 : index
    %244 = vector.load %arg7[%c0_361, %c6_362, %c0_363] : memref<4x18x18xf32, #tpu.memory_space<vmem>>, vector<4x1x16xf32>
    %245 = vector.shape_cast %244 : vector<4x1x16xf32> to vector<4x16xf32>
    %c0_364 = arith.constant 0 : index
    %c96 = arith.constant 96 : index
    %246 = vector.load %arg8[%c0_364, %c96] : memref<36x256xf32, #tpu.memory_space<vmem>>, vector<4x16xf32>
    tpu.vector_store %arg8[%c0_364, %c96], %245 {strides = array<i32>} : memref<36x256xf32, #tpu.memory_space<vmem>>, vector<4x16xf32>,
    %c0_365 = arith.constant 0 : index
    %c6_366 = arith.constant 6 : index
    %c1_367 = arith.constant 1 : index
    %247 = vector.load %arg7[%c0_365, %c6_366, %c1_367] : memref<4x18x18xf32, #tpu.memory_space<vmem>>, vector<4x1x16xf32>
    %248 = vector.shape_cast %247 : vector<4x1x16xf32> to vector<4x16xf32>
    %c4_368 = arith.constant 4 : index
    %c96_369 = arith.constant 96 : index
    %249 = vector.load %arg8[%c4_368, %c96_369] : memref<36x256xf32, #tpu.memory_space<vmem>>, vector<4x16xf32>
    tpu.vector_store %arg8[%c4_368, %c96_369], %248 {strides = array<i32>} : memref<36x256xf32, #tpu.memory_space<vmem>>, vector<4x16xf32>,
    %c0_370 = arith.constant 0 : index
    %c6_371 = arith.constant 6 : index
    %c2_372 = arith.constant 2 : index
    %250 = vector.load %arg7[%c0_370, %c6_371, %c2_372] : memref<4x18x18xf32, #tpu.memory_space<vmem>>, vector<4x1x16xf32>
    %251 = vector.shape_cast %250 : vector<4x1x16xf32> to vector<4x16xf32>
    %c8_373 = arith.constant 8 : index
    %c96_374 = arith.constant 96 : index
    %252 = vector.load %arg8[%c8_373, %c96_374] : memref<36x256xf32, #tpu.memory_space<vmem>>, vector<4x16xf32>
    tpu.vector_store %arg8[%c8_373, %c96_374], %251 {strides = array<i32>} : memref<36x256xf32, #tpu.memory_space<vmem>>, vector<4x16xf32>,
    %c0_375 = arith.constant 0 : index
    %c7_376 = arith.constant 7 : index
    %c0_377 = arith.constant 0 : index
    %253 = vector.load %arg7[%c0_375, %c7_376, %c0_377] : memref<4x18x18xf32, #tpu.memory_space<vmem>>, vector<4x1x16xf32>
    %254 = vector.shape_cast %253 : vector<4x1x16xf32> to vector<4x16xf32>
    %c12_378 = arith.constant 12 : index
    %c96_379 = arith.constant 96 : index
    %255 = vector.load %arg8[%c12_378, %c96_379] : memref<36x256xf32, #tpu.memory_space<vmem>>, vector<4x16xf32>
    tpu.vector_store %arg8[%c12_378, %c96_379], %254 {strides = array<i32>} : memref<36x256xf32, #tpu.memory_space<vmem>>, vector<4x16xf32>,
    %c0_380 = arith.constant 0 : index
    %c7_381 = arith.constant 7 : index
    %c1_382 = arith.constant 1 : index
    %256 = vector.load %arg7[%c0_380, %c7_381, %c1_382] : memref<4x18x18xf32, #tpu.memory_space<vmem>>, vector<4x1x16xf32>
    %257 = vector.shape_cast %256 : vector<4x1x16xf32> to vector<4x16xf32>
    %c16_383 = arith.constant 16 : index
    %c96_384 = arith.constant 96 : index
    %258 = vector.load %arg8[%c16_383, %c96_384] : memref<36x256xf32, #tpu.memory_space<vmem>>, vector<4x16xf32>
    tpu.vector_store %arg8[%c16_383, %c96_384], %257 {strides = array<i32>} : memref<36x256xf32, #tpu.memory_space<vmem>>, vector<4x16xf32>,
    %c0_385 = arith.constant 0 : index
    %c7_386 = arith.constant 7 : index
    %c2_387 = arith.constant 2 : index
    %259 = vector.load %arg7[%c0_385, %c7_386, %c2_387] : memref<4x18x18xf32, #tpu.memory_space<vmem>>, vector<4x1x16xf32>
    %260 = vector.shape_cast %259 : vector<4x1x16xf32> to vector<4x16xf32>
    %c20_388 = arith.constant 20 : index
    %c96_389 = arith.constant 96 : index
    %261 = vector.load %arg8[%c20_388, %c96_389] : memref<36x256xf32, #tpu.memory_space<vmem>>, vector<4x16xf32>
    tpu.vector_store %arg8[%c20_388, %c96_389], %260 {strides = array<i32>} : memref<36x256xf32, #tpu.memory_space<vmem>>, vector<4x16xf32>,
    %c0_390 = arith.constant 0 : index
    %c8_391 = arith.constant 8 : index
    %c0_392 = arith.constant 0 : index
    %262 = vector.load %arg7[%c0_390, %c8_391, %c0_392] : memref<4x18x18xf32, #tpu.memory_space<vmem>>, vector<4x1x16xf32>
    %263 = vector.shape_cast %262 : vector<4x1x16xf32> to vector<4x16xf32>
    %c24_393 = arith.constant 24 : index
    %c96_394 = arith.constant 96 : index
    %264 = vector.load %arg8[%c24_393, %c96_394] : memref<36x256xf32, #tpu.memory_space<vmem>>, vector<4x16xf32>
    tpu.vector_store %arg8[%c24_393, %c96_394], %263 {strides = array<i32>} : memref<36x256xf32, #tpu.memory_space<vmem>>, vector<4x16xf32>,
    %c0_395 = arith.constant 0 : index
    %c8_396 = arith.constant 8 : index
    %c1_397 = arith.constant 1 : index
    %265 = vector.load %arg7[%c0_395, %c8_396, %c1_397] : memref<4x18x18xf32, #tpu.memory_space<vmem>>, vector<4x1x16xf32>
    %266 = vector.shape_cast %265 : vector<4x1x16xf32> to vector<4x16xf32>
    %c28_398 = arith.constant 28 : index
    %c96_399 = arith.constant 96 : index
    %267 = vector.load %arg8[%c28_398, %c96_399] : memref<36x256xf32, #tpu.memory_space<vmem>>, vector<4x16xf32>
    tpu.vector_store %arg8[%c28_398, %c96_399], %266 {strides = array<i32>} : memref<36x256xf32, #tpu.memory_space<vmem>>, vector<4x16xf32>,
    %c0_400 = arith.constant 0 : index
    %c8_401 = arith.constant 8 : index
    %c2_402 = arith.constant 2 : index
    %268 = vector.load %arg7[%c0_400, %c8_401, %c2_402] : memref<4x18x18xf32, #tpu.memory_space<vmem>>, vector<4x1x16xf32>
    %269 = vector.shape_cast %268 : vector<4x1x16xf32> to vector<4x16xf32>
    %c32_403 = arith.constant 32 : index
    %c96_404 = arith.constant 96 : index
    %270 = vector.load %arg8[%c32_403, %c96_404] : memref<36x256xf32, #tpu.memory_space<vmem>>, vector<4x16xf32>
    tpu.vector_store %arg8[%c32_403, %c96_404], %269 {strides = array<i32>} : memref<36x256xf32, #tpu.memory_space<vmem>>, vector<4x16xf32>,
    %c0_405 = arith.constant 0 : index
    %c7_406 = arith.constant 7 : index
    %c0_407 = arith.constant 0 : index
    %271 = vector.load %arg7[%c0_405, %c7_406, %c0_407] : memref<4x18x18xf32, #tpu.memory_space<vmem>>, vector<4x1x16xf32>
    %272 = vector.shape_cast %271 : vector<4x1x16xf32> to vector<4x16xf32>
    %c0_408 = arith.constant 0 : index
    %c112 = arith.constant 112 : index
    %273 = vector.load %arg8[%c0_408, %c112] : memref<36x256xf32, #tpu.memory_space<vmem>>, vector<4x16xf32>
    tpu.vector_store %arg8[%c0_408, %c112], %272 {strides = array<i32>} : memref<36x256xf32, #tpu.memory_space<vmem>>, vector<4x16xf32>,
    %c0_409 = arith.constant 0 : index
    %c7_410 = arith.constant 7 : index
    %c1_411 = arith.constant 1 : index
    %274 = vector.load %arg7[%c0_409, %c7_410, %c1_411] : memref<4x18x18xf32, #tpu.memory_space<vmem>>, vector<4x1x16xf32>
    %275 = vector.shape_cast %274 : vector<4x1x16xf32> to vector<4x16xf32>
    %c4_412 = arith.constant 4 : index
    %c112_413 = arith.constant 112 : index
    %276 = vector.load %arg8[%c4_412, %c112_413] : memref<36x256xf32, #tpu.memory_space<vmem>>, vector<4x16xf32>
    tpu.vector_store %arg8[%c4_412, %c112_413], %275 {strides = array<i32>} : memref<36x256xf32, #tpu.memory_space<vmem>>, vector<4x16xf32>,
    %c0_414 = arith.constant 0 : index
    %c7_415 = arith.constant 7 : index
    %c2_416 = arith.constant 2 : index
    %277 = vector.load %arg7[%c0_414, %c7_415, %c2_416] : memref<4x18x18xf32, #tpu.memory_space<vmem>>, vector<4x1x16xf32>
    %278 = vector.shape_cast %277 : vector<4x1x16xf32> to vector<4x16xf32>
    %c8_417 = arith.constant 8 : index
    %c112_418 = arith.constant 112 : index
    %279 = vector.load %arg8[%c8_417, %c112_418] : memref<36x256xf32, #tpu.memory_space<vmem>>, vector<4x16xf32>
    tpu.vector_store %arg8[%c8_417, %c112_418], %278 {strides = array<i32>} : memref<36x256xf32, #tpu.memory_space<vmem>>, vector<4x16xf32>,
    %c0_419 = arith.constant 0 : index
    %c8_420 = arith.constant 8 : index
    %c0_421 = arith.constant 0 : index
    %280 = vector.load %arg7[%c0_419, %c8_420, %c0_421] : memref<4x18x18xf32, #tpu.memory_space<vmem>>, vector<4x1x16xf32>
    %281 = vector.shape_cast %280 : vector<4x1x16xf32> to vector<4x16xf32>
    %c12_422 = arith.constant 12 : index
    %c112_423 = arith.constant 112 : index
    %282 = vector.load %arg8[%c12_422, %c112_423] : memref<36x256xf32, #tpu.memory_space<vmem>>, vector<4x16xf32>
    tpu.vector_store %arg8[%c12_422, %c112_423], %281 {strides = array<i32>} : memref<36x256xf32, #tpu.memory_space<vmem>>, vector<4x16xf32>,
    %c0_424 = arith.constant 0 : index
    %c8_425 = arith.constant 8 : index
    %c1_426 = arith.constant 1 : index
    %283 = vector.load %arg7[%c0_424, %c8_425, %c1_426] : memref<4x18x18xf32, #tpu.memory_space<vmem>>, vector<4x1x16xf32>
    %284 = vector.shape_cast %283 : vector<4x1x16xf32> to vector<4x16xf32>
    %c16_427 = arith.constant 16 : index
    %c112_428 = arith.constant 112 : index
    %285 = vector.load %arg8[%c16_427, %c112_428] : memref<36x256xf32, #tpu.memory_space<vmem>>, vector<4x16xf32>
    tpu.vector_store %arg8[%c16_427, %c112_428], %284 {strides = array<i32>} : memref<36x256xf32, #tpu.memory_space<vmem>>, vector<4x16xf32>,
    %c0_429 = arith.constant 0 : index
    %c8_430 = arith.constant 8 : index
    %c2_431 = arith.constant 2 : index
    %286 = vector.load %arg7[%c0_429, %c8_430, %c2_431] : memref<4x18x18xf32, #tpu.memory_space<vmem>>, vector<4x1x16xf32>
    %287 = vector.shape_cast %286 : vector<4x1x16xf32> to vector<4x16xf32>
    %c20_432 = arith.constant 20 : index
    %c112_433 = arith.constant 112 : index
    %288 = vector.load %arg8[%c20_432, %c112_433] : memref<36x256xf32, #tpu.memory_space<vmem>>, vector<4x16xf32>
    tpu.vector_store %arg8[%c20_432, %c112_433], %287 {strides = array<i32>} : memref<36x256xf32, #tpu.memory_space<vmem>>, vector<4x16xf32>,
    %c0_434 = arith.constant 0 : index
    %c9_435 = arith.constant 9 : index
    %c0_436 = arith.constant 0 : index
    %289 = vector.load %arg7[%c0_434, %c9_435, %c0_436] : memref<4x18x18xf32, #tpu.memory_space<vmem>>, vector<4x1x16xf32>
    %290 = vector.shape_cast %289 : vector<4x1x16xf32> to vector<4x16xf32>
    %c24_437 = arith.constant 24 : index
    %c112_438 = arith.constant 112 : index
    %291 = vector.load %arg8[%c24_437, %c112_438] : memref<36x256xf32, #tpu.memory_space<vmem>>, vector<4x16xf32>
    tpu.vector_store %arg8[%c24_437, %c112_438], %290 {strides = array<i32>} : memref<36x256xf32, #tpu.memory_space<vmem>>, vector<4x16xf32>,
    %c0_439 = arith.constant 0 : index
    %c9_440 = arith.constant 9 : index
    %c1_441 = arith.constant 1 : index
    %292 = vector.load %arg7[%c0_439, %c9_440, %c1_441] : memref<4x18x18xf32, #tpu.memory_space<vmem>>, vector<4x1x16xf32>
    %293 = vector.shape_cast %292 : vector<4x1x16xf32> to vector<4x16xf32>
    %c28_442 = arith.constant 28 : index
    %c112_443 = arith.constant 112 : index
    %294 = vector.load %arg8[%c28_442, %c112_443] : memref<36x256xf32, #tpu.memory_space<vmem>>, vector<4x16xf32>
    tpu.vector_store %arg8[%c28_442, %c112_443], %293 {strides = array<i32>} : memref<36x256xf32, #tpu.memory_space<vmem>>, vector<4x16xf32>,
    %c0_444 = arith.constant 0 : index
    %c9_445 = arith.constant 9 : index
    %c2_446 = arith.constant 2 : index
    %295 = vector.load %arg7[%c0_444, %c9_445, %c2_446] : memref<4x18x18xf32, #tpu.memory_space<vmem>>, vector<4x1x16xf32>
    %296 = vector.shape_cast %295 : vector<4x1x16xf32> to vector<4x16xf32>
    %c32_447 = arith.constant 32 : index
    %c112_448 = arith.constant 112 : index
    %297 = vector.load %arg8[%c32_447, %c112_448] : memref<36x256xf32, #tpu.memory_space<vmem>>, vector<4x16xf32>
    tpu.vector_store %arg8[%c32_447, %c112_448], %296 {strides = array<i32>} : memref<36x256xf32, #tpu.memory_space<vmem>>, vector<4x16xf32>,
    %c0_449 = arith.constant 0 : index
    %c8_450 = arith.constant 8 : index
    %c0_451 = arith.constant 0 : index
    %298 = vector.load %arg7[%c0_449, %c8_450, %c0_451] : memref<4x18x18xf32, #tpu.memory_space<vmem>>, vector<4x1x16xf32>
    %299 = vector.shape_cast %298 : vector<4x1x16xf32> to vector<4x16xf32>
    %c0_452 = arith.constant 0 : index
    %c128 = arith.constant 128 : index
    %300 = vector.load %arg8[%c0_452, %c128] : memref<36x256xf32, #tpu.memory_space<vmem>>, vector<4x16xf32>
    tpu.vector_store %arg8[%c0_452, %c128], %299 {strides = array<i32>} : memref<36x256xf32, #tpu.memory_space<vmem>>, vector<4x16xf32>,
    %c0_453 = arith.constant 0 : index
    %c8_454 = arith.constant 8 : index
    %c1_455 = arith.constant 1 : index
    %301 = vector.load %arg7[%c0_453, %c8_454, %c1_455] : memref<4x18x18xf32, #tpu.memory_space<vmem>>, vector<4x1x16xf32>
    %302 = vector.shape_cast %301 : vector<4x1x16xf32> to vector<4x16xf32>
    %c4_456 = arith.constant 4 : index
    %c128_457 = arith.constant 128 : index
    %303 = vector.load %arg8[%c4_456, %c128_457] : memref<36x256xf32, #tpu.memory_space<vmem>>, vector<4x16xf32>
    tpu.vector_store %arg8[%c4_456, %c128_457], %302 {strides = array<i32>} : memref<36x256xf32, #tpu.memory_space<vmem>>, vector<4x16xf32>,
    %c0_458 = arith.constant 0 : index
    %c8_459 = arith.constant 8 : index
    %c2_460 = arith.constant 2 : index
    %304 = vector.load %arg7[%c0_458, %c8_459, %c2_460] : memref<4x18x18xf32, #tpu.memory_space<vmem>>, vector<4x1x16xf32>
    %305 = vector.shape_cast %304 : vector<4x1x16xf32> to vector<4x16xf32>
    %c8_461 = arith.constant 8 : index
    %c128_462 = arith.constant 128 : index
    %306 = vector.load %arg8[%c8_461, %c128_462] : memref<36x256xf32, #tpu.memory_space<vmem>>, vector<4x16xf32>
    tpu.vector_store %arg8[%c8_461, %c128_462], %305 {strides = array<i32>} : memref<36x256xf32, #tpu.memory_space<vmem>>, vector<4x16xf32>,
    %c0_463 = arith.constant 0 : index
    %c9_464 = arith.constant 9 : index
    %c0_465 = arith.constant 0 : index
    %307 = vector.load %arg7[%c0_463, %c9_464, %c0_465] : memref<4x18x18xf32, #tpu.memory_space<vmem>>, vector<4x1x16xf32>
    %308 = vector.shape_cast %307 : vector<4x1x16xf32> to vector<4x16xf32>
    %c12_466 = arith.constant 12 : index
    %c128_467 = arith.constant 128 : index
    %309 = vector.load %arg8[%c12_466, %c128_467] : memref<36x256xf32, #tpu.memory_space<vmem>>, vector<4x16xf32>
    tpu.vector_store %arg8[%c12_466, %c128_467], %308 {strides = array<i32>} : memref<36x256xf32, #tpu.memory_space<vmem>>, vector<4x16xf32>,
    %c0_468 = arith.constant 0 : index
    %c9_469 = arith.constant 9 : index
    %c1_470 = arith.constant 1 : index
    %310 = vector.load %arg7[%c0_468, %c9_469, %c1_470] : memref<4x18x18xf32, #tpu.memory_space<vmem>>, vector<4x1x16xf32>
    %311 = vector.shape_cast %310 : vector<4x1x16xf32> to vector<4x16xf32>
    %c16_471 = arith.constant 16 : index
    %c128_472 = arith.constant 128 : index
    %312 = vector.load %arg8[%c16_471, %c128_472] : memref<36x256xf32, #tpu.memory_space<vmem>>, vector<4x16xf32>
    tpu.vector_store %arg8[%c16_471, %c128_472], %311 {strides = array<i32>} : memref<36x256xf32, #tpu.memory_space<vmem>>, vector<4x16xf32>,
    %c0_473 = arith.constant 0 : index
    %c9_474 = arith.constant 9 : index
    %c2_475 = arith.constant 2 : index
    %313 = vector.load %arg7[%c0_473, %c9_474, %c2_475] : memref<4x18x18xf32, #tpu.memory_space<vmem>>, vector<4x1x16xf32>
    %314 = vector.shape_cast %313 : vector<4x1x16xf32> to vector<4x16xf32>
    %c20_476 = arith.constant 20 : index
    %c128_477 = arith.constant 128 : index
    %315 = vector.load %arg8[%c20_476, %c128_477] : memref<36x256xf32, #tpu.memory_space<vmem>>, vector<4x16xf32>
    tpu.vector_store %arg8[%c20_476, %c128_477], %314 {strides = array<i32>} : memref<36x256xf32, #tpu.memory_space<vmem>>, vector<4x16xf32>,
    %c0_478 = arith.constant 0 : index
    %c10_479 = arith.constant 10 : index
    %c0_480 = arith.constant 0 : index
    %316 = vector.load %arg7[%c0_478, %c10_479, %c0_480] : memref<4x18x18xf32, #tpu.memory_space<vmem>>, vector<4x1x16xf32>
    %317 = vector.shape_cast %316 : vector<4x1x16xf32> to vector<4x16xf32>
    %c24_481 = arith.constant 24 : index
    %c128_482 = arith.constant 128 : index
    %318 = vector.load %arg8[%c24_481, %c128_482] : memref<36x256xf32, #tpu.memory_space<vmem>>, vector<4x16xf32>
    tpu.vector_store %arg8[%c24_481, %c128_482], %317 {strides = array<i32>} : memref<36x256xf32, #tpu.memory_space<vmem>>, vector<4x16xf32>,
    %c0_483 = arith.constant 0 : index
    %c10_484 = arith.constant 10 : index
    %c1_485 = arith.constant 1 : index
    %319 = vector.load %arg7[%c0_483, %c10_484, %c1_485] : memref<4x18x18xf32, #tpu.memory_space<vmem>>, vector<4x1x16xf32>
    %320 = vector.shape_cast %319 : vector<4x1x16xf32> to vector<4x16xf32>
    %c28_486 = arith.constant 28 : index
    %c128_487 = arith.constant 128 : index
    %321 = vector.load %arg8[%c28_486, %c128_487] : memref<36x256xf32, #tpu.memory_space<vmem>>, vector<4x16xf32>
    tpu.vector_store %arg8[%c28_486, %c128_487], %320 {strides = array<i32>} : memref<36x256xf32, #tpu.memory_space<vmem>>, vector<4x16xf32>,
    %c0_488 = arith.constant 0 : index
    %c10_489 = arith.constant 10 : index
    %c2_490 = arith.constant 2 : index
    %322 = vector.load %arg7[%c0_488, %c10_489, %c2_490] : memref<4x18x18xf32, #tpu.memory_space<vmem>>, vector<4x1x16xf32>
    %323 = vector.shape_cast %322 : vector<4x1x16xf32> to vector<4x16xf32>
    %c32_491 = arith.constant 32 : index
    %c128_492 = arith.constant 128 : index
    %324 = vector.load %arg8[%c32_491, %c128_492] : memref<36x256xf32, #tpu.memory_space<vmem>>, vector<4x16xf32>
    tpu.vector_store %arg8[%c32_491, %c128_492], %323 {strides = array<i32>} : memref<36x256xf32, #tpu.memory_space<vmem>>, vector<4x16xf32>,
    %c0_493 = arith.constant 0 : index
    %c9_494 = arith.constant 9 : index
    %c0_495 = arith.constant 0 : index
    %325 = vector.load %arg7[%c0_493, %c9_494, %c0_495] : memref<4x18x18xf32, #tpu.memory_space<vmem>>, vector<4x1x16xf32>
    %326 = vector.shape_cast %325 : vector<4x1x16xf32> to vector<4x16xf32>
    %c0_496 = arith.constant 0 : index
    %c144 = arith.constant 144 : index
    %327 = vector.load %arg8[%c0_496, %c144] : memref<36x256xf32, #tpu.memory_space<vmem>>, vector<4x16xf32>
    tpu.vector_store %arg8[%c0_496, %c144], %326 {strides = array<i32>} : memref<36x256xf32, #tpu.memory_space<vmem>>, vector<4x16xf32>,
    %c0_497 = arith.constant 0 : index
    %c9_498 = arith.constant 9 : index
    %c1_499 = arith.constant 1 : index
    %328 = vector.load %arg7[%c0_497, %c9_498, %c1_499] : memref<4x18x18xf32, #tpu.memory_space<vmem>>, vector<4x1x16xf32>
    %329 = vector.shape_cast %328 : vector<4x1x16xf32> to vector<4x16xf32>
    %c4_500 = arith.constant 4 : index
    %c144_501 = arith.constant 144 : index
    %330 = vector.load %arg8[%c4_500, %c144_501] : memref<36x256xf32, #tpu.memory_space<vmem>>, vector<4x16xf32>
    tpu.vector_store %arg8[%c4_500, %c144_501], %329 {strides = array<i32>} : memref<36x256xf32, #tpu.memory_space<vmem>>, vector<4x16xf32>,
    %c0_502 = arith.constant 0 : index
    %c9_503 = arith.constant 9 : index
    %c2_504 = arith.constant 2 : index
    %331 = vector.load %arg7[%c0_502, %c9_503, %c2_504] : memref<4x18x18xf32, #tpu.memory_space<vmem>>, vector<4x1x16xf32>
    %332 = vector.shape_cast %331 : vector<4x1x16xf32> to vector<4x16xf32>
    %c8_505 = arith.constant 8 : index
    %c144_506 = arith.constant 144 : index
    %333 = vector.load %arg8[%c8_505, %c144_506] : memref<36x256xf32, #tpu.memory_space<vmem>>, vector<4x16xf32>
    tpu.vector_store %arg8[%c8_505, %c144_506], %332 {strides = array<i32>} : memref<36x256xf32, #tpu.memory_space<vmem>>, vector<4x16xf32>,
    %c0_507 = arith.constant 0 : index
    %c10_508 = arith.constant 10 : index
    %c0_509 = arith.constant 0 : index
    %334 = vector.load %arg7[%c0_507, %c10_508, %c0_509] : memref<4x18x18xf32, #tpu.memory_space<vmem>>, vector<4x1x16xf32>
    %335 = vector.shape_cast %334 : vector<4x1x16xf32> to vector<4x16xf32>
    %c12_510 = arith.constant 12 : index
    %c144_511 = arith.constant 144 : index
    %336 = vector.load %arg8[%c12_510, %c144_511] : memref<36x256xf32, #tpu.memory_space<vmem>>, vector<4x16xf32>
    tpu.vector_store %arg8[%c12_510, %c144_511], %335 {strides = array<i32>} : memref<36x256xf32, #tpu.memory_space<vmem>>, vector<4x16xf32>,
    %c0_512 = arith.constant 0 : index
    %c10_513 = arith.constant 10 : index
    %c1_514 = arith.constant 1 : index
    %337 = vector.load %arg7[%c0_512, %c10_513, %c1_514] : memref<4x18x18xf32, #tpu.memory_space<vmem>>, vector<4x1x16xf32>
    %338 = vector.shape_cast %337 : vector<4x1x16xf32> to vector<4x16xf32>
    %c16_515 = arith.constant 16 : index
    %c144_516 = arith.constant 144 : index
    %339 = vector.load %arg8[%c16_515, %c144_516] : memref<36x256xf32, #tpu.memory_space<vmem>>, vector<4x16xf32>
    tpu.vector_store %arg8[%c16_515, %c144_516], %338 {strides = array<i32>} : memref<36x256xf32, #tpu.memory_space<vmem>>, vector<4x16xf32>,
    %c0_517 = arith.constant 0 : index
    %c10_518 = arith.constant 10 : index
    %c2_519 = arith.constant 2 : index
    %340 = vector.load %arg7[%c0_517, %c10_518, %c2_519] : memref<4x18x18xf32, #tpu.memory_space<vmem>>, vector<4x1x16xf32>
    %341 = vector.shape_cast %340 : vector<4x1x16xf32> to vector<4x16xf32>
    %c20_520 = arith.constant 20 : index
    %c144_521 = arith.constant 144 : index
    %342 = vector.load %arg8[%c20_520, %c144_521] : memref<36x256xf32, #tpu.memory_space<vmem>>, vector<4x16xf32>
    tpu.vector_store %arg8[%c20_520, %c144_521], %341 {strides = array<i32>} : memref<36x256xf32, #tpu.memory_space<vmem>>, vector<4x16xf32>,
    %c0_522 = arith.constant 0 : index
    %c11_523 = arith.constant 11 : index
    %c0_524 = arith.constant 0 : index
    %343 = vector.load %arg7[%c0_522, %c11_523, %c0_524] : memref<4x18x18xf32, #tpu.memory_space<vmem>>, vector<4x1x16xf32>
    %344 = vector.shape_cast %343 : vector<4x1x16xf32> to vector<4x16xf32>
    %c24_525 = arith.constant 24 : index
    %c144_526 = arith.constant 144 : index
    %345 = vector.load %arg8[%c24_525, %c144_526] : memref<36x256xf32, #tpu.memory_space<vmem>>, vector<4x16xf32>
    tpu.vector_store %arg8[%c24_525, %c144_526], %344 {strides = array<i32>} : memref<36x256xf32, #tpu.memory_space<vmem>>, vector<4x16xf32>,
    %c0_527 = arith.constant 0 : index
    %c11_528 = arith.constant 11 : index
    %c1_529 = arith.constant 1 : index
    %346 = vector.load %arg7[%c0_527, %c11_528, %c1_529] : memref<4x18x18xf32, #tpu.memory_space<vmem>>, vector<4x1x16xf32>
    %347 = vector.shape_cast %346 : vector<4x1x16xf32> to vector<4x16xf32>
    %c28_530 = arith.constant 28 : index
    %c144_531 = arith.constant 144 : index
    %348 = vector.load %arg8[%c28_530, %c144_531] : memref<36x256xf32, #tpu.memory_space<vmem>>, vector<4x16xf32>
    tpu.vector_store %arg8[%c28_530, %c144_531], %347 {strides = array<i32>} : memref<36x256xf32, #tpu.memory_space<vmem>>, vector<4x16xf32>,
    %c0_532 = arith.constant 0 : index
    %c11_533 = arith.constant 11 : index
    %c2_534 = arith.constant 2 : index
    %349 = vector.load %arg7[%c0_532, %c11_533, %c2_534] : memref<4x18x18xf32, #tpu.memory_space<vmem>>, vector<4x1x16xf32>
    %350 = vector.shape_cast %349 : vector<4x1x16xf32> to vector<4x16xf32>
    %c32_535 = arith.constant 32 : index
    %c144_536 = arith.constant 144 : index
    %351 = vector.load %arg8[%c32_535, %c144_536] : memref<36x256xf32, #tpu.memory_space<vmem>>, vector<4x16xf32>
    tpu.vector_store %arg8[%c32_535, %c144_536], %350 {strides = array<i32>} : memref<36x256xf32, #tpu.memory_space<vmem>>, vector<4x16xf32>,
    %c0_537 = arith.constant 0 : index
    %c10_538 = arith.constant 10 : index
    %c0_539 = arith.constant 0 : index
    %352 = vector.load %arg7[%c0_537, %c10_538, %c0_539] : memref<4x18x18xf32, #tpu.memory_space<vmem>>, vector<4x1x16xf32>
    %353 = vector.shape_cast %352 : vector<4x1x16xf32> to vector<4x16xf32>
    %c0_540 = arith.constant 0 : index
    %c160 = arith.constant 160 : index
    %354 = vector.load %arg8[%c0_540, %c160] : memref<36x256xf32, #tpu.memory_space<vmem>>, vector<4x16xf32>
    tpu.vector_store %arg8[%c0_540, %c160], %353 {strides = array<i32>} : memref<36x256xf32, #tpu.memory_space<vmem>>, vector<4x16xf32>,
    %c0_541 = arith.constant 0 : index
    %c10_542 = arith.constant 10 : index
    %c1_543 = arith.constant 1 : index
    %355 = vector.load %arg7[%c0_541, %c10_542, %c1_543] : memref<4x18x18xf32, #tpu.memory_space<vmem>>, vector<4x1x16xf32>
    %356 = vector.shape_cast %355 : vector<4x1x16xf32> to vector<4x16xf32>
    %c4_544 = arith.constant 4 : index
    %c160_545 = arith.constant 160 : index
    %357 = vector.load %arg8[%c4_544, %c160_545] : memref<36x256xf32, #tpu.memory_space<vmem>>, vector<4x16xf32>
    tpu.vector_store %arg8[%c4_544, %c160_545], %356 {strides = array<i32>} : memref<36x256xf32, #tpu.memory_space<vmem>>, vector<4x16xf32>,
    %c0_546 = arith.constant 0 : index
    %c10_547 = arith.constant 10 : index
    %c2_548 = arith.constant 2 : index
    %358 = vector.load %arg7[%c0_546, %c10_547, %c2_548] : memref<4x18x18xf32, #tpu.memory_space<vmem>>, vector<4x1x16xf32>
    %359 = vector.shape_cast %358 : vector<4x1x16xf32> to vector<4x16xf32>
    %c8_549 = arith.constant 8 : index
    %c160_550 = arith.constant 160 : index
    %360 = vector.load %arg8[%c8_549, %c160_550] : memref<36x256xf32, #tpu.memory_space<vmem>>, vector<4x16xf32>
    tpu.vector_store %arg8[%c8_549, %c160_550], %359 {strides = array<i32>} : memref<36x256xf32, #tpu.memory_space<vmem>>, vector<4x16xf32>,
    %c0_551 = arith.constant 0 : index
    %c11_552 = arith.constant 11 : index
    %c0_553 = arith.constant 0 : index
    %361 = vector.load %arg7[%c0_551, %c11_552, %c0_553] : memref<4x18x18xf32, #tpu.memory_space<vmem>>, vector<4x1x16xf32>
    %362 = vector.shape_cast %361 : vector<4x1x16xf32> to vector<4x16xf32>
    %c12_554 = arith.constant 12 : index
    %c160_555 = arith.constant 160 : index
    %363 = vector.load %arg8[%c12_554, %c160_555] : memref<36x256xf32, #tpu.memory_space<vmem>>, vector<4x16xf32>
    tpu.vector_store %arg8[%c12_554, %c160_555], %362 {strides = array<i32>} : memref<36x256xf32, #tpu.memory_space<vmem>>, vector<4x16xf32>,
    %c0_556 = arith.constant 0 : index
    %c11_557 = arith.constant 11 : index
    %c1_558 = arith.constant 1 : index
    %364 = vector.load %arg7[%c0_556, %c11_557, %c1_558] : memref<4x18x18xf32, #tpu.memory_space<vmem>>, vector<4x1x16xf32>
    %365 = vector.shape_cast %364 : vector<4x1x16xf32> to vector<4x16xf32>
    %c16_559 = arith.constant 16 : index
    %c160_560 = arith.constant 160 : index
    %366 = vector.load %arg8[%c16_559, %c160_560] : memref<36x256xf32, #tpu.memory_space<vmem>>, vector<4x16xf32>
    tpu.vector_store %arg8[%c16_559, %c160_560], %365 {strides = array<i32>} : memref<36x256xf32, #tpu.memory_space<vmem>>, vector<4x16xf32>,
    %c0_561 = arith.constant 0 : index
    %c11_562 = arith.constant 11 : index
    %c2_563 = arith.constant 2 : index
    %367 = vector.load %arg7[%c0_561, %c11_562, %c2_563] : memref<4x18x18xf32, #tpu.memory_space<vmem>>, vector<4x1x16xf32>
    %368 = vector.shape_cast %367 : vector<4x1x16xf32> to vector<4x16xf32>
    %c20_564 = arith.constant 20 : index
    %c160_565 = arith.constant 160 : index
    %369 = vector.load %arg8[%c20_564, %c160_565] : memref<36x256xf32, #tpu.memory_space<vmem>>, vector<4x16xf32>
    tpu.vector_store %arg8[%c20_564, %c160_565], %368 {strides = array<i32>} : memref<36x256xf32, #tpu.memory_space<vmem>>, vector<4x16xf32>,
    %c0_566 = arith.constant 0 : index
    %c12_567 = arith.constant 12 : index
    %c0_568 = arith.constant 0 : index
    %370 = vector.load %arg7[%c0_566, %c12_567, %c0_568] : memref<4x18x18xf32, #tpu.memory_space<vmem>>, vector<4x1x16xf32>
    %371 = vector.shape_cast %370 : vector<4x1x16xf32> to vector<4x16xf32>
    %c24_569 = arith.constant 24 : index
    %c160_570 = arith.constant 160 : index
    %372 = vector.load %arg8[%c24_569, %c160_570] : memref<36x256xf32, #tpu.memory_space<vmem>>, vector<4x16xf32>
    tpu.vector_store %arg8[%c24_569, %c160_570], %371 {strides = array<i32>} : memref<36x256xf32, #tpu.memory_space<vmem>>, vector<4x16xf32>,
    %c0_571 = arith.constant 0 : index
    %c12_572 = arith.constant 12 : index
    %c1_573 = arith.constant 1 : index
    %373 = vector.load %arg7[%c0_571, %c12_572, %c1_573] : memref<4x18x18xf32, #tpu.memory_space<vmem>>, vector<4x1x16xf32>
    %374 = vector.shape_cast %373 : vector<4x1x16xf32> to vector<4x16xf32>
    %c28_574 = arith.constant 28 : index
    %c160_575 = arith.constant 160 : index
    %375 = vector.load %arg8[%c28_574, %c160_575] : memref<36x256xf32, #tpu.memory_space<vmem>>, vector<4x16xf32>
    tpu.vector_store %arg8[%c28_574, %c160_575], %374 {strides = array<i32>} : memref<36x256xf32, #tpu.memory_space<vmem>>, vector<4x16xf32>,
    %c0_576 = arith.constant 0 : index
    %c12_577 = arith.constant 12 : index
    %c2_578 = arith.constant 2 : index
    %376 = vector.load %arg7[%c0_576, %c12_577, %c2_578] : memref<4x18x18xf32, #tpu.memory_space<vmem>>, vector<4x1x16xf32>
    %377 = vector.shape_cast %376 : vector<4x1x16xf32> to vector<4x16xf32>
    %c32_579 = arith.constant 32 : index
    %c160_580 = arith.constant 160 : index
    %378 = vector.load %arg8[%c32_579, %c160_580] : memref<36x256xf32, #tpu.memory_space<vmem>>, vector<4x16xf32>
    tpu.vector_store %arg8[%c32_579, %c160_580], %377 {strides = array<i32>} : memref<36x256xf32, #tpu.memory_space<vmem>>, vector<4x16xf32>,
    %c0_581 = arith.constant 0 : index
    %c11_582 = arith.constant 11 : index
    %c0_583 = arith.constant 0 : index
    %379 = vector.load %arg7[%c0_581, %c11_582, %c0_583] : memref<4x18x18xf32, #tpu.memory_space<vmem>>, vector<4x1x16xf32>
    %380 = vector.shape_cast %379 : vector<4x1x16xf32> to vector<4x16xf32>
    %c0_584 = arith.constant 0 : index
    %c176 = arith.constant 176 : index
    %381 = vector.load %arg8[%c0_584, %c176] : memref<36x256xf32, #tpu.memory_space<vmem>>, vector<4x16xf32>
    tpu.vector_store %arg8[%c0_584, %c176], %380 {strides = array<i32>} : memref<36x256xf32, #tpu.memory_space<vmem>>, vector<4x16xf32>,
    %c0_585 = arith.constant 0 : index
    %c11_586 = arith.constant 11 : index
    %c1_587 = arith.constant 1 : index
    %382 = vector.load %arg7[%c0_585, %c11_586, %c1_587] : memref<4x18x18xf32, #tpu.memory_space<vmem>>, vector<4x1x16xf32>
    %383 = vector.shape_cast %382 : vector<4x1x16xf32> to vector<4x16xf32>
    %c4_588 = arith.constant 4 : index
    %c176_589 = arith.constant 176 : index
    %384 = vector.load %arg8[%c4_588, %c176_589] : memref<36x256xf32, #tpu.memory_space<vmem>>, vector<4x16xf32>
    tpu.vector_store %arg8[%c4_588, %c176_589], %383 {strides = array<i32>} : memref<36x256xf32, #tpu.memory_space<vmem>>, vector<4x16xf32>,
    %c0_590 = arith.constant 0 : index
    %c11_591 = arith.constant 11 : index
    %c2_592 = arith.constant 2 : index
    %385 = vector.load %arg7[%c0_590, %c11_591, %c2_592] : memref<4x18x18xf32, #tpu.memory_space<vmem>>, vector<4x1x16xf32>
    %386 = vector.shape_cast %385 : vector<4x1x16xf32> to vector<4x16xf32>
    %c8_593 = arith.constant 8 : index
    %c176_594 = arith.constant 176 : index
    %387 = vector.load %arg8[%c8_593, %c176_594] : memref<36x256xf32, #tpu.memory_space<vmem>>, vector<4x16xf32>
    tpu.vector_store %arg8[%c8_593, %c176_594], %386 {strides = array<i32>} : memref<36x256xf32, #tpu.memory_space<vmem>>, vector<4x16xf32>,
    %c0_595 = arith.constant 0 : index
    %c12_596 = arith.constant 12 : index
    %c0_597 = arith.constant 0 : index
    %388 = vector.load %arg7[%c0_595, %c12_596, %c0_597] : memref<4x18x18xf32, #tpu.memory_space<vmem>>, vector<4x1x16xf32>
    %389 = vector.shape_cast %388 : vector<4x1x16xf32> to vector<4x16xf32>
    %c12_598 = arith.constant 12 : index
    %c176_599 = arith.constant 176 : index
    %390 = vector.load %arg8[%c12_598, %c176_599] : memref<36x256xf32, #tpu.memory_space<vmem>>, vector<4x16xf32>
    tpu.vector_store %arg8[%c12_598, %c176_599], %389 {strides = array<i32>} : memref<36x256xf32, #tpu.memory_space<vmem>>, vector<4x16xf32>,
    %c0_600 = arith.constant 0 : index
    %c12_601 = arith.constant 12 : index
    %c1_602 = arith.constant 1 : index
    %391 = vector.load %arg7[%c0_600, %c12_601, %c1_602] : memref<4x18x18xf32, #tpu.memory_space<vmem>>, vector<4x1x16xf32>
    %392 = vector.shape_cast %391 : vector<4x1x16xf32> to vector<4x16xf32>
    %c16_603 = arith.constant 16 : index
    %c176_604 = arith.constant 176 : index
    %393 = vector.load %arg8[%c16_603, %c176_604] : memref<36x256xf32, #tpu.memory_space<vmem>>, vector<4x16xf32>
    tpu.vector_store %arg8[%c16_603, %c176_604], %392 {strides = array<i32>} : memref<36x256xf32, #tpu.memory_space<vmem>>, vector<4x16xf32>,
    %c0_605 = arith.constant 0 : index
    %c12_606 = arith.constant 12 : index
    %c2_607 = arith.constant 2 : index
    %394 = vector.load %arg7[%c0_605, %c12_606, %c2_607] : memref<4x18x18xf32, #tpu.memory_space<vmem>>, vector<4x1x16xf32>
    %395 = vector.shape_cast %394 : vector<4x1x16xf32> to vector<4x16xf32>
    %c20_608 = arith.constant 20 : index
    %c176_609 = arith.constant 176 : index
    %396 = vector.load %arg8[%c20_608, %c176_609] : memref<36x256xf32, #tpu.memory_space<vmem>>, vector<4x16xf32>
    tpu.vector_store %arg8[%c20_608, %c176_609], %395 {strides = array<i32>} : memref<36x256xf32, #tpu.memory_space<vmem>>, vector<4x16xf32>,
    %c0_610 = arith.constant 0 : index
    %c13_611 = arith.constant 13 : index
    %c0_612 = arith.constant 0 : index
    %397 = vector.load %arg7[%c0_610, %c13_611, %c0_612] : memref<4x18x18xf32, #tpu.memory_space<vmem>>, vector<4x1x16xf32>
    %398 = vector.shape_cast %397 : vector<4x1x16xf32> to vector<4x16xf32>
    %c24_613 = arith.constant 24 : index
    %c176_614 = arith.constant 176 : index
    %399 = vector.load %arg8[%c24_613, %c176_614] : memref<36x256xf32, #tpu.memory_space<vmem>>, vector<4x16xf32>
    tpu.vector_store %arg8[%c24_613, %c176_614], %398 {strides = array<i32>} : memref<36x256xf32, #tpu.memory_space<vmem>>, vector<4x16xf32>,
    %c0_615 = arith.constant 0 : index
    %c13_616 = arith.constant 13 : index
    %c1_617 = arith.constant 1 : index
    %400 = vector.load %arg7[%c0_615, %c13_616, %c1_617] : memref<4x18x18xf32, #tpu.memory_space<vmem>>, vector<4x1x16xf32>
    %401 = vector.shape_cast %400 : vector<4x1x16xf32> to vector<4x16xf32>
    %c28_618 = arith.constant 28 : index
    %c176_619 = arith.constant 176 : index
    %402 = vector.load %arg8[%c28_618, %c176_619] : memref<36x256xf32, #tpu.memory_space<vmem>>, vector<4x16xf32>
    tpu.vector_store %arg8[%c28_618, %c176_619], %401 {strides = array<i32>} : memref<36x256xf32, #tpu.memory_space<vmem>>, vector<4x16xf32>,
    %c0_620 = arith.constant 0 : index
    %c13_621 = arith.constant 13 : index
    %c2_622 = arith.constant 2 : index
    %403 = vector.load %arg7[%c0_620, %c13_621, %c2_622] : memref<4x18x18xf32, #tpu.memory_space<vmem>>, vector<4x1x16xf32>
    %404 = vector.shape_cast %403 : vector<4x1x16xf32> to vector<4x16xf32>
    %c32_623 = arith.constant 32 : index
    %c176_624 = arith.constant 176 : index
    %405 = vector.load %arg8[%c32_623, %c176_624] : memref<36x256xf32, #tpu.memory_space<vmem>>, vector<4x16xf32>
    tpu.vector_store %arg8[%c32_623, %c176_624], %404 {strides = array<i32>} : memref<36x256xf32, #tpu.memory_space<vmem>>, vector<4x16xf32>,
    %c0_625 = arith.constant 0 : index
    %c12_626 = arith.constant 12 : index
    %c0_627 = arith.constant 0 : index
    %406 = vector.load %arg7[%c0_625, %c12_626, %c0_627] : memref<4x18x18xf32, #tpu.memory_space<vmem>>, vector<4x1x16xf32>
    %407 = vector.shape_cast %406 : vector<4x1x16xf32> to vector<4x16xf32>
    %c0_628 = arith.constant 0 : index
    %c192 = arith.constant 192 : index
    %408 = vector.load %arg8[%c0_628, %c192] : memref<36x256xf32, #tpu.memory_space<vmem>>, vector<4x16xf32>
    tpu.vector_store %arg8[%c0_628, %c192], %407 {strides = array<i32>} : memref<36x256xf32, #tpu.memory_space<vmem>>, vector<4x16xf32>,
    %c0_629 = arith.constant 0 : index
    %c12_630 = arith.constant 12 : index
    %c1_631 = arith.constant 1 : index
    %409 = vector.load %arg7[%c0_629, %c12_630, %c1_631] : memref<4x18x18xf32, #tpu.memory_space<vmem>>, vector<4x1x16xf32>
    %410 = vector.shape_cast %409 : vector<4x1x16xf32> to vector<4x16xf32>
    %c4_632 = arith.constant 4 : index
    %c192_633 = arith.constant 192 : index
    %411 = vector.load %arg8[%c4_632, %c192_633] : memref<36x256xf32, #tpu.memory_space<vmem>>, vector<4x16xf32>
    tpu.vector_store %arg8[%c4_632, %c192_633], %410 {strides = array<i32>} : memref<36x256xf32, #tpu.memory_space<vmem>>, vector<4x16xf32>,
    %c0_634 = arith.constant 0 : index
    %c12_635 = arith.constant 12 : index
    %c2_636 = arith.constant 2 : index
    %412 = vector.load %arg7[%c0_634, %c12_635, %c2_636] : memref<4x18x18xf32, #tpu.memory_space<vmem>>, vector<4x1x16xf32>
    %413 = vector.shape_cast %412 : vector<4x1x16xf32> to vector<4x16xf32>
    %c8_637 = arith.constant 8 : index
    %c192_638 = arith.constant 192 : index
    %414 = vector.load %arg8[%c8_637, %c192_638] : memref<36x256xf32, #tpu.memory_space<vmem>>, vector<4x16xf32>
    tpu.vector_store %arg8[%c8_637, %c192_638], %413 {strides = array<i32>} : memref<36x256xf32, #tpu.memory_space<vmem>>, vector<4x16xf32>,
    %c0_639 = arith.constant 0 : index
    %c13_640 = arith.constant 13 : index
    %c0_641 = arith.constant 0 : index
    %415 = vector.load %arg7[%c0_639, %c13_640, %c0_641] : memref<4x18x18xf32, #tpu.memory_space<vmem>>, vector<4x1x16xf32>
    %416 = vector.shape_cast %415 : vector<4x1x16xf32> to vector<4x16xf32>
    %c12_642 = arith.constant 12 : index
    %c192_643 = arith.constant 192 : index
    %417 = vector.load %arg8[%c12_642, %c192_643] : memref<36x256xf32, #tpu.memory_space<vmem>>, vector<4x16xf32>
    tpu.vector_store %arg8[%c12_642, %c192_643], %416 {strides = array<i32>} : memref<36x256xf32, #tpu.memory_space<vmem>>, vector<4x16xf32>,
    %c0_644 = arith.constant 0 : index
    %c13_645 = arith.constant 13 : index
    %c1_646 = arith.constant 1 : index
    %418 = vector.load %arg7[%c0_644, %c13_645, %c1_646] : memref<4x18x18xf32, #tpu.memory_space<vmem>>, vector<4x1x16xf32>
    %419 = vector.shape_cast %418 : vector<4x1x16xf32> to vector<4x16xf32>
    %c16_647 = arith.constant 16 : index
    %c192_648 = arith.constant 192 : index
    %420 = vector.load %arg8[%c16_647, %c192_648] : memref<36x256xf32, #tpu.memory_space<vmem>>, vector<4x16xf32>
    tpu.vector_store %arg8[%c16_647, %c192_648], %419 {strides = array<i32>} : memref<36x256xf32, #tpu.memory_space<vmem>>, vector<4x16xf32>,
    %c0_649 = arith.constant 0 : index
    %c13_650 = arith.constant 13 : index
    %c2_651 = arith.constant 2 : index
    %421 = vector.load %arg7[%c0_649, %c13_650, %c2_651] : memref<4x18x18xf32, #tpu.memory_space<vmem>>, vector<4x1x16xf32>
    %422 = vector.shape_cast %421 : vector<4x1x16xf32> to vector<4x16xf32>
    %c20_652 = arith.constant 20 : index
    %c192_653 = arith.constant 192 : index
    %423 = vector.load %arg8[%c20_652, %c192_653] : memref<36x256xf32, #tpu.memory_space<vmem>>, vector<4x16xf32>
    tpu.vector_store %arg8[%c20_652, %c192_653], %422 {strides = array<i32>} : memref<36x256xf32, #tpu.memory_space<vmem>>, vector<4x16xf32>,
    %c0_654 = arith.constant 0 : index
    %c14_655 = arith.constant 14 : index
    %c0_656 = arith.constant 0 : index
    %424 = vector.load %arg7[%c0_654, %c14_655, %c0_656] : memref<4x18x18xf32, #tpu.memory_space<vmem>>, vector<4x1x16xf32>
    %425 = vector.shape_cast %424 : vector<4x1x16xf32> to vector<4x16xf32>
    %c24_657 = arith.constant 24 : index
    %c192_658 = arith.constant 192 : index
    %426 = vector.load %arg8[%c24_657, %c192_658] : memref<36x256xf32, #tpu.memory_space<vmem>>, vector<4x16xf32>
    tpu.vector_store %arg8[%c24_657, %c192_658], %425 {strides = array<i32>} : memref<36x256xf32, #tpu.memory_space<vmem>>, vector<4x16xf32>,
    %c0_659 = arith.constant 0 : index
    %c14_660 = arith.constant 14 : index
    %c1_661 = arith.constant 1 : index
    %427 = vector.load %arg7[%c0_659, %c14_660, %c1_661] : memref<4x18x18xf32, #tpu.memory_space<vmem>>, vector<4x1x16xf32>
    %428 = vector.shape_cast %427 : vector<4x1x16xf32> to vector<4x16xf32>
    %c28_662 = arith.constant 28 : index
    %c192_663 = arith.constant 192 : index
    %429 = vector.load %arg8[%c28_662, %c192_663] : memref<36x256xf32, #tpu.memory_space<vmem>>, vector<4x16xf32>
    tpu.vector_store %arg8[%c28_662, %c192_663], %428 {strides = array<i32>} : memref<36x256xf32, #tpu.memory_space<vmem>>, vector<4x16xf32>,
    %c0_664 = arith.constant 0 : index
    %c14_665 = arith.constant 14 : index
    %c2_666 = arith.constant 2 : index
    %430 = vector.load %arg7[%c0_664, %c14_665, %c2_666] : memref<4x18x18xf32, #tpu.memory_space<vmem>>, vector<4x1x16xf32>
    %431 = vector.shape_cast %430 : vector<4x1x16xf32> to vector<4x16xf32>
    %c32_667 = arith.constant 32 : index
    %c192_668 = arith.constant 192 : index
    %432 = vector.load %arg8[%c32_667, %c192_668] : memref<36x256xf32, #tpu.memory_space<vmem>>, vector<4x16xf32>
    tpu.vector_store %arg8[%c32_667, %c192_668], %431 {strides = array<i32>} : memref<36x256xf32, #tpu.memory_space<vmem>>, vector<4x16xf32>,
    %c0_669 = arith.constant 0 : index
    %c13_670 = arith.constant 13 : index
    %c0_671 = arith.constant 0 : index
    %433 = vector.load %arg7[%c0_669, %c13_670, %c0_671] : memref<4x18x18xf32, #tpu.memory_space<vmem>>, vector<4x1x16xf32>
    %434 = vector.shape_cast %433 : vector<4x1x16xf32> to vector<4x16xf32>
    %c0_672 = arith.constant 0 : index
    %c208 = arith.constant 208 : index
    %435 = vector.load %arg8[%c0_672, %c208] : memref<36x256xf32, #tpu.memory_space<vmem>>, vector<4x16xf32>
    tpu.vector_store %arg8[%c0_672, %c208], %434 {strides = array<i32>} : memref<36x256xf32, #tpu.memory_space<vmem>>, vector<4x16xf32>,
    %c0_673 = arith.constant 0 : index
    %c13_674 = arith.constant 13 : index
    %c1_675 = arith.constant 1 : index
    %436 = vector.load %arg7[%c0_673, %c13_674, %c1_675] : memref<4x18x18xf32, #tpu.memory_space<vmem>>, vector<4x1x16xf32>
    %437 = vector.shape_cast %436 : vector<4x1x16xf32> to vector<4x16xf32>
    %c4_676 = arith.constant 4 : index
    %c208_677 = arith.constant 208 : index
    %438 = vector.load %arg8[%c4_676, %c208_677] : memref<36x256xf32, #tpu.memory_space<vmem>>, vector<4x16xf32>
    tpu.vector_store %arg8[%c4_676, %c208_677], %437 {strides = array<i32>} : memref<36x256xf32, #tpu.memory_space<vmem>>, vector<4x16xf32>,
    %c0_678 = arith.constant 0 : index
    %c13_679 = arith.constant 13 : index
    %c2_680 = arith.constant 2 : index
    %439 = vector.load %arg7[%c0_678, %c13_679, %c2_680] : memref<4x18x18xf32, #tpu.memory_space<vmem>>, vector<4x1x16xf32>
    %440 = vector.shape_cast %439 : vector<4x1x16xf32> to vector<4x16xf32>
    %c8_681 = arith.constant 8 : index
    %c208_682 = arith.constant 208 : index
    %441 = vector.load %arg8[%c8_681, %c208_682] : memref<36x256xf32, #tpu.memory_space<vmem>>, vector<4x16xf32>
    tpu.vector_store %arg8[%c8_681, %c208_682], %440 {strides = array<i32>} : memref<36x256xf32, #tpu.memory_space<vmem>>, vector<4x16xf32>,
    %c0_683 = arith.constant 0 : index
    %c14_684 = arith.constant 14 : index
    %c0_685 = arith.constant 0 : index
    %442 = vector.load %arg7[%c0_683, %c14_684, %c0_685] : memref<4x18x18xf32, #tpu.memory_space<vmem>>, vector<4x1x16xf32>
    %443 = vector.shape_cast %442 : vector<4x1x16xf32> to vector<4x16xf32>
    %c12_686 = arith.constant 12 : index
    %c208_687 = arith.constant 208 : index
    %444 = vector.load %arg8[%c12_686, %c208_687] : memref<36x256xf32, #tpu.memory_space<vmem>>, vector<4x16xf32>
    tpu.vector_store %arg8[%c12_686, %c208_687], %443 {strides = array<i32>} : memref<36x256xf32, #tpu.memory_space<vmem>>, vector<4x16xf32>,
    %c0_688 = arith.constant 0 : index
    %c14_689 = arith.constant 14 : index
    %c1_690 = arith.constant 1 : index
    %445 = vector.load %arg7[%c0_688, %c14_689, %c1_690] : memref<4x18x18xf32, #tpu.memory_space<vmem>>, vector<4x1x16xf32>
    %446 = vector.shape_cast %445 : vector<4x1x16xf32> to vector<4x16xf32>
    %c16_691 = arith.constant 16 : index
    %c208_692 = arith.constant 208 : index
    %447 = vector.load %arg8[%c16_691, %c208_692] : memref<36x256xf32, #tpu.memory_space<vmem>>, vector<4x16xf32>
    tpu.vector_store %arg8[%c16_691, %c208_692], %446 {strides = array<i32>} : memref<36x256xf32, #tpu.memory_space<vmem>>, vector<4x16xf32>,
    %c0_693 = arith.constant 0 : index
    %c14_694 = arith.constant 14 : index
    %c2_695 = arith.constant 2 : index
    %448 = vector.load %arg7[%c0_693, %c14_694, %c2_695] : memref<4x18x18xf32, #tpu.memory_space<vmem>>, vector<4x1x16xf32>
    %449 = vector.shape_cast %448 : vector<4x1x16xf32> to vector<4x16xf32>
    %c20_696 = arith.constant 20 : index
    %c208_697 = arith.constant 208 : index
    %450 = vector.load %arg8[%c20_696, %c208_697] : memref<36x256xf32, #tpu.memory_space<vmem>>, vector<4x16xf32>
    tpu.vector_store %arg8[%c20_696, %c208_697], %449 {strides = array<i32>} : memref<36x256xf32, #tpu.memory_space<vmem>>, vector<4x16xf32>,
    %c0_698 = arith.constant 0 : index
    %c15_699 = arith.constant 15 : index
    %c0_700 = arith.constant 0 : index
    %451 = vector.load %arg7[%c0_698, %c15_699, %c0_700] : memref<4x18x18xf32, #tpu.memory_space<vmem>>, vector<4x1x16xf32>
    %452 = vector.shape_cast %451 : vector<4x1x16xf32> to vector<4x16xf32>
    %c24_701 = arith.constant 24 : index
    %c208_702 = arith.constant 208 : index
    %453 = vector.load %arg8[%c24_701, %c208_702] : memref<36x256xf32, #tpu.memory_space<vmem>>, vector<4x16xf32>
    tpu.vector_store %arg8[%c24_701, %c208_702], %452 {strides = array<i32>} : memref<36x256xf32, #tpu.memory_space<vmem>>, vector<4x16xf32>,
    %c0_703 = arith.constant 0 : index
    %c15_704 = arith.constant 15 : index
    %c1_705 = arith.constant 1 : index
    %454 = vector.load %arg7[%c0_703, %c15_704, %c1_705] : memref<4x18x18xf32, #tpu.memory_space<vmem>>, vector<4x1x16xf32>
    %455 = vector.shape_cast %454 : vector<4x1x16xf32> to vector<4x16xf32>
    %c28_706 = arith.constant 28 : index
    %c208_707 = arith.constant 208 : index
    %456 = vector.load %arg8[%c28_706, %c208_707] : memref<36x256xf32, #tpu.memory_space<vmem>>, vector<4x16xf32>
    tpu.vector_store %arg8[%c28_706, %c208_707], %455 {strides = array<i32>} : memref<36x256xf32, #tpu.memory_space<vmem>>, vector<4x16xf32>,
    %c0_708 = arith.constant 0 : index
    %c15_709 = arith.constant 15 : index
    %c2_710 = arith.constant 2 : index
    %457 = vector.load %arg7[%c0_708, %c15_709, %c2_710] : memref<4x18x18xf32, #tpu.memory_space<vmem>>, vector<4x1x16xf32>
    %458 = vector.shape_cast %457 : vector<4x1x16xf32> to vector<4x16xf32>
    %c32_711 = arith.constant 32 : index
    %c208_712 = arith.constant 208 : index
    %459 = vector.load %arg8[%c32_711, %c208_712] : memref<36x256xf32, #tpu.memory_space<vmem>>, vector<4x16xf32>
    tpu.vector_store %arg8[%c32_711, %c208_712], %458 {strides = array<i32>} : memref<36x256xf32, #tpu.memory_space<vmem>>, vector<4x16xf32>,
    %c0_713 = arith.constant 0 : index
    %c14_714 = arith.constant 14 : index
    %c0_715 = arith.constant 0 : index
    %460 = vector.load %arg7[%c0_713, %c14_714, %c0_715] : memref<4x18x18xf32, #tpu.memory_space<vmem>>, vector<4x1x16xf32>
    %461 = vector.shape_cast %460 : vector<4x1x16xf32> to vector<4x16xf32>
    %c0_716 = arith.constant 0 : index
    %c224 = arith.constant 224 : index
    %462 = vector.load %arg8[%c0_716, %c224] : memref<36x256xf32, #tpu.memory_space<vmem>>, vector<4x16xf32>
    tpu.vector_store %arg8[%c0_716, %c224], %461 {strides = array<i32>} : memref<36x256xf32, #tpu.memory_space<vmem>>, vector<4x16xf32>,
    %c0_717 = arith.constant 0 : index
    %c14_718 = arith.constant 14 : index
    %c1_719 = arith.constant 1 : index
    %463 = vector.load %arg7[%c0_717, %c14_718, %c1_719] : memref<4x18x18xf32, #tpu.memory_space<vmem>>, vector<4x1x16xf32>
    %464 = vector.shape_cast %463 : vector<4x1x16xf32> to vector<4x16xf32>
    %c4_720 = arith.constant 4 : index
    %c224_721 = arith.constant 224 : index
    %465 = vector.load %arg8[%c4_720, %c224_721] : memref<36x256xf32, #tpu.memory_space<vmem>>, vector<4x16xf32>
    tpu.vector_store %arg8[%c4_720, %c224_721], %464 {strides = array<i32>} : memref<36x256xf32, #tpu.memory_space<vmem>>, vector<4x16xf32>,
    %c0_722 = arith.constant 0 : index
    %c14_723 = arith.constant 14 : index
    %c2_724 = arith.constant 2 : index
    %466 = vector.load %arg7[%c0_722, %c14_723, %c2_724] : memref<4x18x18xf32, #tpu.memory_space<vmem>>, vector<4x1x16xf32>
    %467 = vector.shape_cast %466 : vector<4x1x16xf32> to vector<4x16xf32>
    %c8_725 = arith.constant 8 : index
    %c224_726 = arith.constant 224 : index
    %468 = vector.load %arg8[%c8_725, %c224_726] : memref<36x256xf32, #tpu.memory_space<vmem>>, vector<4x16xf32>
    tpu.vector_store %arg8[%c8_725, %c224_726], %467 {strides = array<i32>} : memref<36x256xf32, #tpu.memory_space<vmem>>, vector<4x16xf32>,
    %c0_727 = arith.constant 0 : index
    %c15_728 = arith.constant 15 : index
    %c0_729 = arith.constant 0 : index
    %469 = vector.load %arg7[%c0_727, %c15_728, %c0_729] : memref<4x18x18xf32, #tpu.memory_space<vmem>>, vector<4x1x16xf32>
    %470 = vector.shape_cast %469 : vector<4x1x16xf32> to vector<4x16xf32>
    %c12_730 = arith.constant 12 : index
    %c224_731 = arith.constant 224 : index
    %471 = vector.load %arg8[%c12_730, %c224_731] : memref<36x256xf32, #tpu.memory_space<vmem>>, vector<4x16xf32>
    tpu.vector_store %arg8[%c12_730, %c224_731], %470 {strides = array<i32>} : memref<36x256xf32, #tpu.memory_space<vmem>>, vector<4x16xf32>,
    %c0_732 = arith.constant 0 : index
    %c15_733 = arith.constant 15 : index
    %c1_734 = arith.constant 1 : index
    %472 = vector.load %arg7[%c0_732, %c15_733, %c1_734] : memref<4x18x18xf32, #tpu.memory_space<vmem>>, vector<4x1x16xf32>
    %473 = vector.shape_cast %472 : vector<4x1x16xf32> to vector<4x16xf32>
    %c16_735 = arith.constant 16 : index
    %c224_736 = arith.constant 224 : index
    %474 = vector.load %arg8[%c16_735, %c224_736] : memref<36x256xf32, #tpu.memory_space<vmem>>, vector<4x16xf32>
    tpu.vector_store %arg8[%c16_735, %c224_736], %473 {strides = array<i32>} : memref<36x256xf32, #tpu.memory_space<vmem>>, vector<4x16xf32>,
    %c0_737 = arith.constant 0 : index
    %c15_738 = arith.constant 15 : index
    %c2_739 = arith.constant 2 : index
    %475 = vector.load %arg7[%c0_737, %c15_738, %c2_739] : memref<4x18x18xf32, #tpu.memory_space<vmem>>, vector<4x1x16xf32>
    %476 = vector.shape_cast %475 : vector<4x1x16xf32> to vector<4x16xf32>
    %c20_740 = arith.constant 20 : index
    %c224_741 = arith.constant 224 : index
    %477 = vector.load %arg8[%c20_740, %c224_741] : memref<36x256xf32, #tpu.memory_space<vmem>>, vector<4x16xf32>
    tpu.vector_store %arg8[%c20_740, %c224_741], %476 {strides = array<i32>} : memref<36x256xf32, #tpu.memory_space<vmem>>, vector<4x16xf32>,
    %c0_742 = arith.constant 0 : index
    %c16_743 = arith.constant 16 : index
    %c0_744 = arith.constant 0 : index
    %478 = vector.load %arg7[%c0_742, %c16_743, %c0_744] : memref<4x18x18xf32, #tpu.memory_space<vmem>>, vector<4x1x16xf32>
    %479 = vector.shape_cast %478 : vector<4x1x16xf32> to vector<4x16xf32>
    %c24_745 = arith.constant 24 : index
    %c224_746 = arith.constant 224 : index
    %480 = vector.load %arg8[%c24_745, %c224_746] : memref<36x256xf32, #tpu.memory_space<vmem>>, vector<4x16xf32>
    tpu.vector_store %arg8[%c24_745, %c224_746], %479 {strides = array<i32>} : memref<36x256xf32, #tpu.memory_space<vmem>>, vector<4x16xf32>,
    %c0_747 = arith.constant 0 : index
    %c16_748 = arith.constant 16 : index
    %c1_749 = arith.constant 1 : index
    %481 = vector.load %arg7[%c0_747, %c16_748, %c1_749] : memref<4x18x18xf32, #tpu.memory_space<vmem>>, vector<4x1x16xf32>
    %482 = vector.shape_cast %481 : vector<4x1x16xf32> to vector<4x16xf32>
    %c28_750 = arith.constant 28 : index
    %c224_751 = arith.constant 224 : index
    %483 = vector.load %arg8[%c28_750, %c224_751] : memref<36x256xf32, #tpu.memory_space<vmem>>, vector<4x16xf32>
    tpu.vector_store %arg8[%c28_750, %c224_751], %482 {strides = array<i32>} : memref<36x256xf32, #tpu.memory_space<vmem>>, vector<4x16xf32>,
    %c0_752 = arith.constant 0 : index
    %c16_753 = arith.constant 16 : index
    %c2_754 = arith.constant 2 : index
    %484 = vector.load %arg7[%c0_752, %c16_753, %c2_754] : memref<4x18x18xf32, #tpu.memory_space<vmem>>, vector<4x1x16xf32>
    %485 = vector.shape_cast %484 : vector<4x1x16xf32> to vector<4x16xf32>
    %c32_755 = arith.constant 32 : index
    %c224_756 = arith.constant 224 : index
    %486 = vector.load %arg8[%c32_755, %c224_756] : memref<36x256xf32, #tpu.memory_space<vmem>>, vector<4x16xf32>
    tpu.vector_store %arg8[%c32_755, %c224_756], %485 {strides = array<i32>} : memref<36x256xf32, #tpu.memory_space<vmem>>, vector<4x16xf32>,
    %c0_757 = arith.constant 0 : index
    %c15_758 = arith.constant 15 : index
    %c0_759 = arith.constant 0 : index
    %487 = vector.load %arg7[%c0_757, %c15_758, %c0_759] : memref<4x18x18xf32, #tpu.memory_space<vmem>>, vector<4x1x16xf32>
    %488 = vector.shape_cast %487 : vector<4x1x16xf32> to vector<4x16xf32>
    %c0_760 = arith.constant 0 : index
    %c240 = arith.constant 240 : index
    %489 = vector.load %arg8[%c0_760, %c240] : memref<36x256xf32, #tpu.memory_space<vmem>>, vector<4x16xf32>
    tpu.vector_store %arg8[%c0_760, %c240], %488 {strides = array<i32>} : memref<36x256xf32, #tpu.memory_space<vmem>>, vector<4x16xf32>,
    %c0_761 = arith.constant 0 : index
    %c15_762 = arith.constant 15 : index
    %c1_763 = arith.constant 1 : index
    %490 = vector.load %arg7[%c0_761, %c15_762, %c1_763] : memref<4x18x18xf32, #tpu.memory_space<vmem>>, vector<4x1x16xf32>
    %491 = vector.shape_cast %490 : vector<4x1x16xf32> to vector<4x16xf32>
    %c4_764 = arith.constant 4 : index
    %c240_765 = arith.constant 240 : index
    %492 = vector.load %arg8[%c4_764, %c240_765] : memref<36x256xf32, #tpu.memory_space<vmem>>, vector<4x16xf32>
    tpu.vector_store %arg8[%c4_764, %c240_765], %491 {strides = array<i32>} : memref<36x256xf32, #tpu.memory_space<vmem>>, vector<4x16xf32>,
    %c0_766 = arith.constant 0 : index
    %c15_767 = arith.constant 15 : index
    %c2_768 = arith.constant 2 : index
    %493 = vector.load %arg7[%c0_766, %c15_767, %c2_768] : memref<4x18x18xf32, #tpu.memory_space<vmem>>, vector<4x1x16xf32>
    %494 = vector.shape_cast %493 : vector<4x1x16xf32> to vector<4x16xf32>
    %c8_769 = arith.constant 8 : index
    %c240_770 = arith.constant 240 : index
    %495 = vector.load %arg8[%c8_769, %c240_770] : memref<36x256xf32, #tpu.memory_space<vmem>>, vector<4x16xf32>
    tpu.vector_store %arg8[%c8_769, %c240_770], %494 {strides = array<i32>} : memref<36x256xf32, #tpu.memory_space<vmem>>, vector<4x16xf32>,
    %c0_771 = arith.constant 0 : index
    %c16_772 = arith.constant 16 : index
    %c0_773 = arith.constant 0 : index
    %496 = vector.load %arg7[%c0_771, %c16_772, %c0_773] : memref<4x18x18xf32, #tpu.memory_space<vmem>>, vector<4x1x16xf32>
    %497 = vector.shape_cast %496 : vector<4x1x16xf32> to vector<4x16xf32>
    %c12_774 = arith.constant 12 : index
    %c240_775 = arith.constant 240 : index
    %498 = vector.load %arg8[%c12_774, %c240_775] : memref<36x256xf32, #tpu.memory_space<vmem>>, vector<4x16xf32>
    tpu.vector_store %arg8[%c12_774, %c240_775], %497 {strides = array<i32>} : memref<36x256xf32, #tpu.memory_space<vmem>>, vector<4x16xf32>,
    %c0_776 = arith.constant 0 : index
    %c16_777 = arith.constant 16 : index
    %c1_778 = arith.constant 1 : index
    %499 = vector.load %arg7[%c0_776, %c16_777, %c1_778] : memref<4x18x18xf32, #tpu.memory_space<vmem>>, vector<4x1x16xf32>
    %500 = vector.shape_cast %499 : vector<4x1x16xf32> to vector<4x16xf32>
    %c16_779 = arith.constant 16 : index
    %c240_780 = arith.constant 240 : index
    %501 = vector.load %arg8[%c16_779, %c240_780] : memref<36x256xf32, #tpu.memory_space<vmem>>, vector<4x16xf32>
    tpu.vector_store %arg8[%c16_779, %c240_780], %500 {strides = array<i32>} : memref<36x256xf32, #tpu.memory_space<vmem>>, vector<4x16xf32>,
    %c0_781 = arith.constant 0 : index
    %c16_782 = arith.constant 16 : index
    %c2_783 = arith.constant 2 : index
    %502 = vector.load %arg7[%c0_781, %c16_782, %c2_783] : memref<4x18x18xf32, #tpu.memory_space<vmem>>, vector<4x1x16xf32>
    %503 = vector.shape_cast %502 : vector<4x1x16xf32> to vector<4x16xf32>
    %c20_784 = arith.constant 20 : index
    %c240_785 = arith.constant 240 : index
    %504 = vector.load %arg8[%c20_784, %c240_785] : memref<36x256xf32, #tpu.memory_space<vmem>>, vector<4x16xf32>
    tpu.vector_store %arg8[%c20_784, %c240_785], %503 {strides = array<i32>} : memref<36x256xf32, #tpu.memory_space<vmem>>, vector<4x16xf32>,
    %c0_786 = arith.constant 0 : index
    %c17 = arith.constant 17 : index
    %c0_787 = arith.constant 0 : index
    %505 = vector.load %arg7[%c0_786, %c17, %c0_787] : memref<4x18x18xf32, #tpu.memory_space<vmem>>, vector<4x1x16xf32>
    %506 = vector.shape_cast %505 : vector<4x1x16xf32> to vector<4x16xf32>
    %c24_788 = arith.constant 24 : index
    %c240_789 = arith.constant 240 : index
    %507 = vector.load %arg8[%c24_788, %c240_789] : memref<36x256xf32, #tpu.memory_space<vmem>>, vector<4x16xf32>
    tpu.vector_store %arg8[%c24_788, %c240_789], %506 {strides = array<i32>} : memref<36x256xf32, #tpu.memory_space<vmem>>, vector<4x16xf32>,
    %c0_790 = arith.constant 0 : index
    %c17_791 = arith.constant 17 : index
    %c1_792 = arith.constant 1 : index
    %508 = vector.load %arg7[%c0_790, %c17_791, %c1_792] : memref<4x18x18xf32, #tpu.memory_space<vmem>>, vector<4x1x16xf32>
    %509 = vector.shape_cast %508 : vector<4x1x16xf32> to vector<4x16xf32>
    %c28_793 = arith.constant 28 : index
    %c240_794 = arith.constant 240 : index
    %510 = vector.load %arg8[%c28_793, %c240_794] : memref<36x256xf32, #tpu.memory_space<vmem>>, vector<4x16xf32>
    tpu.vector_store %arg8[%c28_793, %c240_794], %509 {strides = array<i32>} : memref<36x256xf32, #tpu.memory_space<vmem>>, vector<4x16xf32>,
    %c0_795 = arith.constant 0 : index
    %c17_796 = arith.constant 17 : index
    %c2_797 = arith.constant 2 : index
    %511 = vector.load %arg7[%c0_795, %c17_796, %c2_797] : memref<4x18x18xf32, #tpu.memory_space<vmem>>, vector<4x1x16xf32>
    %512 = vector.shape_cast %511 : vector<4x1x16xf32> to vector<4x16xf32>
    %c32_798 = arith.constant 32 : index
    %c240_799 = arith.constant 240 : index
    %513 = vector.load %arg8[%c32_798, %c240_799] : memref<36x256xf32, #tpu.memory_space<vmem>>, vector<4x16xf32>
    tpu.vector_store %arg8[%c32_798, %c240_799], %512 {strides = array<i32>} : memref<36x256xf32, #tpu.memory_space<vmem>>, vector<4x16xf32>,
    %c0_800 = arith.constant 0 : index
    %c0_801 = arith.constant 0 : index
    %514 = vector.load %arg3[%c0_800, %c0_801] : memref<8x36xf32, #tpu.memory_space<vmem>>, vector<8x36xf32>
    %c0_802 = arith.constant 0 : index
    %c0_803 = arith.constant 0 : index
    %515 = vector.load %arg8[%c0_802, %c0_803] : memref<36x256xf32, #tpu.memory_space<vmem>>, vector<36x256xf32>
    %cst_804 = arith.constant dense<0.000000e+00> : vector<8x256xf32>
    %516 = tpu.matmul %514, %515, %cst_804 {dimension_numbers = #tpu.dot_dimension_numbers<[1], [0], [0], [1], [0, 0, 1, 1], [], []>} : vector<8x36xf32>, vector<36x256xf32>, vector<8x256xf32> -> vector<8x256xf32>
    %cst_805 = arith.constant dense<0.000000e+00> : vector<8xf32>
    %517 = vector.multi_reduction <add>, %516, %cst_805 [1] : vector<8x256xf32> to vector<8xf32>
    %518 = vector.shape_cast %517 : vector<8xf32> to vector<8x1xf32>
    %c0_806 = arith.constant 0 : index
    %c0_807 = arith.constant 0 : index
    %c0_808 = arith.constant 0 : index
    %519 = vector.load %arg5[%c0_806, %c0_807, %c0_808] : memref<1x8x1xf32, #tpu.memory_space<vmem>>, vector<1x8x1xf32>
    %520 = vector.shape_cast %519 : vector<1x8x1xf32> to vector<8x1xf32>
    %521 = vector.shape_cast %518 : vector<8x1xf32> to vector<1x8x1xf32>
    tpu.vector_store %arg5[%c0_806, %c0_807, %c0_808], %521 {strides = array<i32>} : memref<1x8x1xf32, #tpu.memory_space<vmem>>, vector<1x8x1xf32>,
    %522 = arith.mulf %516, %516 : vector<8x256xf32>
    %cst_809 = arith.constant dense<0.000000e+00> : vector<8xf32>
    %523 = vector.multi_reduction <add>, %522, %cst_809 [1] : vector<8x256xf32> to vector<8xf32>
    %524 = vector.shape_cast %523 : vector<8xf32> to vector<8x1xf32>
    %c0_810 = arith.constant 0 : index
    %c0_811 = arith.constant 0 : index
    %c0_812 = arith.constant 0 : index
    %525 = vector.load %arg6[%c0_810, %c0_811, %c0_812] : memref<1x8x1xf32, #tpu.memory_space<vmem>>, vector<1x8x1xf32>
    %526 = vector.shape_cast %525 : vector<1x8x1xf32> to vector<8x1xf32>
    %527 = vector.shape_cast %524 : vector<8x1xf32> to vector<1x8x1xf32>
    tpu.vector_store %arg6[%c0_810, %c0_811, %c0_812], %527 {strides = array<i32>} : memref<1x8x1xf32, #tpu.memory_space<vmem>>, vector<1x8x1xf32>,
    %c0_813 = arith.constant 0 : index
    %c0_814 = arith.constant 0 : index
    %c0_815 = arith.constant 0 : index
    %528 = vector.load %arg4[%c0_813, %c0_814, %c0_815] : memref<1x8x256xf32, #tpu.memory_space<vmem>>, vector<1x8x256xf32>
    %529 = vector.shape_cast %528 : vector<1x8x256xf32> to vector<8x256xf32>
    %530 = vector.shape_cast %516 : vector<8x256xf32> to vector<1x8x256xf32>
    tpu.vector_store %arg4[%c0_813, %c0_814, %c0_815], %530 {strides = array<i32>} : memref<1x8x256xf32, #tpu.memory_space<vmem>>, vector<1x8x256xf32>,
    return
  }
  func.func @transform_0(%arg0: i32, %arg1: i32) -> (i32, i32, i32, i32) {
    %c0_i32 = arith.constant 0 : i32
    %c0_i32_0 = arith.constant 0 : i32
    %c0_i32_1 = arith.constant 0 : i32
    %c0_i32_2 = arith.constant 0 : i32
    return %arg0, %c0_i32, %c0_i32_0, %c0_i32_1 : i32, i32, i32, i32
  }
  func.func @transform_1(%arg0: i32, %arg1: i32) -> (i32, i32) {
    %c0_i32 = arith.constant 0 : i32
    %c0_i32_0 = arith.constant 0 : i32
    return %arg1, %c0_i32 : i32, i32
  }
  func.func @transform_2(%arg0: i32, %arg1: i32) -> (i32, i32, i32) {
    %c0_i32 = arith.constant 0 : i32
    %c0_i32_0 = arith.constant 0 : i32
    return %arg0, %arg1, %c0_i32 : i32, i32, i32
  }
  func.func @transform_3(%arg0: i32, %arg1: i32) -> (i32, i32, i32) {
    %c0_i32 = arith.constant 0 : i32
    %c0_i32_0 = arith.constant 0 : i32
    return %arg0, %arg1, %c0_i32 : i32, i32, i32
  }
  func.func @transform_4(%arg0: i32, %arg1: i32) -> (i32, i32, i32) {
    %c0_i32 = arith.constant 0 : i32
    %c0_i32_0 = arith.constant 0 : i32
    return %arg0, %arg1, %c0_i32 : i32, i32, i32
  }
}

module attributes {stable_mosaic.version = 11 : i64} {
  func.func @_scale_shift_act_kernel(%arg0: i32, %arg1: i32, %arg2: memref<1x8x256xf32, #tpu.memory_space<vmem>>, %arg3: memref<8x1xf32, #tpu.memory_space<vmem>>, %arg4: memref<8x1xf32, #tpu.memory_space<vmem>>, %arg5: memref<1x8x256xf32, #tpu.memory_space<vmem>>) attributes {dimension_semantics = [#tpu.dimension_semantics<parallel>, #tpu.dimension_semantics<parallel>], iteration_bounds = array<i64: 2, 1>, scalar_prefetch = 0 : i64, scratch_operands = 0 : i64, tpu.core_type = #tpu.core_type<tc>, window_params = [{transform_indices = @transform_0, window_bounds = array<i64: 1, 8, 256>}, {transform_indices = @transform_1, window_bounds = array<i64: 8, 1>}, {transform_indices = @transform_2, window_bounds = array<i64: 8, 1>}, {transform_indices = @transform_3, window_bounds = array<i64: 1, 8, 256>}]} {
    %c0 = arith.constant 0 : index
    %c0_0 = arith.constant 0 : index
    %c0_1 = arith.constant 0 : index
    %0 = vector.load %arg2[%c0, %c0_0, %c0_1] : memref<1x8x256xf32, #tpu.memory_space<vmem>>, vector<1x8x256xf32>
    %1 = vector.shape_cast %0 : vector<1x8x256xf32> to vector<8x256xf32>
    %c0_2 = arith.constant 0 : index
    %c0_3 = arith.constant 0 : index
    %2 = vector.load %arg3[%c0_2, %c0_3] : memref<8x1xf32, #tpu.memory_space<vmem>>, vector<8x1xf32>
    %3 = vector.broadcast %2 : vector<8x1xf32> to vector<8x256xf32>
    %4 = arith.mulf %1, %3 : vector<8x256xf32>
    %c0_4 = arith.constant 0 : index
    %c0_5 = arith.constant 0 : index
    %5 = vector.load %arg4[%c0_4, %c0_5] : memref<8x1xf32, #tpu.memory_space<vmem>>, vector<8x1xf32>
    %6 = vector.broadcast %5 : vector<8x1xf32> to vector<8x256xf32>
    %7 = arith.addf %4, %6 : vector<8x256xf32>
    %cst = arith.constant 0.000000e+00 : f32
    %8 = vector.broadcast %cst : f32 to vector<8x256xf32>
    %9 = arith.maximumf %7, %8 : vector<8x256xf32>
    %c0_6 = arith.constant 0 : index
    %c0_7 = arith.constant 0 : index
    %c0_8 = arith.constant 0 : index
    %10 = vector.load %arg5[%c0_6, %c0_7, %c0_8] : memref<1x8x256xf32, #tpu.memory_space<vmem>>, vector<1x8x256xf32>
    %11 = vector.shape_cast %10 : vector<1x8x256xf32> to vector<8x256xf32>
    %12 = vector.shape_cast %9 : vector<8x256xf32> to vector<1x8x256xf32>
    tpu.vector_store %arg5[%c0_6, %c0_7, %c0_8], %12 {strides = array<i32>} : memref<1x8x256xf32, #tpu.memory_space<vmem>>, vector<1x8x256xf32>,
    return
  }
  func.func @transform_0(%arg0: i32, %arg1: i32) -> (i32, i32, i32) {
    %c0_i32 = arith.constant 0 : i32
    %c0_i32_0 = arith.constant 0 : i32
    return %arg0, %arg1, %c0_i32 : i32, i32, i32
  }
  func.func @transform_1(%arg0: i32, %arg1: i32) -> (i32, i32) {
    %c0_i32 = arith.constant 0 : i32
    %c0_i32_0 = arith.constant 0 : i32
    return %arg1, %c0_i32 : i32, i32
  }
  func.func @transform_2(%arg0: i32, %arg1: i32) -> (i32, i32) {
    %c0_i32 = arith.constant 0 : i32
    %c0_i32_0 = arith.constant 0 : i32
    return %arg1, %c0_i32 : i32, i32
  }
  func.func @transform_3(%arg0: i32, %arg1: i32) -> (i32, i32, i32) {
    %c0_i32 = arith.constant 0 : i32
    %c0_i32_0 = arith.constant 0 : i32
    return %arg0, %arg1, %c0_i32 : i32, i32, i32
  }
}

</mosaic_0001>

<bundles_post_ra>
// kernel: conv_norm_act.3
= control target key start
LH: loop header
LB: loop body
LE: loop exit
PB: predicated region body
PF: predicated region fallthrough
CT: control target
= control target key end

     0   :  { %s472_s12 = smov 0   ;;  %s474_s13 = smov 0   ;;  %s511_s0 = inlined_call_operand.vmem [shape: f32[2,8,256], index: 0, kind: input, shape index: {}, may-alias: {0,3}]   ;;  %s512_s1 = inlined_call_operand.vmem [shape: f32[8,1], index: 1, kind: input, shape index: {}]   ;;  %s513_s2 = inlined_call_operand.vmem [shape: f32[8,1], index: 2, kind: input, shape index: {}]   ;;  %s514_s3 = inlined_call_operand.vmem [shape: f32[2,8,256], index: 3, kind: output, shape index: {}, may-alias: {0,3}]  }
   0x1   :  { %s476_s14 = smov 0  }
   0x2 LB: > { %s25_s15 = sadd.s32 1, %s445_s13  ;;  %p392_p0 = scmp.ge.s32.totalorder %s449_s14, 1  ;;  %s449_s14 = sphi %s476_s14, %s13_s14   ;;  %s445_s13 = sphi %s474_s13, %s516_s13   ;;  %s441_s12 = sphi %s472_s12, %s515_s12  }
   0x3   : > { %p27_p1 = scmp.ge.s32.totalorder %s25_s15, 2  ;;  %p175_p2 = scmp.lt.s32.totalorder %s449_s14, 3 }
   0x5   : > { %s518_s15 = smov (%p27_p1, %s25_s15), 0  ;;  %p176_p3 = pnand %p392_p0, %p175_p2 }
   0x6   : > { %v243_v0 = vld [vmem:[%s512_s1] sm:$0xff] (!%p176_p3)  ;;  %v451_v1 = vmov (!%p176_p3), 0   ;;  %p215_p4 = scmp.lt.s32.totalorder (!%p176_p3), %s441_s12, 1 }
   0x7   : > { %179 = sbr.rel (%p176_p3) target bundleno = 145 (0x91), region = 32  ;;  %426 = vset.pattern.permute.xlu0 (!%p176_p3), %v451_v1  ;;  %v251_v2 = vld [vmem:[%s513_s2] sm:$0xff] (!%p176_p3) }
   0x8   : > { %246 = vperm.xlu0 (!%p176_p3), %426, %v243_v0  }
   0xc   : > { %254 = vperm.xlu0 (!%p176_p3), %426, %v251_v2  }
   0xe   : > { %s520_s12 = smov (!%p215_p4, %s441_s12), 1 }
   0xf   : > { %s399_s20 = sshll.u32 %s520_s12, 4 }
  0x10   : > { %s223_s23 = scalar_lea.vmem %s511_s0, %s399_s20  ;;  %s240_s26 = scalar_lea.vmem %s514_s3, %s399_s20 }
  0x11   : > { %v241_v4 = vld [vmem:[%s223_s23] sm:$0xff]  ;;  %v242_v5 = vld [vmem:[%s223_s23 + $0x8] sm:$0xff] }
  0x87   : > { %v247_v3 = vpop.permute.xlu0 %246 }
  0x88   : > { %v249_v6 = vmul.f32 %v247_v3, %v241_v4  ;;  %v250_v7 = vmul.f32 %v247_v3, %v242_v5 }
  0x8b   : > { %v255_v8 = vpop.permute.xlu0 %254 }
  0x8c   : > { %v257_v9 = vadd.f32 %v255_v8, %v249_v6  ;;  %v258_v10 = vadd.f32 %v255_v8, %v250_v7 }
  0x8e   : > { %v259_v11 = vmax.f32 %v257_v9, 0.0  ;;  %v260_v12 = vmax.f32 %v258_v10, 0.0 }
  0x90   : > { %261 = vst [vmem:[%s240_s26] sm:$0xff] %v259_v11  ;;  %262 = vst [vmem:[%s240_s26 + $0x8] sm:$0xff] %v260_v12 }
  0x91 PF: > { %s13_s14 = sadd.s32 1, %s449_s14   ;;  %s515_s12 = smov %s445_s13 }
  0x92   : > { %p10_p5 = scmp.ge.s32.totalorder %s13_s14, 4   ;;  %s516_s13 = smov %s518_s15 }
  0x94   :  { %12 = sbr.rel (!%p10_p5) target bundleno = 2 (0x2), region = 68 }

// kernel: conv_norm_act.2
= control target key start
LH: loop header
LB: loop body
LE: loop exit
PB: predicated region body
PF: predicated region fallthrough
CT: control target
= control target key end

     0   :  { %10 = vsyncpa [#allocation5], 0  ;;  %s5735_s0 = inlined_call_operand.hbm [shape: f32[2,4,16,16], index: 0, kind: input, shape index: {}]   ;;  %s5736_s1 = inlined_call_operand.vmem [shape: f32[8,36], index: 1, kind: input, shape index: {}]   ;;  %s5737_s2 = inlined_call_operand.vmem [shape: f32[2,8,256], index: 2, kind: output, shape index: {0}]   ;;  %s5738_s3 = inlined_call_operand.vmem [shape: f32[2,8,1], index: 3, kind: output, shape index: {1}]   ;;  %s5739_s4 = inlined_call_operand.vmem [shape: f32[2,8,1], index: 4, kind: output, shape index: {2}]  }
   0x1   :  { %12 = vsyncpa [#allocation5 + $0x1], 0  ;;  %s3903_s15 = smov 0   ;;  %s3905_s16 = smov 0  }
   0x2   :  { %s3907_s17 = smov 0   ;;  %s3909_s18 = smov 0  }
   0x3   :  { %s3911_s19 = smov 0   ;;  %s3913_s20 = smov 0  }
   0x4 LB: > { %s3657_s21 = sadd.s32 4294967295, %s3848_s20   ;;  %s30_s22 = sadd.s32 1, %s3844_s19  ;;  %s3848_s20 = sphi %s3913_s20, %s18_s20   ;;  %s3844_s19 = sphi %s3911_s19, %s5753_s19   ;;  %s3840_s18 = sphi %s3909_s18, %s5752_s18   ;;  %s3836_s17 = sphi %s3907_s17, %s5751_s17   ;;  %s3832_s16 = sphi %s3905_s16, %s5750_s16   ;;  %s3828_s15 = sphi %s3903_s15, %s5749_s15  }
   0x5   : > { %p32_p0 = scmp.ge.s32.totalorder %s30_s22, 2  ;;  %s37_s23 = sadd.s32 1, %s3836_s17 }
   0x6   : > { %p44_p1 = scmp.ne.s32.totalorder %s3836_s17, %s3832_s16  ;;  %p45_p2 = scmp.eq.s32.totalorder %s3848_s20, 0 }
   0x7   : > { %s5755_s22 = smov (%p32_p0, %s30_s22), 0  ;;  %p50_p4 = scmp.ne.s32.totalorder %s3832_s16, %s3828_s15 }
   0x8   : > { %p3939_p3 = por %p45_p2, %p44_p1  ;;  %s34_s25 = ssub.s32 %s3844_s19, %s5755_s22 }
   0x9   : > { %p51_p5 = scmp.eq.s32.totalorder %s3657_s21, 0  ;;  %p35_p6 = scmp.eq.s32.totalorder %s34_s25, 0 }
   0xa   : > { %p3692_p8 = scmp.lt.s32.totalorder %s3848_s20, 2  ;;  %s191_s28 = sand.u32 1, %s3836_s17  }
   0xb   : > { %p3946_p7 = por %p51_p5, %p50_p4  ;;  %s3676_s29 = sshll.u32 %s3844_s19, 10 }
   0xc   : > { %s3952_s27 = scalar_select %p35_p6, %s3836_s17, %s37_s23  }
   0xd   : > { %s3662_s30 = sshll.u32 %s191_s28, 6  ;;  %s3959_s7 = scalar_lea.hbm %s5735_s0, %s3676_s29 }
   0xe   : > { %s195_s8 = scalar_lea.vmem [#allocation4], %s3662_s30  ;;  %p3963_p9 = pnand %p3692_p8, %p3939_p3 }
   0xf   : > { %s202_s9 = sshll.u32 %s195_s8, 4  ;;  %s3969_s11 = scalar_lea.sflag [#allocation5], %s191_s28  ;;  %s3967_s9 = int_to_ptr.vmem [resolvable:$true] %s202_s9 }
  0x10   : > { %s3768_s12 = scalar_lea.hbm %s3959_s7, 1024  ;;  %p3770_p11 = pneg %p3963_p9 }
  0x11   : > { %p3769_p10 = scmp.ne.s32.totalorder %s3959_s7, %s3768_s12  ;;  %s3773_s15 = scalar_lea.hbm %s5735_s0, 2048 }
  0x12   : > { %p3774_p0 = scmp.lt.u32.totalorder %s3959_s7, %s5735_s0  ;;  %p3775_p1 = scmp.lt.u32.totalorder %s3773_s15, %s3768_s12 }
  0x13   : > { %p3771_p12 = pnand %p3770_p11, %p3769_p10  ;;  %p3777_p3 = scmp.lt.u32.totalorder %s3768_s12, %s3959_s7 }
  0x14   : > { %p3776_p2 = por %p3775_p1, %p3774_p0 }
  0x15   : > { %p3772_p13 = pneg %p3771_p12 }
  0x16   : > { %p3778_p4 = por %p3777_p3, %p3776_p2 }
  0x18   : > { %p3779_p5 = pnand %p3778_p4, %p3772_p13 }
  0x1a   : > { %3782 = shalt.err (!%p3779_p5)
}
  0x1b   : > { %s3783_s24 = scalar_lea.vmem %s3967_s9, 1024  ;;  %s3850_s25 = smov [#allocation4]  }
  0x1c   : > { %p3784_p6 = scmp.ne.s32.totalorder %s3967_s9, %s3783_s24  ;;  %s3788_s28 = sshll.u32 %s3850_s25, 4  ;;  %s3789_s28 = int_to_ptr.vmem [resolvable:$false] %s3788_s28 }
  0x1d   : > { %s3790_s29 = scalar_lea.vmem %s3789_s28, 2048  ;;  %p3791_p12 = scmp.lt.s32.totalorder %s3967_s9, %s3789_s28 }
  0x1e   : > { %p3786_p8 = pnand %p3784_p6, %p3770_p11  ;;  %p3792_p0 = scmp.lt.s32.totalorder %s3790_s29, %s3783_s24 }
  0x20   : > { %p3787_p10 = pneg %p3786_p8  ;;  %p3793_p1 = por %p3792_p0, %p3791_p12 }
  0x22   : > { %p3794_p2 = pnand %p3793_p1, %p3787_p10 }
  0x24   : > { %3797 = shalt.err (!%p3794_p2)
}
  0x25   : > { %s3851_s30 = smov 128   ;;  %s3852_s5 = smov 8  }
  0x26   : > { %3691 = dma.hbm_to_vmem [thread:$0]  (!%p3963_p9), %s3959_s7, 1024, %s3967_s9, %s3969_s11, %s3851_s30, %s3851_s30, %s3852_s5  }
  0x27   : > { %p3665_p11 = scmp.ge.s32.totalorder %s3848_s20, 1  ;;  %p210_p13 = scmp.lt.s32.totalorder %s3848_s20, 3 }
  0x29   : > { %p211_p3 = pnand %p3665_p11, %p210_p13 }
  0x2a   : > { %s216_s6 = sand.u32 (!%p211_p3), 1, %s3832_s16  }
  0x2b   : > { %214 = sbr.rel (%p211_p3) target bundleno = 998 (0x3e6), region = 28  ;;  %s3666_s8 = sshll.u32 (!%p211_p3), %s216_s6, 6 }
  0x2c   : > { %s217_s12 = scalar_lea.sflag (!%p211_p3), [#allocation5], %s216_s6  ;;  %s4000_s13 = scalar_lea.vmem (!%p211_p3), [#allocation4], %s3666_s8 }
  0x32   : > { %3823 = dma.done.wait (%p3946_p7), %s217_s12, 1024  }
  0x33   : > { %3825 = vsyncadd (%p3946_p7), %s217_s12, 4294966272  ;;  %vm294_vm0 = vcmask 146432   ;;  %v3853_v0 = vmov 0.0   ;;  %v479_v1 = vld [vmem:[%s4000_s13 + $0x27] sm:$0x1]  ;;  %s3854_s26 = smov 1  }
  0x34   : > { %303 = vst.msk [vmem:[#allocation2 + $0x38] sm:$0xff] %vm294_vm0, %v3853_v0  ;;  %295 = vst.msk [vmem:[#allocation2] sm:$0xff] %vm294_vm0, %v3853_v0  ;;  %3445 = vmatprep.mubr.f32.mxu0 %v3853_v0  ;;  %v477_v2 = vld [vmem:[%s4000_s13 + $0x7] sm:$0x1]  ;;  %489 = vrot.lane.b32.xlu1 %v479_v1, %s3854_s26  ;;  %v501_v3 = vld [vmem:[%s4000_s13 + $0x8] sm:$0x1] }
  0x35   : > { %296 = vst.msk [vmem:[#allocation2 + $0x8] sm:$0xff] %vm294_vm0, %v3853_v0  ;;  %299 = vst.msk [vmem:[#allocation2 + $0x18] sm:$0xff] %vm294_vm0, %v3853_v0  ;;  %485 = vrot.lane.b32.xlu0 %v477_v2, %s3854_s26  ;;  %v478_v4 = vld [vmem:[%s4000_s13 + $0x17] sm:$0x1]  ;;  %v525_v5 = vld [vmem:[%s4000_s13 + $0x9] sm:$0x1] }
  0x36   : > { %300 = vst.msk [vmem:[#allocation2 + $0x20] sm:$0xff] %vm294_vm0, %v3853_v0  ;;  %302 = vst.msk [vmem:[#allocation2 + $0x30] sm:$0xff] %vm294_vm0, %v3853_v0  ;;  %v502_v6 = vld [vmem:[%s4000_s13 + $0x18] sm:$0x1]  ;;  %v526_v7 = vld [vmem:[%s4000_s13 + $0x19] sm:$0x1] }
  0x37   : > { %305 = vst.msk [vmem:[#allocation2 + $0x48] sm:$0xff] %vm294_vm0, %v3853_v0  ;;  %306 = vst.msk [vmem:[#allocation2 + $0x50] sm:$0xff] %vm294_vm0, %v3853_v0  ;;  %v308_v8 = vld [vmem:[%s4000_s13] sm:$0x1]  ;;  %v309_v9 = vld [vmem:[%s4000_s13 + $0x10] sm:$0x1] }
  0x38   : > { %509 = vrot.lane.b32.xlu1 %v501_v3, %s3854_s26  ;;  %v333_v10 = vld [vmem:[%s4000_s13 + $0x1] sm:$0x1]  ;;  %v334_v11 = vld [vmem:[%s4000_s13 + $0x11] sm:$0x1]  ;;  %v480_v12 = vld [vmem:[%s4000_s13 + $0x37] sm:$0x1] }
  0x39   : > { %487 = vrot.lane.b32.xlu0 %v478_v4, %s3854_s26  ;;  %v503_v13 = vld [vmem:[%s4000_s13 + $0x28] sm:$0x1]  ;;  %v527_v14 = vld [vmem:[%s4000_s13 + $0x29] sm:$0x1]  ;;  %v549_v15 = vld [vmem:[%s4000_s13 + $0xa] sm:$0x1] }
  0x3a   : > { %v550_v16 = vld [vmem:[%s4000_s13 + $0x1a] sm:$0x1]  ;;  %v310_v17 = vld [vmem:[%s4000_s13 + $0x20] sm:$0x1]  ;;  %v335_v18 = vld [vmem:[%s4000_s13 + $0x21] sm:$0x1] }
  0x3b   : > { %v357_v19 = vld [vmem:[%s4000_s13 + $0x2] sm:$0x1]  ;;  %v358_v20 = vld [vmem:[%s4000_s13 + $0x12] sm:$0x1]  ;;  %v504_v21 = vld [vmem:[%s4000_s13 + $0x38] sm:$0x1] }
  0x3c   : > { %533 = vrot.lane.b32.xlu1 %v525_v5, %s3854_s26  ;;  %v528_v22 = vld [vmem:[%s4000_s13 + $0x39] sm:$0x1]  ;;  %v551_v23 = vld [vmem:[%s4000_s13 + $0x2a] sm:$0x1]  ;;  %v573_v24 = vld [vmem:[%s4000_s13 + $0xb] sm:$0x1] }
  0x3d   : > { %511 = vrot.lane.b32.xlu0 %v502_v6, %s3854_s26  ;;  %v574_v25 = vld [vmem:[%s4000_s13 + $0x1b] sm:$0x1]  ;;  %v311_v26 = vld [vmem:[%s4000_s13 + $0x30] sm:$0x1]  ;;  %v336_v27 = vld [vmem:[%s4000_s13 + $0x31] sm:$0x1] }
  0x3e   : > { %v359_v28 = vld [vmem:[%s4000_s13 + $0x22] sm:$0x1]  ;;  %v381_v29 = vld [vmem:[%s4000_s13 + $0x3] sm:$0x1]  ;;  %v382_v30 = vld [vmem:[%s4000_s13 + $0x13] sm:$0x1] }
  0x3f   : > { %v552_v31 = vld [vmem:[%s4000_s13 + $0x3a] sm:$0x1]  ;;  %v575_v32 = vld [vmem:[%s4000_s13 + $0x2b] sm:$0x1]  ;;  %v597_v33 = vld [vmem:[%s4000_s13 + $0xc] sm:$0x1] }
  0x40   : > { %316 = vrot.lane.b32.xlu1 %v308_v8, %s3854_s26  ;;  %v598_v34 = vld [vmem:[%s4000_s13 + $0x1c] sm:$0x1]  ;;  %v360_v35 = vld [vmem:[%s4000_s13 + $0x32] sm:$0x1]  ;;  %v383_v36 = vld [vmem:[%s4000_s13 + $0x23] sm:$0x1] }
  0x41   : > { %535 = vrot.lane.b32.xlu0 %v526_v7, %s3854_s26  ;;  %v405_v37 = vld [vmem:[%s4000_s13 + $0x4] sm:$0x1]  ;;  %v406_v38 = vld [vmem:[%s4000_s13 + $0x14] sm:$0x1]  ;;  %v576_v39 = vld [vmem:[%s4000_s13 + $0x3b] sm:$0x1] }
  0x42   : > { %v599_v40 = vld [vmem:[%s4000_s13 + $0x2c] sm:$0x1]  ;;  %v621_v41 = vld [vmem:[%s4000_s13 + $0xd] sm:$0x1]  ;;  %v622_v42 = vld [vmem:[%s4000_s13 + $0x1d] sm:$0x1] }
  0x43   : > { %v384_v43 = vld [vmem:[%s4000_s13 + $0x33] sm:$0x1]  ;;  %v407_v44 = vld [vmem:[%s4000_s13 + $0x24] sm:$0x1]  ;;  %v429_v45 = vld [vmem:[%s4000_s13 + $0x5] sm:$0x1] }
  0x44   : > { %341 = vrot.lane.b32.xlu1 %v333_v10, %s3854_s26  ;;  %v430_v46 = vld [vmem:[%s4000_s13 + $0x15] sm:$0x1]  ;;  %v600_v47 = vld [vmem:[%s4000_s13 + $0x3c] sm:$0x1]  ;;  %v623_v48 = vld [vmem:[%s4000_s13 + $0x2d] sm:$0x1] }
  0x45   : > { %318 = vrot.lane.b32.xlu0 %v309_v9, %s3854_s26  ;;  %v645_v49 = vld [vmem:[%s4000_s13 + $0xe] sm:$0x1]  ;;  %v646_v50 = vld [vmem:[%s4000_s13 + $0x1e] sm:$0x1]  ;;  %vm297_vm1 = vcmask 140288   ;;  %vm328_vm2 = vcmask 131080  }
  0x46   : > { %298 = vst.msk [vmem:[#allocation2 + $0x10] sm:$0x3] %vm297_vm1, %v3853_v0  ;;  %301 = vst.msk [vmem:[#allocation2 + $0x28] sm:$0x3] %vm297_vm1, %v3853_v0  ;;  %v408_v51 = vld [vmem:[%s4000_s13 + $0x34] sm:$0x1] }
  0x47   : > { %304 = vst.msk [vmem:[#allocation2 + $0x40] sm:$0x3] %vm297_vm1, %v3853_v0  ;;  %307 = vst.msk [vmem:[#allocation2 + $0x58] sm:$0x3] %vm297_vm1, %v3853_v0  ;;  %v431_v52 = vld [vmem:[%s4000_s13 + $0x25] sm:$0x1] }
  0x48   : > { %491 = vrot.lane.b32.xlu1 %v480_v12, %s3854_s26  ;;  %v453_v53 = vld [vmem:[%s4000_s13 + $0x6] sm:$0x1]  ;;  %v454_v54 = vld [vmem:[%s4000_s13 + $0x16] sm:$0x1]  ;;  %v624_v55 = vld [vmem:[%s4000_s13 + $0x3d] sm:$0x1] }
  0x49   : > { %343 = vrot.lane.b32.xlu0 %v334_v11, %s3854_s26  ;;  %v647_v56 = vld [vmem:[%s4000_s13 + $0x2e] sm:$0x1]  ;;  %v669_v57 = vld [vmem:[%s4000_s13 + $0xf] sm:$0x1]  ;;  %v670_v58 = vld [vmem:[%s4000_s13 + $0x1f] sm:$0x1] }
  0x4a   : > { %v737_v59 = vld [vmem:[#allocation2 + $0x18] sm:$0x1]  ;;  %v713_v60 = vld [vmem:[#allocation2] sm:$0x1]  ;;  %v432_v62 = vld [vmem:[%s4000_s13 + $0x35] sm:$0x1] }
  0x4b   : > { %v714_v61 = vld [vmem:[#allocation2 + $0x18] sm:$0x1]  ;;  %v455_v63 = vld [vmem:[%s4000_s13 + $0x26] sm:$0x1]  ;;  %v744_v2 = vrot.slane %v737_v59, 7  ;;  %v721_v5 = vrot.slane %v713_v60, 4 }
  0x4c   : > { %537 = vrot.lane.b32.xlu1 %v527_v14, %s3854_s26  ;;  %v738_v3 = vld [vmem:[#allocation2 + $0x30] sm:$0x1]  ;;  %v722_v6 = vrot.slane %v714_v61, 3  ;;  %v736_v7 = vld [vmem:[#allocation2] sm:$0x1]  ;;  %vm702_vm3 = vcmask 1041409  }
  0x4d   : > { %513 = vrot.lane.b32.xlu0 %v503_v13, %s3854_s26  ;;  %v715_v4 = vld [vmem:[#allocation2 + $0x30] sm:$0x1]  ;;  %v648_v8 = vld [vmem:[%s4000_s13 + $0x3e] sm:$0x1]  ;;  %v671_v9 = vld [vmem:[%s4000_s13 + $0x2f] sm:$0x1] }
  0x4e   : > { %vm723_vm4 = vcmask 1045509   ;;  %v739_v12 = vld [vmem:[#allocation2 + $0x48] sm:$0x1]  ;;  %v746_v13 = vrot.slane %v738_v3, 6  ;;  %vm705_vm5 = vcmask 1042434   ;;  %vm726_vm6 = vcmask 1046534  }
  0x4f   : > { %v716_v14 = vld [vmem:[#allocation2 + $0x48] sm:$0x1]  ;;  %vm708_vm7 = vcmask 1043459   ;;  %vm729_vm8 = vcmask 1047559   ;;  %s3855_s7 = smov 126   ;;  %s3856_s9 = smov 127  }
  0x50   : > { %559 = vrot.lane.b32.xlu1 %v550_v16, %s3854_s26  ;;  %v745_v16 = vsel %vm702_vm3, %v744_v2, %v736_v7  ;;  %s3857_s10 = smov 15   ;;  %s3858_s11 = smov 16   ;;  %vm5740_vm9 = vcmask 125952   ;;  %vm734_vm10 = vcmask 130052   ;;  %vm898_vm11 = vcmask 261252  }
  0x51   : > { %557 = vrot.lane.b32.xlu0 %v549_v15, %s3854_s26  ;;  %v725_v15 = vrot.slane %v715_v4, 2  ;;  %s3859_s14 = smov 14   ;;  %s3860_s15 = smov 31   ;;  %vm5741_vm12 = vcmask 257152   ;;  %vm1066_vm13 = vcmask 392452   ;;  %vm1046_vm14 = vcmask 388352  }
  0x52   : > { %s3861_s21 = smov 32   ;;  %s3862_s23 = smov 30   ;;  %vm1234_vm15 = vcmask 523652   ;;  %vm1214_vm0 = vcmask 519552   ;;  %vm1382_vm1 = vcmask 650752  }
  0x53   : > { %s3863_s24 = smov 47   ;;  %s3864_s25 = smov 48  }
  0x54   : > { %345 = vrot.lane.b32.xlu1 %v335_v18, %s3854_s26  ;;  %v456_v18 = vld [vmem:[%s4000_s13 + $0x36] sm:$0x1]  ;;  %s3865_s28 = smov 46   ;;  %s3866_s29 = smov 64  }
  0x55   : > { %320 = vrot.lane.b32.xlu0 %v310_v17, %s3854_s26  ;;  %v724_v17 = vsel %vm723_vm4, %v722_v6, %v721_v5  ;;  %s3867_s30 = smov 62   ;;  %s3868_s5 = smov 63  }
  0x56   : > { %s3869_s6 = smov 80   ;;  %s3870_s8 = smov 79  }
  0x57   : > { %s3871_s12 = smov 78   ;;  %p271_p7 = scmp.lt.s32.totalorder %s3840_s18, 1 }
  0x58   : > { %367 = vrot.lane.b32.xlu1 %v358_v20, %s3854_s26  ;;  %v748_v20 = vrot.slane %v739_v12, 5 }
  0x59   : > { %365 = vrot.lane.b32.xlu0 %v357_v19, %s3854_s26  ;;  %v672_v19 = vld [vmem:[%s4000_s13 + $0x3f] sm:$0x1]  ;;  %s3872_s13 = smov 96   ;;  %s5757_s18 = smov (!%p271_p7, %s3840_s18), 1 }
  0x5c   : > { %539 = vrot.lane.b32.xlu1 %v528_v22, %s3854_s26 }
  0x5d   : > { %515 = vrot.lane.b32.xlu0 %v504_v21, %s3854_s26  ;;  %v728_v21 = vrot.slane %v716_v14, 1 }
  0x60   : > { %581 = vrot.lane.b32.xlu1 %v573_v24, %s3854_s26  ;;  %v747_v24 = vsel %vm705_vm5, %v746_v13, %v745_v16 }
  0x61   : > { %561 = vrot.lane.b32.xlu0 %v551_v23, %s3854_s26 }
  0x64   : > { %322 = vrot.lane.b32.xlu1 %v311_v26, %s3854_s26  ;;  %v749_v26 = vsel %vm708_vm7, %v748_v20, %v747_v24 }
  0x65   : > { %583 = vrot.lane.b32.xlu0 %v574_v25, %s3854_s26  ;;  %v727_v25 = vsel %vm726_vm6, %v725_v15, %v724_v17 }
  0x68   : > { %369 = vrot.lane.b32.xlu1 %v359_v28, %s3854_s26 }
  0x69   : > { %347 = vrot.lane.b32.xlu0 %v336_v27, %s3854_s26  ;;  %v730_v27 = vsel %vm729_vm8, %v728_v21, %v727_v25 }
  0x6c   : > { %391 = vrot.lane.b32.xlu1 %v382_v30, %s3854_s26 }
  0x6d   : > { %389 = vrot.lane.b32.xlu0 %v381_v29, %s3854_s26 }
  0x70   : > { %585 = vrot.lane.b32.xlu1 %v575_v32, %s3854_s26 }
  0x71   : > { %563 = vrot.lane.b32.xlu0 %v552_v31, %s3854_s26 }
  0x74   : > { %607 = vrot.lane.b32.xlu1 %v598_v34, %s3854_s26 }
  0x75   : > { %605 = vrot.lane.b32.xlu0 %v597_v33, %s3854_s26 }
  0x78   : > { %393 = vrot.lane.b32.xlu1 %v383_v36, %s3854_s26 }
  0x79   : > { %371 = vrot.lane.b32.xlu0 %v360_v35, %s3854_s26 }
  0x7c   : > { %415 = vrot.lane.b32.xlu1 %v406_v38, %s3854_s26 }
  0x7d   : > { %413 = vrot.lane.b32.xlu0 %v405_v37, %s3854_s26 }
  0x80   : > { %609 = vrot.lane.b32.xlu1 %v599_v40, %s3854_s26 }
  0x81   : > { %587 = vrot.lane.b32.xlu0 %v576_v39, %s3854_s26 }
  0x84   : > { %631 = vrot.lane.b32.xlu1 %v622_v42, %s3854_s26 }
  0x85   : > { %629 = vrot.lane.b32.xlu0 %v621_v41, %s3854_s26 }
  0x88   : > { %417 = vrot.lane.b32.xlu1 %v407_v44, %s3854_s26 }
  0x89   : > { %395 = vrot.lane.b32.xlu0 %v384_v43, %s3854_s26 }
  0x8c   : > { %439 = vrot.lane.b32.xlu1 %v430_v46, %s3854_s26 }
  0x8d   : > { %437 = vrot.lane.b32.xlu0 %v429_v45, %s3854_s26 }
  0x90   : > { %633 = vrot.lane.b32.xlu1 %v623_v48, %s3854_s26 }
  0x91   : > { %611 = vrot.lane.b32.xlu0 %v600_v47, %s3854_s26 }
  0x94   : > { %655 = vrot.lane.b32.xlu1 %v646_v50, %s3854_s26 }
  0x95   : > { %653 = vrot.lane.b32.xlu0 %v645_v49, %s3854_s26 }
  0x98   : > { %441 = vrot.lane.b32.xlu1 %v431_v52, %s3854_s26 }
  0x99   : > { %419 = vrot.lane.b32.xlu0 %v408_v51, %s3854_s26 }
  0x9c   : > { %463 = vrot.lane.b32.xlu1 %v454_v54, %s3854_s26 }
  0x9d   : > { %461 = vrot.lane.b32.xlu0 %v453_v53, %s3854_s26 }
  0xa0   : > { %657 = vrot.lane.b32.xlu1 %v647_v56, %s3854_s26 }
  0xa1   : > { %635 = vrot.lane.b32.xlu0 %v624_v55, %s3854_s26 }
  0xa4   : > { %679 = vrot.lane.b32.xlu1 %v670_v58, %s3854_s26 }
  0xa5   : > { %677 = vrot.lane.b32.xlu0 %v669_v57, %s3854_s26 }
  0xa6   : > { %v490_v0 = vpop.permute.xlu1 %489 }
  0xa7   : > { %v486_v1 = vpop.permute.xlu0 %485  ;;  %499 = vst.msk [vmem:[#allocation2 + $0x38] sm:$0x1] %vm328_vm2, %v490_v0 }
  0xa8   : > { %497 = vst.msk [vmem:[#allocation2 + $0x8] sm:$0x1] %vm328_vm2, %v486_v1  ;;  %465 = vrot.lane.b32.xlu1 %v455_v63, %s3854_s26 }
  0xa9   : > { %443 = vrot.lane.b32.xlu0 %v432_v62, %s3854_s26 }
  0xaa   : > { %v510_v10 = vpop.permute.xlu1 %509 }
  0xab   : > { %v488_v11 = vpop.permute.xlu0 %487  ;;  %521 = vst.msk [vmem:[#allocation2 + $0x9] sm:$0x1] %vm328_vm2, %v510_v10 }
  0xac   : > { %498 = vst.msk [vmem:[#allocation2 + $0x20] sm:$0x1] %vm328_vm2, %v488_v11  ;;  %681 = vrot.lane.b32.xlu1 %v671_v9, %s3854_s26 }
  0xad   : > { %659 = vrot.lane.b32.xlu0 %v648_v8, %s3854_s26 }
  0xae   : > { %v534_v22 = vpop.permute.xlu1 %533  ;;  %v2074_v41 = vld [vmem:[#allocation2 + $0x38] sm:$0x1] }
  0xaf   : > { %v512_v23 = vpop.permute.xlu0 %511  ;;  %545 = vst.msk [vmem:[#allocation2 + $0xa] sm:$0x1] %vm328_vm2, %v534_v22  ;;  %v2053_v36 = vld [vmem:[#allocation2 + $0x8] sm:$0x1]  ;;  %v2055_v42 = vld [vmem:[#allocation2 + $0x38] sm:$0x1] }
  0xb0   : > { %522 = vst.msk [vmem:[#allocation2 + $0x21] sm:$0x1] %vm328_vm2, %v512_v23  ;;  %683 = vrot.lane.b32.xlu1 %v672_v19, %s3854_s26  ;;  %v2061_v43 = vrot.slane %v2053_v36, 4  ;;  %v2072_v44 = vld [vmem:[#allocation2 + $0x8] sm:$0x1]  ;;  %v2082_v50 = vrot.slane %v2074_v41, 6 }
  0xb1   : > { %467 = vrot.lane.b32.xlu0 %v456_v18, %s3854_s26  ;;  %v2064_v52 = vrot.slane %v2055_v42, 2  ;;  %v4183_v63 = vld [vmem:[#allocation2 + $0x38] sm:$0x1]  ;;  %s3873_s26 = smov 95  }
  0xb2   : > { %v317_v29 = vpop.permute.xlu1 %316  ;;  %v2215_v2 = vld [vmem:[#allocation2 + $0x9] sm:$0x1]  ;;  %v2047_v3 = vrot.slane %v4183_v63, 6 }
  0xb3   : > { %v536_v28 = vpop.permute.xlu0 %535  ;;  %329 = vst.msk [vmem:[#allocation2 + $0x1] sm:$0x1] %vm328_vm2, %v317_v29  ;;  %v2073_v34 = vld [vmem:[#allocation2 + $0x20] sm:$0x1]  ;;  %v4188_v4 = vld [vmem:[#allocation2 + $0x9] sm:$0x1] }
  0xb4   : > { %546 = vst.msk [vmem:[#allocation2 + $0x22] sm:$0x1] %vm328_vm2, %v536_v28  ;;  %750 = vrot.lane.b32.xlu1 %v749_v26, %s3855_s7  ;;  %v2054_v35 = vld [vmem:[#allocation2 + $0x20] sm:$0x1]  ;;  %v2080_v37 = vrot.slane %v2073_v34, 7  ;;  %v2223_v15 = vrot.slane %v2215_v2, 4 }
  0xb5   : > { %731 = vrot.lane.b32.xlu0 %v730_v27, %s3856_s9  ;;  %v2062_v38 = vrot.slane %v2054_v35, 3  ;;  %v4190_v5 = vld [vmem:[#allocation2 + $0x20] sm:$0x1]  ;;  %v4192_v6 = vld [vmem:[#allocation2 + $0x9] sm:$0x1]  ;;  %v2133_v18 = vrot.slane %v4188_v4, 4 }
  0xb6   : > { %v342_v31 = vpop.permute.xlu1 %341  ;;  %v2081_v45 = vsel %vm702_vm3, %v2080_v37, %v2072_v44  ;;  %v4194_v9 = vld [vmem:[#allocation2 + $0xa] sm:$0x1]  ;;  %v2045_v22 = vrot.slane %v4190_v5, 7  ;;  %v2197_v24 = vld [vmem:[#allocation2 + $0x9] sm:$0x1]  ;;  %v2098_v27 = vrot.slane %v4192_v6, 4 }
  0xb7   : > { %v319_v30 = vpop.permute.xlu0 %318  ;;  %353 = vst.msk [vmem:[#allocation2 + $0x2] sm:$0x1] %vm328_vm2, %v342_v31  ;;  %v2063_v46 = vsel %vm723_vm4, %v2062_v38, %v2061_v43  ;;  %v2083_v55 = vsel %vm705_vm5, %v2082_v50, %v2081_v45  ;;  %v2216_v7 = vld [vmem:[#allocation2 + $0x21] sm:$0x1]  ;;  %v4196_v17 = vld [vmem:[#allocation2 + $0xa] sm:$0x1] }
  0xb8   : > { %330 = vst.msk [vmem:[#allocation2 + $0x19] sm:$0x1] %vm328_vm2, %v319_v30  ;;  %v2065_v56 = vsel %vm726_vm6, %v2064_v52, %v2063_v46  ;;  %v2198_v8 = vld [vmem:[#allocation2 + $0x21] sm:$0x1]  ;;  %v2224_v19 = vrot.slane %v2216_v7, 3  ;;  %v2260_v21 = vrot.slane %v4194_v9, 4 }
  0xb9   : > { %v2235_v12 = vld [vmem:[#allocation2 + $0x21] sm:$0x1]  ;;  %v2205_v20 = vrot.slane %v2198_v8, 7  ;;  %v2234_v43 = vld [vmem:[#allocation2 + $0x9] sm:$0x1] }
  0xba   : > { %v492_v33 = vpop.permute.xlu1 %491  ;;  %v2242_v26 = vrot.slane %v2235_v12, 7  ;;  %v4204_v31 = vld [vmem:[#allocation2 + $0x1] sm:$0x1] }
  0xbb   : > { %v344_v32 = vpop.permute.xlu0 %343  ;;  %500 = vst.msk [vmem:[#allocation2 + $0x50] sm:$0x1] %vm328_vm2, %v492_v33  ;;  %v2253_v16 = vld [vmem:[#allocation2 + $0x22] sm:$0x1]  ;;  %v4207_v38 = vld [vmem:[#allocation2 + $0x21] sm:$0x1]  ;;  %v2206_v41 = vsel %vm702_vm3, %v2205_v20, %v2197_v24 }
  0xbc   : > { %354 = vst.msk [vmem:[#allocation2 + $0x1a] sm:$0x1] %vm328_vm2, %v344_v32  ;;  %v2261_v29 = vrot.slane %v2253_v16, 3  ;;  %v2389_v32 = vrot.slane %v4196_v17, 4  ;;  %v2134_v9 = vrot.slane %v4207_v38, 3 }
  0xbe   : > { %v538_v40 = vpop.permute.xlu1 %537  ;;  %v2262_v2 = vsel %vm723_vm4, %v2261_v29, %v2260_v21  ;;  %v4474_v38 = vld [vmem:[#allocation2 + $0x2] sm:$0x1] }
  0xbf   : > { %v514_v39 = vpop.permute.xlu0 %513  ;;  %547 = vst.msk [vmem:[#allocation2 + $0x3a] sm:$0x1] %vm328_vm2, %v538_v40  ;;  %v881_v45 = vld [vmem:[#allocation2 + $0x19] sm:$0x1] }
  0xc0   : > { %523 = vst.msk [vmem:[#allocation2 + $0x39] sm:$0x1] %vm328_vm2, %v514_v39  ;;  %v2225_v39 = vsel %vm723_vm4, %v2224_v19, %v2223_v15  ;;  %v862_v50 = vld [vmem:[#allocation2 + $0x19] sm:$0x1]  ;;  %v918_v15 = vld [vmem:[#allocation2 + $0x2] sm:$0x1] }
  0xc1   : > { %v869_v7 = vrot.slane %v862_v50, 7 }
  0xc2   : > { %v560_v48 = vpop.permute.xlu1 %559  ;;  %v2075_v49 = vld [vmem:[#allocation2 + $0x50] sm:$0x1] }
  0xc3   : > { %v558_v47 = vpop.permute.xlu0 %557  ;;  %v2056_v51 = vld [vmem:[#allocation2 + $0x50] sm:$0x1]  ;;  %570 = vst.msk [vmem:[#allocation2 + $0x23] sm:$0x1] %vm328_vm2, %v560_v48  ;;  %v2084_v53 = vrot.slane %v2075_v49, 5 }
  0xc4   : > { %569 = vst.msk [vmem:[#allocation2 + $0xb] sm:$0x1] %vm328_vm2, %v558_v47  ;;  %v2066_v54 = vrot.slane %v2056_v51, 1  ;;  %v4215_v51 = vld [vmem:[#allocation2 + $0x22] sm:$0x1] }
  0xc5   : > { %v2085_v57 = vsel %vm708_vm7, %v2084_v53, %v2083_v55  ;;  %v2390_v8 = vrot.slane %v4215_v51, 3  ;;  %v919_v16 = vld [vmem:[#allocation2 + $0x1a] sm:$0x1] }
  0xc6   : > { %v2067_v58 = vsel %vm729_vm8, %v2066_v54, %v2065_v56  ;;  %v346_v60 = vpop.permute.xlu1 %345  ;;  %2086 = vrot.lane.b32.xlu1 %v2085_v57, %s3855_s7  ;;  %v2254_v28 = vld [vmem:[#allocation2 + $0x3a] sm:$0x1] }
  0xc7   : > { %v321_v59 = vpop.permute.xlu0 %320  ;;  %2068 = vrot.lane.b32.xlu0 %v2067_v58, %s3856_s9  ;;  %355 = vst.msk [vmem:[#allocation2 + $0x32] sm:$0x1] %vm328_vm2, %v346_v60  ;;  %v2217_v10 = vld [vmem:[#allocation2 + $0x39] sm:$0x1]  ;;  %v2263_v48 = vrot.slane %v2254_v28, 2  ;;  %v2243_v60 = vsel %vm702_vm3, %v2242_v26, %v2234_v43 }
  0xc8   : > { %331 = vst.msk [vmem:[#allocation2 + $0x31] sm:$0x1] %vm328_vm2, %v321_v59  ;;  %v2199_v11 = vld [vmem:[#allocation2 + $0x39] sm:$0x1]  ;;  %v2226_v23 = vrot.slane %v2217_v10, 2 }
  0xc9   : > { %v2207_v25 = vrot.slane %v2199_v11, 6  ;;  %v2236_v30 = vld [vmem:[#allocation2 + $0x39] sm:$0x1]  ;;  %v2264_v10 = vsel %vm726_vm6, %v2263_v48, %v2262_v2  ;;  %v2365_v50 = vld [vmem:[#allocation2 + $0x3a] sm:$0x1] }
  0xca   : > { %v368_v62 = vpop.permute.xlu1 %367  ;;  %v2227_v46 = vsel %vm726_vm6, %v2226_v23, %v2225_v39  ;;  %v2244_v49 = vrot.slane %v2236_v30, 6  ;;  %v4261_v2 = vld [vmem:[#allocation2 + $0x2] sm:$0x1] }
  0xcb   : > { %v366_v61 = vpop.permute.xlu0 %365  ;;  %378 = vst.msk [vmem:[#allocation2 + $0x1b] sm:$0x1] %vm328_vm2, %v368_v62  ;;  %v2208_v47 = vsel %vm705_vm5, %v2207_v25, %v2206_v41  ;;  %v889_v62 = vrot.slane %v881_v45, 3 }
  0xcc   : > { %377 = vst.msk [vmem:[#allocation2 + $0x3] sm:$0x1] %vm328_vm2, %v366_v61  ;;  %v888_v61 = vrot.slane %v4204_v31, 4  ;;  %v2245_v11 = vsel %vm705_vm5, %v2244_v49, %v2243_v60  ;;  %v2383_v49 = vld [vmem:[#allocation2 + $0x3a] sm:$0x1] }
  0xce   : > { %v540_v1 = vpop.permute.xlu1 %539  ;;  %v920_v23 = vld [vmem:[#allocation2 + $0x32] sm:$0x1]  ;;  %v890_v30 = vsel %vm723_vm4, %v889_v62, %v888_v61  ;;  %v2363_v62 = vld [vmem:[#allocation2 + $0xa] sm:$0x1] }
  0xcf   : > { %v516_v0 = vpop.permute.xlu0 %515  ;;  %548 = vst.msk [vmem:[#allocation2 + $0x52] sm:$0x1] %vm328_vm2, %v540_v1  ;;  %v882_v56 = vld [vmem:[#allocation2 + $0x31] sm:$0x1]  ;;  %v4225_v1 = vld [vmem:[#allocation2 + $0x22] sm:$0x1] }
  0xd0   : > { %524 = vst.msk [vmem:[#allocation2 + $0x51] sm:$0x1] %vm328_vm2, %v516_v0  ;;  %v863_v57 = vld [vmem:[#allocation2 + $0x31] sm:$0x1]  ;;  %v4223_v0 = vld [vmem:[#allocation2 + $0x19] sm:$0x1] }
  0xd1   : > { %v891_v12 = vrot.slane %v882_v56, 2  ;;  %v902_v21 = vld [vmem:[#allocation2 + $0x31] sm:$0x1]  ;;  %v908_v24 = vrot.slane %v4223_v0, 7  ;;  %v2371_v25 = vrot.slane %v4225_v1, 7  ;;  %v929_v41 = vrot.slane %v920_v23, 2 }
  0xd2   : > { %v582_v14 = vpop.permute.xlu1 %581  ;;  %v910_v43 = vrot.slane %v902_v21, 6 }
  0xd3   : > { %v562_v13 = vpop.permute.xlu0 %561  ;;  %593 = vst.msk [vmem:[#allocation2 + $0xc] sm:$0x1] %vm328_vm2, %v582_v14  ;;  %v871_v14 = vrot.slane %v863_v57, 6  ;;  %v892_v39 = vsel %vm726_vm6, %v891_v12, %v890_v30  ;;  %v2392_v12 = vrot.slane %v2383_v49, 2  ;;  %v2372_v30 = vsel %vm702_vm3, %v2371_v25, %v2363_v62  ;;  %v4303_v62 = vld [vmem:[#allocation2 + $0x23] sm:$0x1] }
  0xd4   : > { %571 = vst.msk [vmem:[#allocation2 + $0x3b] sm:$0x1] %vm328_vm2, %v562_v13  ;;  %v861_v13 = vld [vmem:[#allocation2 + $0x1] sm:$0x1] }
  0xd6   : > { %v323_v34 = vpop.permute.xlu1 %322  ;;  %v2255_v37 = vld [vmem:[#allocation2 + $0x52] sm:$0x1] }
  0xd7   : > { %v584_v33 = vpop.permute.xlu0 %583  ;;  %v2218_v35 = vld [vmem:[#allocation2 + $0x51] sm:$0x1]  ;;  %332 = vst.msk [vmem:[#allocation2 + $0x49] sm:$0x1] %vm328_vm2, %v323_v34  ;;  %v2265_v54 = vrot.slane %v2255_v37, 1  ;;  %v927_v37 = vrot.slane %v919_v16, 3 }
  0xd8   : > { %v2200_v36 = vld [vmem:[#allocation2 + $0x51] sm:$0x1]  ;;  %594 = vst.msk [vmem:[#allocation2 + $0x24] sm:$0x1] %vm328_vm2, %v584_v33  ;;  %v2228_v40 = vrot.slane %v2218_v35, 1  ;;  %v870_v35 = vsel %vm702_vm3, %v869_v7, %v861_v13  ;;  %v2373_v13 = vrot.slane %v2365_v50, 6 }
  0xd9   : > { %v2209_v42 = vrot.slane %v2200_v36, 5  ;;  %v2237_v44 = vld [vmem:[#allocation2 + $0x51] sm:$0x1]  ;;  %v2266_v19 = vsel %vm729_vm8, %v2265_v54, %v2264_v10  ;;  %v2384_v56 = vld [vmem:[#allocation2 + $0x52] sm:$0x1] }
  0xda   : > { %v2229_v52 = vsel %vm729_vm8, %v2228_v40, %v2227_v46  ;;  %v2246_v55 = vrot.slane %v2237_v44, 5  ;;  %v370_v59 = vpop.permute.xlu1 %369  ;;  %v872_v40 = vsel %vm705_vm5, %v871_v14, %v870_v35  ;;  %v4246_v44 = vld [vmem:[#allocation2 + $0x22] sm:$0x1]  ;;  %v2366_v57 = vld [vmem:[#allocation2 + $0x52] sm:$0x1] }
  0xdb   : > { %v2210_v53 = vsel %vm708_vm7, %v2209_v42, %v2208_v47  ;;  %v348_v58 = vpop.permute.xlu0 %347  ;;  %2230 = vrot.lane.b32.xlu1 %v2229_v52, %s3857_s10  ;;  %379 = vst.msk [vmem:[#allocation2 + $0x33] sm:$0x1] %vm328_vm2, %v370_v59  ;;  %v900_v42 = vld [vmem:[#allocation2 + $0x1] sm:$0x1]  ;;  %v926_v47 = vrot.slane %v918_v15, 4  ;;  %v2408_v0 = vrot.slane %v4246_v44, 7 }
  0xdc   : > { %2211 = vrot.lane.b32.xlu0 %v2210_v53, %s3858_s11  ;;  %356 = vst.msk [vmem:[#allocation2 + $0x4a] sm:$0x1] %vm328_vm2, %v348_v58  ;;  %v2247_v20 = vsel %vm708_vm7, %v2246_v55, %v2245_v11  ;;  %v4250_v52 = vld [vmem:[#allocation2 + $0x21] sm:$0x1]  ;;  %v4254_v58 = vld [vmem:[#allocation2 + $0xa] sm:$0x1]  ;;  %v909_v61 = vsel %vm702_vm3, %v908_v24, %v900_v42 }
  0xdd   : > { %v928_v59 = vsel %vm723_vm4, %v927_v37, %v926_v47  ;;  %v4263_v7 = vld [vmem:[#allocation2 + $0x1a] sm:$0x1]  ;;  %v911_v11 = vsel %vm705_vm5, %v910_v43, %v909_v61  ;;  %v2418_v14 = vld [vmem:[#allocation2 + $0xb] sm:$0x1]  ;;  %v2419_v15 = vld [vmem:[#allocation2 + $0x23] sm:$0x1] }
  0xde   : > { %v392_v28 = vpop.permute.xlu1 %391  ;;  %v883_v29 = vld [vmem:[#allocation2 + $0x49] sm:$0x1]  ;;  %v930_v10 = vsel %vm726_vm6, %v929_v41, %v928_v59  ;;  %v2375_v23 = vrot.slane %v2366_v57, 5  ;;  %v2420_v21 = vld [vmem:[#allocation2 + $0x3b] sm:$0x1]  ;;  %v2115_v35 = vrot.slane %v4250_v52, 7 }
  0xdf   : > { %v390_v26 = vpop.permute.xlu0 %389  ;;  %2267 = vrot.lane.b32.xlu1 %v2266_v19, %s3858_s11  ;;  %v864_v31 = vld [vmem:[#allocation2 + $0x49] sm:$0x1]  ;;  %402 = vst.msk [vmem:[#allocation2 + $0x1c] sm:$0x1] %vm328_vm2, %v392_v28  ;;  %v893_v34 = vrot.slane %v883_v29, 1  ;;  %v2391_v29 = vsel %vm723_vm4, %v2390_v8, %v2389_v32  ;;  %v2427_v17 = vrot.slane %v2419_v15, 3  ;;  %v2374_v8 = vsel %vm705_vm5, %v2373_v13, %v2372_v30 }
  0xe0   : > { %2248 = vrot.lane.b32.xlu0 %v2247_v20, %s3859_s14  ;;  %v903_v33 = vld [vmem:[#allocation2 + $0x49] sm:$0x1]  ;;  %401 = vst.msk [vmem:[#allocation2 + $0x4] sm:$0x1] %vm328_vm2, %v390_v26  ;;  %v873_v36 = vrot.slane %v864_v31, 5  ;;  %v2394_v20 = vrot.slane %v2384_v56, 1  ;;  %v2393_v1 = vsel %vm726_vm6, %v2392_v12, %v2391_v29  ;;  %v2376_v42 = vsel %vm708_vm7, %v2375_v23, %v2374_v8 }
  0xe1   : > { %v894_v45 = vsel %vm729_vm8, %v893_v34, %v892_v39  ;;  %v912_v48 = vrot.slane %v903_v33, 5  ;;  %v2402_v24 = vld [vmem:[#allocation2 + $0x3a] sm:$0x1]  ;;  %v2403_v31 = vld [vmem:[#allocation2 + $0x52] sm:$0x1]  ;;  %v1056_v33 = vrot.slane %v4261_v2, 4 }
  0xe2   : > { %v874_v46 = vsel %vm708_vm7, %v873_v36, %v872_v40  ;;  %v586_v54 = vpop.permute.xlu1 %585  ;;  %v1030_v34 = vld [vmem:[#allocation2 + $0x1a] sm:$0x1]  ;;  %v2426_v36 = vrot.slane %v2418_v14, 4  ;;  %v1057_v51 = vrot.slane %v4263_v7, 3  ;;  %v2168_v32 = vrot.slane %v4254_v58, 4 }
  0xe3   : > { %v564_v53 = vpop.permute.xlu0 %563  ;;  %895 = vrot.lane.b32.xlu1 %v894_v45, %s3857_s10  ;;  %v921_v55 = vld [vmem:[#allocation2 + $0x4a] sm:$0x1]  ;;  %595 = vst.msk [vmem:[#allocation2 + $0x3c] sm:$0x1] %vm328_vm2, %v586_v54  ;;  %v913_v19 = vsel %vm708_vm7, %v912_v48, %v911_v11  ;;  %v2429_v25 = vrot.slane %v2420_v21, 2  ;;  %v2410_v39 = vrot.slane %v2402_v24, 6  ;;  %v2395_v41 = vsel %vm729_vm8, %v2394_v20, %v2393_v1 }
  0xe4   : > { %875 = vrot.lane.b32.xlu0 %v874_v46, %s3858_s11  ;;  %572 = vst.msk [vmem:[#allocation2 + $0x53] sm:$0x1] %vm328_vm2, %v564_v53  ;;  %v931_v60 = vrot.slane %v921_v55, 1  ;;  %v2400_v37 = vld [vmem:[#allocation2 + $0xa] sm:$0x1]  ;;  %v2412_v43 = vrot.slane %v2403_v31, 5  ;;  %v2428_v56 = vsel %vm723_vm4, %v2427_v17, %v2426_v36 }
  0xe5   : > { %v4287_v40 = vld [vmem:[#allocation2 + $0x22] sm:$0x1]  ;;  %v1050_v44 = vld [vmem:[#allocation2 + $0x32] sm:$0x1]  ;;  %v1037_v46 = vrot.slane %v1030_v34, 7  ;;  %v2409_v59 = vsel %vm702_vm3, %v2408_v0, %v2400_v37  ;;  %v2430_v7 = vsel %vm726_vm6, %v2429_v25, %v2428_v56  ;;  %v2537_v8 = vrot.slane %v4303_v62, 7 }
  0xe6   : > { %v932_v16 = vsel %vm729_vm8, %v931_v60, %v930_v10  ;;  %v608_v28 = vpop.permute.xlu1 %607  ;;  %v1031_v45 = vld [vmem:[#allocation2 + $0x32] sm:$0x1]  ;;  %v4291_v47 = vld [vmem:[#allocation2 + $0x1a] sm:$0x1]  ;;  %v4293_v48 = vld [vmem:[#allocation2 + $0xb] sm:$0x1]  ;;  %v2411_v10 = vsel %vm705_vm5, %v2410_v39, %v2409_v59 }
  0xe7   : > { %v606_v26 = vpop.permute.xlu0 %605  ;;  %933 = vrot.lane.b32.xlu1 %v932_v16, %s3858_s11  ;;  %618 = vst.msk [vmem:[#allocation2 + $0x25] sm:$0x1] %vm328_vm2, %v608_v28  ;;  %v1051_v54 = vld [vmem:[#allocation2 + $0x4a] sm:$0x1]  ;;  %v1029_v60 = vld [vmem:[#allocation2 + $0x2] sm:$0x1]  ;;  %v2413_v16 = vsel %vm708_vm7, %v2412_v43, %v2411_v10 }
  0xe8   : > { %914 = vrot.lane.b32.xlu0 %v913_v19, %s3859_s14  ;;  %617 = vst.msk [vmem:[#allocation2 + $0xd] sm:$0x1] %vm328_vm2, %v606_v26  ;;  %v1032_v55 = vld [vmem:[#allocation2 + $0x4a] sm:$0x1]  ;;  %v4301_v61 = vld [vmem:[#allocation2 + $0x23] sm:$0x1]  ;;  %v1058_v26 = vsel %vm723_vm4, %v1057_v51, %v1056_v33  ;;  %v1038_v28 = vsel %vm702_vm3, %v1037_v46, %v1029_v60 }
  0xe9   : > { %v2169_v2 = vrot.slane %v4287_v40, 3  ;;  %v1059_v11 = vrot.slane %v1050_v44, 2  ;;  %v1039_v12 = vrot.slane %v1031_v45, 6  ;;  %v1086_v13 = vld [vmem:[#allocation2 + $0x3] sm:$0x1]  ;;  %v1061_v0 = vrot.slane %v1051_v54, 1 }
  0xea   : > { %v394_v50 = vpop.permute.xlu1 %393  ;;  %v1087_v14 = vld [vmem:[#allocation2 + $0x1b] sm:$0x1]  ;;  %v1041_v19 = vrot.slane %v1032_v55, 5  ;;  %v1088_v20 = vld [vmem:[#allocation2 + $0x33] sm:$0x1]  ;;  %v1076_v30 = vrot.slane %v4291_v47, 7 }
  0xeb   : > { %v372_v49 = vpop.permute.xlu0 %371  ;;  %2396 = vrot.lane.b32.xlu1 %v2395_v41, %s3860_s15  ;;  %v2421_v53 = vld [vmem:[#allocation2 + $0x53] sm:$0x1]  ;;  %403 = vst.msk [vmem:[#allocation2 + $0x34] sm:$0x1] %vm328_vm2, %v394_v50  ;;  %v1070_v23 = vld [vmem:[#allocation2 + $0x32] sm:$0x1]  ;;  %v1060_v33 = vsel %vm726_vm6, %v1059_v11, %v1058_v26  ;;  %v1040_v51 = vsel %vm705_vm5, %v1039_v12, %v1038_v28 }
  0xec   : > { %2377 = vrot.lane.b32.xlu0 %v2376_v42, %s3861_s21  ;;  %380 = vst.msk [vmem:[#allocation2 + $0x4b] sm:$0x1] %vm328_vm2, %v372_v49  ;;  %v2431_v57 = vrot.slane %v2421_v53, 1  ;;  %v1071_v29 = vld [vmem:[#allocation2 + $0x4a] sm:$0x1]  ;;  %v2555_v31 = vrot.slane %v4293_v48, 4  ;;  %v1062_v42 = vsel %vm729_vm8, %v1061_v0, %v1060_v33  ;;  %v1042_v43 = vsel %vm708_vm7, %v1041_v19, %v1040_v51 }
  0xed   : > { %v4316_v34 = vld [vmem:[#allocation2 + $0x39] sm:$0x1]  ;;  %v1094_v36 = vrot.slane %v1086_v13, 4  ;;  %v1095_v17 = vrot.slane %v1087_v14, 3  ;;  %v2556_v1 = vrot.slane %v4301_v61, 3  ;;  %v1097_v25 = vrot.slane %v1088_v20, 2 }
  0xee   : > { %v2432_v15 = vsel %vm729_vm8, %v2431_v57, %v2430_v7  ;;  %v416_v24 = vpop.permute.xlu1 %415  ;;  %v1068_v37 = vld [vmem:[#allocation2 + $0x2] sm:$0x1]  ;;  %v1078_v39 = vrot.slane %v1070_v23, 6  ;;  %v4324_v41 = vld [vmem:[#allocation2 + $0x23] sm:$0x1]  ;;  %v1080_v44 = vrot.slane %v1071_v29, 5 }
  0xef   : > { %v414_v21 = vpop.permute.xlu0 %413  ;;  %2433 = vrot.lane.b32.xlu1 %v2432_v15, %s3861_s21  ;;  %426 = vst.msk [vmem:[#allocation2 + $0x1d] sm:$0x1] %vm328_vm2, %v416_v24  ;;  %v2549_v45 = vld [vmem:[#allocation2 + $0x3b] sm:$0x1]  ;;  %v4328_v47 = vld [vmem:[#allocation2 + $0x3] sm:$0x1]  ;;  %v1096_v57 = vsel %vm723_vm4, %v1095_v17, %v1094_v36  ;;  %v1077_v60 = vsel %vm702_vm3, %v1076_v30, %v1068_v37  ;;  %v2557_v29 = vsel %vm723_vm4, %v2556_v1, %v2555_v31 }
  0xf0   : > { %2414 = vrot.lane.b32.xlu0 %v2413_v16, %s3862_s23  ;;  %425 = vst.msk [vmem:[#allocation2 + $0x5] sm:$0x1] %vm328_vm2, %v414_v21  ;;  %v2531_v46 = vld [vmem:[#allocation2 + $0x3b] sm:$0x1]  ;;  %v2136_v48 = vrot.slane %v4316_v34, 2  ;;  %v2574_v62 = vrot.slane %v4324_v41, 7  ;;  %v1098_v11 = vsel %vm726_vm6, %v1097_v25, %v1096_v57  ;;  %v1079_v12 = vsel %vm705_vm5, %v1078_v39, %v1077_v60 }
  0xf1   : > { %v2550_v54 = vld [vmem:[#allocation2 + $0x53] sm:$0x1]  ;;  %v4333_v56 = vld [vmem:[#allocation2 + $0x39] sm:$0x1]  ;;  %v2529_v61 = vld [vmem:[#allocation2 + $0xb] sm:$0x1]  ;;  %v1081_v19 = vsel %vm708_vm7, %v1080_v44, %v1079_v12 }
  0xf2   : > { %v610_v50 = vpop.permute.xlu1 %609  ;;  %v2532_v55 = vld [vmem:[#allocation2 + $0x53] sm:$0x1]  ;;  %v4340_v7 = vld [vmem:[#allocation2 + $0x1b] sm:$0x1]  ;;  %v2558_v13 = vrot.slane %v2549_v45, 2  ;;  %v2539_v14 = vrot.slane %v2531_v46, 6  ;;  %v2538_v30 = vsel %vm702_vm3, %v2537_v8, %v2529_v61 }
  0xf3   : > { %v588_v49 = vpop.permute.xlu0 %587  ;;  %1063 = vrot.lane.b32.xlu1 %v1062_v42, %s3860_s15  ;;  %v1089_v53 = vld [vmem:[#allocation2 + $0x4b] sm:$0x1]  ;;  %619 = vst.msk [vmem:[#allocation2 + $0x3d] sm:$0x1] %vm328_vm2, %v610_v50  ;;  %v4342_v10 = vld [vmem:[#allocation2 + $0x1b] sm:$0x1] }
  0xf4   : > { %1043 = vrot.lane.b32.xlu0 %v1042_v43, %s3861_s21  ;;  %596 = vst.msk [vmem:[#allocation2 + $0x54] sm:$0x1] %vm328_vm2, %v588_v49  ;;  %v1099_v59 = vrot.slane %v1089_v53, 1  ;;  %v2585_v15 = vld [vmem:[#allocation2 + $0x24] sm:$0x1]  ;;  %v2560_v20 = vrot.slane %v2550_v54, 1  ;;  %v2559_v31 = vsel %vm726_vm6, %v2558_v13, %v2557_v29  ;;  %v2540_v1 = vsel %vm705_vm5, %v2539_v14, %v2538_v30 }
  0xf5   : > { %v4346_v16 = vld [vmem:[#allocation2 + $0x1b] sm:$0x1]  ;;  %v2541_v23 = vrot.slane %v2532_v55, 5  ;;  %v2586_v21 = vld [vmem:[#allocation2 + $0x3c] sm:$0x1]  ;;  %v1224_v33 = vrot.slane %v4328_v47, 4 }
  0xf6   : > { %v1100_v0 = vsel %vm729_vm8, %v1099_v59, %v1098_v11  ;;  %v2568_v24 = vld [vmem:[#allocation2 + $0x3b] sm:$0x1]  ;;  %v632_v28 = vpop.permute.xlu1 %631  ;;  %v2584_v36 = vld [vmem:[#allocation2 + $0xc] sm:$0x1]  ;;  %v2569_v17 = vld [vmem:[#allocation2 + $0x53] sm:$0x1]  ;;  %v2561_v45 = vsel %vm729_vm8, %v2560_v20, %v2559_v31 }
  0xf7   : > { %v630_v26 = vpop.permute.xlu0 %629  ;;  %1101 = vrot.lane.b32.xlu1 %v1100_v0, %s3861_s21  ;;  %v1225_v51 = vrot.slane %v4340_v7, 3  ;;  %642 = vst.msk [vmem:[#allocation2 + $0x26] sm:$0x1] %vm328_vm2, %v632_v28  ;;  %v2593_v25 = vrot.slane %v2585_v15, 3  ;;  %v1205_v37 = vrot.slane %v4342_v10, 7  ;;  %v1244_v39 = vrot.slane %v4346_v16, 7 }
  0xf8   : > { %1082 = vrot.lane.b32.xlu0 %v1081_v19, %s3862_s23  ;;  %641 = vst.msk [vmem:[#allocation2 + $0xe] sm:$0x1] %vm328_vm2, %v630_v26  ;;  %v2117_v41 = vrot.slane %v4333_v56, 6  ;;  %v2595_v8 = vrot.slane %v2586_v21, 2  ;;  %v2566_v42 = vld [vmem:[#allocation2 + $0xb] sm:$0x1]  ;;  %v2542_v46 = vsel %vm708_vm7, %v2541_v23, %v2540_v1 }
  0xf9   : > { %v2576_v43 = vrot.slane %v2568_v24, 6  ;;  %v4363_v44 = vld [vmem:[#allocation2 + $0x51] sm:$0x1]  ;;  %v2592_v47 = vrot.slane %v2584_v36, 4  ;;  %v2578_v49 = vrot.slane %v2569_v17, 5  ;;  %v2575_v12 = vsel %vm702_vm3, %v2574_v62, %v2566_v42 }
  0xfa   : > { %v1218_v50 = vld [vmem:[#allocation2 + $0x33] sm:$0x1]  ;;  %v4367_v54 = vld [vmem:[#allocation2 + $0x51] sm:$0x1]  ;;  %v418_v57 = vpop.permute.xlu1 %417  ;;  %v1219_v60 = vld [vmem:[#allocation2 + $0x4b] sm:$0x1]  ;;  %v1226_v1 = vsel %vm723_vm4, %v1225_v51, %v1224_v33 }
  0xfb   : > { %v1199_v53 = vld [vmem:[#allocation2 + $0x33] sm:$0x1]  ;;  %v396_v55 = vpop.permute.xlu0 %395  ;;  %2562 = vrot.lane.b32.xlu1 %v2561_v45, %s3863_s24  ;;  %v2587_v59 = vld [vmem:[#allocation2 + $0x54] sm:$0x1]  ;;  %v1200_v61 = vld [vmem:[#allocation2 + $0x4b] sm:$0x1]  ;;  %v2594_v10 = vsel %vm723_vm4, %v2593_v25, %v2592_v47  ;;  %v2577_v20 = vsel %vm705_vm5, %v2576_v43, %v2575_v12 }
  0xfc   : > { %2543 = vrot.lane.b32.xlu0 %v2542_v46, %s3864_s25  ;;  %v4371_v7 = vld [vmem:[#allocation2 + $0x3a] sm:$0x1]  ;;  %404 = vst.msk [vmem:[#allocation2 + $0x4c] sm:$0x1] %vm328_vm2, %v396_v55  ;;  %427 = vst.msk [vmem:[#allocation2 + $0x35] sm:$0x1] %vm328_vm2, %v418_v57  ;;  %v2596_v19 = vsel %vm726_vm6, %v2595_v8, %v2594_v10  ;;  %v2579_v29 = vsel %vm708_vm7, %v2578_v49, %v2577_v20 }
  0xfd   : > { %v2597_v11 = vrot.slane %v2587_v59, 1  ;;  %v1197_v13 = vld [vmem:[#allocation2 + $0x3] sm:$0x1]  ;;  %v4377_v14 = vld [vmem:[#allocation2 + $0x33] sm:$0x1]  ;;  %v2138_v15 = vrot.slane %v4363_v44, 1 }
  0xfe   : > { %v4380_v0 = vld [vmem:[#allocation2 + $0x24] sm:$0x1]  ;;  %v1227_v23 = vrot.slane %v1218_v50, 2  ;;  %v1207_v21 = vrot.slane %v1199_v53, 6  ;;  %v1255_v26 = vld [vmem:[#allocation2 + $0x1c] sm:$0x1]  ;;  %v440_v31 = vpop.permute.xlu1 %439  ;;  %v1206_v8 = vsel %vm702_vm3, %v1205_v37, %v1197_v13 }
  0xff   : > { %v1254_v24 = vld [vmem:[#allocation2 + $0x4] sm:$0x1]  ;;  %v2598_v28 = vsel %vm729_vm8, %v2597_v11, %v2596_v19  ;;  %v1229_v62 = vrot.slane %v1219_v60, 1  ;;  %v1209_v30 = vrot.slane %v1200_v61, 5  ;;  %v1256_v36 = vld [vmem:[#allocation2 + $0x34] sm:$0x1]  ;;  %v438_v25 = vpop.permute.xlu0 %437 }
 0x100   : > { %v4386_v17 = vld [vmem:[#allocation2 + $0x52] sm:$0x1]  ;;  %2599 = vrot.lane.b32.xlu1 %v2598_v28, %s3864_s25  ;;  %2580 = vrot.lane.b32.xlu0 %v2579_v29, %s3865_s28  ;;  %v1239_v42 = vld [vmem:[#allocation2 + $0x4b] sm:$0x1]  ;;  %v2119_v43 = vrot.slane %v4367_v54, 5  ;;  %v2703_v45 = vrot.slane %v4380_v0, 7  ;;  %v1228_v37 = vsel %vm726_vm6, %v1227_v23, %v1226_v1  ;;  %v1208_v55 = vsel %vm705_vm5, %v1207_v21, %v1206_v8 }
 0x101   : > { %v4394_v46 = vld [vmem:[#allocation2 + $0x24] sm:$0x1]  ;;  %449 = vst.msk [vmem:[#allocation2 + $0x6] sm:$0x1] %vm328_vm2, %v438_v25  ;;  %450 = vst.msk [vmem:[#allocation2 + $0x1e] sm:$0x1] %vm328_vm2, %v440_v31  ;;  %v1230_v10 = vsel %vm729_vm8, %v1229_v62, %v1228_v37  ;;  %v1210_v11 = vsel %vm708_vm7, %v1209_v30, %v1208_v55  ;;  %v2170_v54 = vsel %vm723_vm4, %v2169_v2, %v2168_v32 }
 0x102   : > { %v1262_v47 = vrot.slane %v1254_v24, 4  ;;  %v1263_v49 = vrot.slane %v1255_v26, 3  ;;  %v1236_v50 = vld [vmem:[#allocation2 + $0x3] sm:$0x1]  ;;  %v1246_v53 = vrot.slane %v4377_v14, 6  ;;  %v2171_v33 = vrot.slane %v4371_v7, 2  ;;  %v634_v23 = vpop.permute.xlu1 %633 }
 0x103   : > { %v4400_v51 = vld [vmem:[#allocation2 + $0x19] sm:$0x1]  ;;  %v1265_v57 = vrot.slane %v1256_v36, 2  ;;  %v2173_v59 = vrot.slane %v4386_v17, 1  ;;  %v4405_v60 = vld [vmem:[#allocation2 + $0xc] sm:$0x1]  ;;  %v612_v20 = vpop.permute.xlu0 %611  ;;  %v1245_v24 = vsel %vm702_vm3, %v1244_v39, %v1236_v50 }
 0x104   : > { %v4407_v61 = vld [vmem:[#allocation2 + $0x24] sm:$0x1]  ;;  %v1248_v12 = vrot.slane %v1239_v42, 5  ;;  %v4411_v13 = vld [vmem:[#allocation2 + $0x3c] sm:$0x1]  ;;  %v2740_v14 = vrot.slane %v4394_v46, 7  ;;  %1231 = vrot.lane.b32.xlu1 %v1230_v10, %s3863_s24  ;;  %1211 = vrot.lane.b32.xlu0 %v1210_v11, %s3864_s25  ;;  %v1264_v29 = vsel %vm723_vm4, %v1263_v49, %v1262_v47  ;;  %v1247_v39 = vsel %vm705_vm5, %v1246_v53, %v1245_v24 }
 0x105   : > { %v4414_v19 = vld [vmem:[#allocation2 + $0x31] sm:$0x1]  ;;  %v1257_v21 = vld [vmem:[#allocation2 + $0x4c] sm:$0x1]  ;;  %v4421_v26 = vld [vmem:[#allocation2 + $0x3c] sm:$0x1]  ;;  %v1266_v16 = vsel %vm726_vm6, %v1265_v57, %v1264_v29  ;;  %v2172_v2 = vsel %vm726_vm6, %v2171_v33, %v2170_v54 }
 0x106   : > { %v4423_v28 = vld [vmem:[#allocation2 + $0x3c] sm:$0x1]  ;;  %620 = vst.msk [vmem:[#allocation2 + $0x55] sm:$0x1] %vm328_vm2, %v612_v20  ;;  %643 = vst.msk [vmem:[#allocation2 + $0x3e] sm:$0x1] %vm328_vm2, %v634_v23  ;;  %v1249_v49 = vsel %vm708_vm7, %v1248_v12, %v1247_v39  ;;  %v656_v10 = vpop.permute.xlu1 %655  ;;  %v2135_v12 = vsel %vm723_vm4, %v2134_v9, %v2133_v18 }
 0x107   : > { %v1267_v62 = vrot.slane %v1257_v21, 1  ;;  %v2721_v30 = vrot.slane %v4405_v60, 4  ;;  %v2722_v36 = vrot.slane %v4407_v61, 3  ;;  %v4430_v25 = vld [vmem:[#allocation2 + $0xd] sm:$0x1]  ;;  %v2705_v31 = vrot.slane %v4411_v13, 6  ;;  %v654_v53 = vpop.permute.xlu0 %653 }
 0x108   : > { %v4435_v1 = vld [vmem:[#allocation2 + $0x25] sm:$0x1]  ;;  %v4437_v8 = vld [vmem:[#allocation2 + $0x49] sm:$0x1]  ;;  %v779_v42 = vrot.slane %v4400_v51, 7  ;;  %v2742_v37 = vrot.slane %v4421_v26, 6  ;;  %1250 = vrot.lane.b32.xlu0 %v1249_v49, %s3865_s28  ;;  %v2137_v4 = vsel %vm726_vm6, %v2136_v48, %v2135_v12 }
 0x109   : > { %v1268_v47 = vsel %vm729_vm8, %v1267_v62, %v1266_v16  ;;  %v2107_v50 = vld [vmem:[#allocation2 + $0x9] sm:$0x1]  ;;  %v2724_v55 = vrot.slane %v4423_v28, 2  ;;  %v4444_v57 = vld [vmem:[#allocation2 + $0x1] sm:$0x1]  ;;  %v2758_v13 = vrot.slane %v4430_v25, 4  ;;  %v2723_v17 = vsel %vm723_vm4, %v2722_v36, %v2721_v30 }
 0x10a   : > { %1269 = vrot.lane.b32.xlu1 %v1268_v47, %s3864_s25  ;;  %v2698_v11 = vld [vmem:[#allocation2 + $0x54] sm:$0x1]  ;;  %v781_v20 = vrot.slane %v4414_v19, 6  ;;  %v4450_v23 = vld [vmem:[#allocation2 + $0x19] sm:$0x1]  ;;  %v2116_v21 = vsel %vm702_vm3, %v2115_v35, %v2107_v50  ;;  %v2759_v29 = vrot.slane %v4435_v1, 3  ;;  %v2139_v35 = vsel %vm729_vm8, %v2138_v15, %v2137_v4  ;;  %v442_v50 = vpop.permute.xlu1 %441 }
 0x10b   : > { %665 = vst.msk [vmem:[#allocation2 + $0xf] sm:$0x1] %vm328_vm2, %v654_v53  ;;  %666 = vst.msk [vmem:[#allocation2 + $0x27] sm:$0x1] %vm328_vm2, %v656_v10  ;;  %v2695_v24 = vld [vmem:[#allocation2 + $0xc] sm:$0x1]  ;;  %v2118_v18 = vsel %vm705_vm5, %v2117_v41, %v2116_v21  ;;  %v420_v49 = vpop.permute.xlu0 %419  ;;  %v2725_v60 = vsel %vm726_vm6, %v2724_v55, %v2723_v17 }
 0x10c   : > { %v783_v62 = vrot.slane %v4437_v8, 5  ;;  %v4464_v16 = vld [vmem:[#allocation2 + $0x31] sm:$0x1]  ;;  %v4466_v39 = vld [vmem:[#allocation2 + $0x49] sm:$0x1]  ;;  %v2120_v34 = vsel %vm708_vm7, %v2119_v43, %v2118_v18  ;;  %v2707_v47 = vrot.slane %v2698_v11, 5  ;;  %v2704_v44 = vsel %vm702_vm3, %v2703_v45, %v2695_v24 }
 0x10d   : > { %v4476_v9 = vld [vmem:[#allocation2 + $0x1a] sm:$0x1]  ;;  %v4478_v52 = vld [vmem:[#allocation2 + $0x32] sm:$0x1]  ;;  %v797_v48 = vrot.slane %v4444_v57, 4  ;;  %2121 = vrot.lane.b32.xlu0 %v2120_v34, %s3856_s9  ;;  %v798_v53 = vrot.slane %v4450_v23, 3  ;;  %v2706_v32 = vsel %vm705_vm5, %v2705_v31, %v2704_v44 }
 0x10e   : > { %v4487_v56 = vld [vmem:[#allocation2 + $0x4a] sm:$0x1]  ;;  %v4489_v41 = vld [vmem:[#allocation2 + $0x1c] sm:$0x1]  ;;  %2140 = vrot.lane.b32.xlu1 %v2139_v35, %s3855_s7  ;;  %v2735_v15 = vld [vmem:[#allocation2 + $0x54] sm:$0x1]  ;;  %v2708_v18 = vsel %vm708_vm7, %v2707_v47, %v2706_v32  ;;  %v2174_v35 = vsel %vm729_vm8, %v2173_v59, %v2172_v2 }
 0x10f   : > { %v2716_v43 = vld [vmem:[#allocation2 + $0x54] sm:$0x1]  ;;  %v800_v10 = vrot.slane %v4464_v16, 2  ;;  %428 = vst.msk [vmem:[#allocation2 + $0x4d] sm:$0x1] %vm328_vm2, %v420_v49  ;;  %v802_v0 = vrot.slane %v4466_v39, 1  ;;  %v462_v33 = vpop.permute.xlu0 %461 }
 0x110   : > { %451 = vst.msk [vmem:[#allocation2 + $0x36] sm:$0x1] %vm328_vm2, %v442_v50  ;;  %v2732_v11 = vld [vmem:[#allocation2 + $0xc] sm:$0x1]  ;;  %v832_v45 = vrot.slane %v4474_v38, 4  ;;  %v833_v58 = vrot.slane %v4476_v9, 3  ;;  %v464_v50 = vpop.permute.xlu1 %463 }
 0x111   : > { %v835_v40 = vrot.slane %v4478_v52, 2  ;;  %v837_v12 = vrot.slane %v4487_v56, 1  ;;  %v4514_v21 = vld [vmem:[#allocation2 + $0x34] sm:$0x1]  ;;  %v1373_v24 = vrot.slane %v4489_v41, 7  ;;  %v2744_v34 = vrot.slane %v2735_v15, 5  ;;  %2175 = vrot.lane.b32.xlu0 %v2174_v35, %s3856_s9 }
 0x112   : > { %v4517_v4 = vld [vmem:[#allocation2 + $0x4] sm:$0x1]  ;;  %v2726_v31 = vrot.slane %v2716_v43, 1  ;;  %v2752_v49 = vld [vmem:[#allocation2 + $0x3d] sm:$0x1]  ;;  %2709 = vrot.lane.b32.xlu1 %v2708_v18, %s3866_s29  ;;  %v2741_v47 = vsel %vm702_vm3, %v2740_v14, %v2732_v11  ;;  %v1375_v15 = vrot.slane %v4514_v21, 6  ;;  %v834_v19 = vsel %vm723_vm4, %v833_v58, %v832_v45 }
 0x113   : > { %v4523_v7 = vld [vmem:[#allocation2 + $0x1c] sm:$0x1]  ;;  %v2753_v59 = vld [vmem:[#allocation2 + $0x55] sm:$0x1]  ;;  %v4535_v44 = vld [vmem:[#allocation2 + $0x34] sm:$0x1]  ;;  %v2743_v46 = vsel %vm705_vm5, %v2742_v37, %v2741_v47  ;;  %v636_v2 = vpop.permute.xlu0 %635  ;;  %v836_v23 = vsel %vm726_vm6, %v835_v40, %v834_v19 }
 0x114   : > { %v4537_v54 = vld [vmem:[#allocation2 + $0x1c] sm:$0x1]  ;;  %473 = vst.msk [vmem:[#allocation2 + $0x7] sm:$0x1] %vm328_vm2, %v462_v33  ;;  %474 = vst.msk [vmem:[#allocation2 + $0x1f] sm:$0x1] %vm328_vm2, %v464_v50  ;;  %v2745_v26 = vsel %vm708_vm7, %v2744_v34, %v2743_v46  ;;  %v2727_v37 = vsel %vm729_vm8, %v2726_v31, %v2725_v60  ;;  %v658_v18 = vpop.permute.xlu1 %657  ;;  %v2760_v50 = vsel %vm723_vm4, %v2759_v29, %v2758_v13 }
 0x115   : > { %v4547_v61 = vld [vmem:[#allocation2 + $0x34] sm:$0x1]  ;;  %v4549_v14 = vld [vmem:[#allocation2 + $0x5] sm:$0x1]  ;;  %v4551_v30 = vld [vmem:[#allocation2 + $0x1d] sm:$0x1]  ;;  %2728 = vrot.lane.b32.xlu0 %v2727_v37, %s3868_s5  ;;  %v799_v13 = vsel %vm723_vm4, %v798_v53, %v797_v48 }
 0x116   : > { %v2761_v36 = vrot.slane %v2752_v49, 2  ;;  %v1392_v43 = vrot.slane %v4517_v4, 4  ;;  %v1393_v11 = vrot.slane %v4523_v7, 3  ;;  %v2763_v28 = vrot.slane %v2753_v59, 1  ;;  %v771_v32 = vld [vmem:[#allocation2 + $0x1] sm:$0x1]  ;;  %2746 = vrot.lane.b32.xlu1 %v2745_v26, %s3867_s30 }
 0x117   : > { %v1395_v55 = vrot.slane %v4535_v44, 2  ;;  %v1412_v35 = vrot.slane %v4537_v54, 7  ;;  %v1414_v49 = vrot.slane %v4547_v61, 6  ;;  %v1430_v34 = vrot.slane %v4549_v14, 4  ;;  %v4565_v33 = vld [vmem:[#allocation2 + $0x22] sm:$0x1]  ;;  %v678_v8 = vpop.permute.xlu0 %677 }
 0x118   : > { %v1431_v31 = vrot.slane %v4551_v30, 3  ;;  %644 = vst.msk [vmem:[#allocation2 + $0x56] sm:$0x1] %vm328_vm2, %v636_v2  ;;  %667 = vst.msk [vmem:[#allocation2 + $0x3f] sm:$0x1] %vm328_vm2, %v658_v18  ;;  %v780_v47 = vsel %vm702_vm3, %v779_v42, %v771_v32  ;;  %v2762_v60 = vsel %vm726_vm6, %v2761_v36, %v2760_v50  ;;  %v801_v57 = vsel %vm726_vm6, %v800_v10, %v799_v13 }
 0x119   : > { %v4577_v17 = vld [vmem:[#allocation2 + $0x3a] sm:$0x1]  ;;  %v4579_v59 = vld [vmem:[#allocation2 + $0x52] sm:$0x1]  ;;  %v4581_v46 = vld [vmem:[#allocation2 + $0xa] sm:$0x1]  ;;  %v782_v25 = vsel %vm705_vm5, %v781_v20, %v780_v47  ;;  %v2764_v51 = vsel %vm729_vm8, %v2763_v28, %v2762_v60  ;;  %v803_v18 = vsel %vm729_vm8, %v802_v0, %v801_v57  ;;  %v838_v50 = vsel %vm729_vm8, %v837_v12, %v836_v23 }
 0x11a   : > { %v1368_v26 = vld [vmem:[#allocation2 + $0x4c] sm:$0x1]  ;;  %v4587_v37 = vld [vmem:[#allocation2 + $0x22] sm:$0x1]  ;;  %v784_v42 = vsel %vm708_vm7, %v783_v62, %v782_v25  ;;  %v4605_v29 = vld [vmem:[#allocation2 + $0x35] sm:$0x1]  ;;  %2765 = vrot.lane.b32.xlu0 %v2764_v51, %s3866_s29  ;;  %v680_v62 = vpop.permute.xlu1 %679  ;;  %v1394_v13 = vsel %vm723_vm4, %v1393_v11, %v1392_v43 }
 0x11b   : > { %v1387_v1 = vld [vmem:[#allocation2 + $0x4c] sm:$0x1]  ;;  %v4607_v36 = vld [vmem:[#allocation2 + $0x3a] sm:$0x1]  ;;  %785 = vrot.lane.b32.xlu1 %v784_v42, %s3856_s9  ;;  %v2279_v38 = vrot.slane %v4565_v33, 7  ;;  %v2281_v9 = vrot.slane %v4577_v17, 6 }
 0x11c   : > { %v4603_v20 = vld [vmem:[#allocation2 + $0x4c] sm:$0x1]  ;;  %v4619_v48 = vld [vmem:[#allocation2 + $0x52] sm:$0x1]  ;;  %v4621_v53 = vld [vmem:[#allocation2 + $0x23] sm:$0x1] }
 0x11d   : > { %689 = vst.msk [vmem:[#allocation2 + $0x10] sm:$0x1] %vm328_vm2, %v678_v8  ;;  %690 = vst.msk [vmem:[#allocation2 + $0x28] sm:$0x1] %vm328_vm2, %v680_v62  ;;  %v1377_v16 = vrot.slane %v1368_v26, 5  ;;  %v1397_v45 = vrot.slane %v1387_v1, 1  ;;  %v444_v1 = vpop.permute.xlu0 %443 }
 0x11e   : > { %v2283_v10 = vrot.slane %v4579_v59, 5  ;;  %v2297_v52 = vrot.slane %v4581_v46, 4  ;;  %v1365_v58 = vld [vmem:[#allocation2 + $0x4] sm:$0x1]  ;;  %v1416_v40 = vrot.slane %v4603_v20, 5  ;;  %v1433_v28 = vrot.slane %v4605_v29, 2  ;;  %804 = vrot.lane.b32.xlu0 %v803_v18, %s3855_s7  ;;  %v466_v39 = vpop.permute.xlu1 %465 }
 0x11f   : > { %v2298_v32 = vrot.slane %v4587_v37, 3  ;;  %v2300_v2 = vrot.slane %v4607_v36, 2  ;;  %v2302_v47 = vrot.slane %v4619_v48, 1  ;;  %v4638_v60 = vld [vmem:[#allocation2 + $0x3b] sm:$0x1]  ;;  %v2316_v26 = vrot.slane %v4621_v53, 7  ;;  %839 = vrot.lane.b32.xlu1 %v838_v50, %s3856_s9 }
 0x120   : > { %v4640_v25 = vld [vmem:[#allocation2 + $0x53] sm:$0x1]  ;;  %v1404_v51 = vld [vmem:[#allocation2 + $0x4] sm:$0x1]  ;;  %v1425_v0 = vld [vmem:[#allocation2 + $0x4d] sm:$0x1]  ;;  %v1374_v12 = vsel %vm702_vm3, %v1373_v24, %v1365_v58  ;;  %v1396_v24 = vsel %vm726_vm6, %v1395_v55, %v1394_v13 }
 0x121   : > { %v4645_v42 = vld [vmem:[#allocation2 + $0xb] sm:$0x1]  ;;  %v4647_v56 = vld [vmem:[#allocation2 + $0x23] sm:$0x1]  ;;  %452 = vst.msk [vmem:[#allocation2 + $0x4e] sm:$0x1] %vm328_vm2, %v444_v1  ;;  %v1376_v41 = vsel %vm705_vm5, %v1375_v15, %v1374_v12  ;;  %v1398_v23 = vsel %vm729_vm8, %v1397_v45, %v1396_v24  ;;  %v660_v55 = vpop.permute.xlu0 %659 }
 0x122   : > { %475 = vst.msk [vmem:[#allocation2 + $0x37] sm:$0x1] %vm328_vm2, %v466_v39  ;;  %v4659_v19 = vld [vmem:[#allocation2 + $0x3b] sm:$0x1]  ;;  %v4661_v29 = vld [vmem:[#allocation2 + $0x53] sm:$0x1]  ;;  %v1378_v57 = vsel %vm708_vm7, %v1377_v16, %v1376_v41  ;;  %v682_v45 = vpop.permute.xlu1 %681  ;;  %v1413_v39 = vsel %vm702_vm3, %v1412_v35, %v1404_v51 }
 0x123   : > { %v4663_v8 = vld [vmem:[#allocation2 + $0x25] sm:$0x1]  ;;  %v2318_v4 = vrot.slane %v4638_v60, 6  ;;  %v2320_v7 = vrot.slane %v4640_v25, 5  ;;  %v4673_v43 = vld [vmem:[#allocation2 + $0x3d] sm:$0x1]  ;;  %1379 = vrot.lane.b32.xlu0 %v1378_v57, %s3866_s29  ;;  %1399 = vrot.lane.b32.xlu1 %v1398_v23, %s3868_s5  ;;  %v1415_v54 = vsel %vm705_vm5, %v1414_v49, %v1413_v39  ;;  %v2299_v49 = vsel %vm723_vm4, %v2298_v32, %v2297_v52 }
 0x124   : > { %v4675_v11 = vld [vmem:[#allocation2 + $0x55] sm:$0x1]  ;;  %v1435_v62 = vrot.slane %v1425_v0, 1  ;;  %v2334_v21 = vrot.slane %v4645_v42, 4  ;;  %v4680_v15 = vld [vmem:[#allocation2 + $0xd] sm:$0x1]  ;;  %v1432_v0 = vsel %vm723_vm4, %v1431_v31, %v1430_v34  ;;  %v1417_v51 = vsel %vm708_vm7, %v1416_v40, %v1415_v54 }
 0x125   : > { %v4682_v44 = vld [vmem:[#allocation2 + $0x25] sm:$0x1]  ;;  %v2271_v58 = vld [vmem:[#allocation2 + $0xa] sm:$0x1]  ;;  %v2335_v18 = vrot.slane %v4647_v56, 3  ;;  %v2337_v50 = vrot.slane %v4659_v19, 2  ;;  %v1434_v14 = vsel %vm726_vm6, %v1433_v28, %v1432_v0  ;;  %v468_v20 = vpop.permute.xlu0 %467  ;;  %v2301_v46 = vsel %vm726_vm6, %v2300_v2, %v2299_v49 }
 0x126   : > { %v2339_v16 = vrot.slane %v4661_v29, 1  ;;  %v2869_v1 = vrot.slane %v4663_v8, 7  ;;  %668 = vst.msk [vmem:[#allocation2 + $0x57] sm:$0x1] %vm328_vm2, %v660_v55  ;;  %691 = vst.msk [vmem:[#allocation2 + $0x40] sm:$0x1] %vm328_vm2, %v682_v45  ;;  %v1436_v23 = vsel %vm729_vm8, %v1435_v62, %v1434_v14  ;;  %v2280_v61 = vsel %vm702_vm3, %v2279_v38, %v2271_v58  ;;  %v684_v37 = vpop.permute.xlu1 %683 }
 0x127   : > { %v2871_v12 = vrot.slane %v4673_v43, 6  ;;  %v2873_v13 = vrot.slane %v4675_v11, 5  ;;  %v4702_v41 = vld [vmem:[#allocation2 + $0x3d] sm:$0x1]  ;;  %v4704_v24 = vld [vmem:[#allocation2 + $0x55] sm:$0x1]  ;;  %1418 = vrot.lane.b32.xlu0 %v1417_v51, %s3867_s30  ;;  %1437 = vrot.lane.b32.xlu1 %v1436_v23, %s3866_s29  ;;  %v2282_v33 = vsel %vm705_vm5, %v2281_v9, %v2280_v61  ;;  %v2303_v5 = vsel %vm729_vm8, %v2302_v47, %v2301_v46 }
 0x128   : > { %v2037_v57 = vld [vmem:[#allocation2 + $0x8] sm:$0x1]  ;;  %v2887_v30 = vrot.slane %v4680_v15, 4  ;;  %v2888_v35 = vrot.slane %v4682_v44, 3  ;;  %v4712_v34 = vld [vmem:[#allocation2 + $0x25] sm:$0x1]  ;;  %v2284_v62 = vsel %vm708_vm7, %v2283_v10, %v2282_v33  ;;  %v2336_v49 = vsel %vm723_vm4, %v2335_v18, %v2334_v21 }
 0x129   : > { %v4714_v31 = vld [vmem:[#allocation2 + $0x3d] sm:$0x1]  ;;  %v4728_v28 = vld [vmem:[#allocation2 + $0x55] sm:$0x1]  ;;  %v4730_v15 = vld [vmem:[#allocation2 + $0xe] sm:$0x1]  ;;  %v2046_v32 = vsel %vm702_vm3, %v2045_v22, %v2037_v57  ;;  %v732_v57 = vpop.permute.xlu0 %731 }
 0x12a   : > { %v4732_v44 = vld [vmem:[#allocation2 + $0x26] sm:$0x1]  ;;  %v4742_v38 = vld [vmem:[#allocation2 + $0x3e] sm:$0x1]  ;;  %v4744_v52 = vld [vmem:[#allocation2 + $0x1a] sm:$0x1]  ;;  %v751_v47 = vpop.permute.xlu1 %750  ;;  %v2048_v23 = vsel %vm705_vm5, %v2047_v3, %v2046_v32  ;;  %v2889_v56 = vsel %vm723_vm4, %v2888_v35, %v2887_v30 }
 0x12b   : > { %v4746_v40 = vld [vmem:[#allocation2 + $0x32] sm:$0x1]  ;;  %476 = vst.msk [vmem:[#allocation2 + $0x4f] sm:$0x1] %vm328_vm2, %v468_v20  ;;  %v2890_v17 = vrot.slane %v4702_v41, 2  ;;  %v2892_v9 = vrot.slane %v4704_v24, 1  ;;  %2285 = vrot.lane.b32.xlu0 %v2284_v62, %s3857_s10  ;;  %2304 = vrot.lane.b32.xlu1 %v2303_v5, %s3859_s14 }
 0x12c   : > { %692 = vst.msk [vmem:[#allocation2 + $0x58] sm:$0x1] %vm328_vm2, %v684_v37  ;;  %v2906_v36 = vrot.slane %v4712_v34, 7  ;;  %v2908_v2 = vrot.slane %v4714_v31, 6  ;;  %v2308_v22 = vld [vmem:[#allocation2 + $0xb] sm:$0x1] }
 0x12d   : > { %v2910_v55 = vrot.slane %v4728_v28, 5  ;;  %v2924_v58 = vrot.slane %v4730_v15, 4  ;;  %v4765_v45 = vld [vmem:[#allocation2 + $0x4a] sm:$0x1]  ;;  %v4767_v39 = vld [vmem:[#allocation2 + $0x2] sm:$0x1]  ;;  %v2317_v61 = vsel %vm702_vm3, %v2316_v26, %v2308_v22  ;;  %v2338_v26 = vsel %vm726_vm6, %v2337_v50, %v2336_v49 }
 0x12e   : > { %v2861_v0 = vld [vmem:[#allocation2 + $0xd] sm:$0x1]  ;;  %v2925_v41 = vrot.slane %v4732_v44, 3  ;;  %v2927_v59 = vrot.slane %v4742_v38, 2  ;;  %v945_v10 = vrot.slane %v4744_v52, 7  ;;  %v947_v48 = vrot.slane %v4746_v40, 6 }
 0x12f   : > { %v4775_v54 = vld [vmem:[#allocation2 + $0x1a] sm:$0x1]  ;;  %v4777_v14 = vld [vmem:[#allocation2 + $0x32] sm:$0x1]  ;;  %v4779_v51 = vld [vmem:[#allocation2 + $0x4a] sm:$0x1]  ;;  %v2319_v53 = vsel %vm705_vm5, %v2318_v4, %v2317_v61  ;;  %v2870_v42 = vsel %vm702_vm3, %v2869_v1, %v2861_v0  ;;  %v2340_v19 = vsel %vm729_vm8, %v2339_v16, %v2338_v26  ;;  %v2891_v4 = vsel %vm726_vm6, %v2890_v17, %v2889_v56 }
 0x130   : > { %753 = vst.msk [vmem:[#allocation3 + $0x10] sm:$0xf] %vm5740_vm9, %v751_v47  ;;  %v949_v20 = vrot.slane %v4765_v45, 5  ;;  %v963_v63 = vrot.slane %v4767_v39, 4  ;;  %v4796_v33 = vld [vmem:[#allocation2 + $0x1b] sm:$0x1]  ;;  %v2321_v60 = vsel %vm708_vm7, %v2320_v7, %v2319_v53  ;;  %v2872_v8 = vsel %vm705_vm5, %v2871_v12, %v2870_v42  ;;  %2341 = vrot.lane.b32.xlu1 %v2340_v19, %s3857_s10 }
 0x131   : > { %735 = vst.msk [vmem:[#allocation3] sm:$0xf0] %vm734_vm10, %v732_v57  ;;  %v4798_v3 = vld [vmem:[#allocation2 + $0x33] sm:$0x1]  ;;  %v2898_v21 = vld [vmem:[#allocation2 + $0xd] sm:$0x1]  ;;  %2322 = vrot.lane.b32.xlu0 %v2321_v60, %s3858_s11  ;;  %v2874_v47 = vsel %vm708_vm7, %v2873_v13, %v2872_v8  ;;  %v2893_v57 = vsel %vm729_vm8, %v2892_v9, %v2891_v4  ;;  %v2926_v13 = vsel %vm723_vm4, %v2925_v41, %v2924_v58 }
 0x132   : > { %v4810_v18 = vld [vmem:[#allocation2 + $0x4b] sm:$0x1]  ;;  %v4812_v46 = vld [vmem:[#allocation2 + $0x3] sm:$0x1]  ;;  %v4814_v37 = vld [vmem:[#allocation2 + $0x1b] sm:$0x1]  ;;  %v2928_v15 = vsel %vm726_vm6, %v2927_v59, %v2926_v13 }
 0x133   : > { %v2919_v50 = vld [vmem:[#allocation2 + $0x56] sm:$0x1]  ;;  %v4826_v1 = vld [vmem:[#allocation2 + $0x33] sm:$0x1]  ;;  %v4828_v30 = vld [vmem:[#allocation2 + $0x4b] sm:$0x1] }
 0x134   : > { %v964_v25 = vrot.slane %v4775_v54, 3  ;;  %v966_v29 = vrot.slane %v4777_v14, 2  ;;  %v968_v7 = vrot.slane %v4779_v51, 1  ;;  %v982_v43 = vrot.slane %v4796_v33, 7  ;;  %v2040_v16 = vld [vmem:[#allocation2 + $0x50] sm:$0x1]  ;;  %2894 = vrot.lane.b32.xlu1 %v2893_v57, %s3870_s8 }
 0x135   : > { %v984_v12 = vrot.slane %v4798_v3, 6  ;;  %v986_v35 = vrot.slane %v4810_v18, 5  ;;  %v1000_v32 = vrot.slane %v4812_v46, 4  ;;  %v2049_v17 = vrot.slane %v2040_v16, 5  ;;  %v4851_v14 = vld [vmem:[#allocation2 + $0x1d] sm:$0x1]  ;;  %2875 = vrot.lane.b32.xlu0 %v2874_v47, %s3869_s6 }
 0x136   : > { %v2929_v62 = vrot.slane %v2919_v50, 1  ;;  %v1001_v5 = vrot.slane %v4814_v37, 3  ;;  %v1003_v22 = vrot.slane %v4826_v1, 2  ;;  %v1005_v0 = vrot.slane %v4828_v30, 1  ;;  %v4853_v61 = vld [vmem:[#allocation2 + $0x35] sm:$0x1] }
 0x137   : > { %v2907_v54 = vsel %vm702_vm3, %v2906_v36, %v2898_v21  ;;  %v4855_v49 = vld [vmem:[#allocation2 + $0x4d] sm:$0x1]  ;;  %v2050_v33 = vsel %vm708_vm7, %v2049_v17, %v2048_v23  ;;  %v4868_v24 = vld [vmem:[#allocation2 + $0x5] sm:$0x1]  ;;  %v4870_v34 = vld [vmem:[#allocation2 + $0x1d] sm:$0x1]  ;;  %v965_v50 = vsel %vm723_vm4, %v964_v25, %v963_v63 }
 0x138   : > { %v2909_v11 = vsel %vm705_vm5, %v2908_v2, %v2907_v54  ;;  %v4872_v9 = vld [vmem:[#allocation2 + $0x35] sm:$0x1]  ;;  %2052 = vst.msk [vmem:[#allocation3 + $0x8] sm:$0xf] %vm5740_vm9, %v2050_v33  ;;  %v4881_v36 = vld [vmem:[#allocation2 + $0x4d] sm:$0x1]  ;;  %v2930_v28 = vsel %vm729_vm8, %v2929_v62, %v2928_v15 }
 0x139   : > { %v2911_v31 = vsel %vm708_vm7, %v2910_v55, %v2909_v11  ;;  %v2091_v44 = vld [vmem:[#allocation2 + $0x21] sm:$0x1]  ;;  %v2092_v2 = vld [vmem:[#allocation2 + $0x39] sm:$0x1]  ;;  %v937_v58 = vld [vmem:[#allocation2 + $0x2] sm:$0x1]  ;;  %2931 = vrot.lane.b32.xlu1 %v2930_v28, %s3869_s6  ;;  %v2069_v11 = vpop.permute.xlu0 %2068 }
 0x13a   : > { %v1541_v41 = vrot.slane %v4851_v14, 7  ;;  %v1543_v23 = vrot.slane %v4853_v61, 6  ;;  %v2093_v53 = vld [vmem:[#allocation2 + $0x51] sm:$0x1]  ;;  %v2099_v26 = vrot.slane %v2091_v44, 3  ;;  %v2101_v42 = vrot.slane %v2092_v2, 2  ;;  %2912 = vrot.lane.b32.xlu0 %v2911_v31, %s3871_s12 }
 0x13b   : > { %v974_v56 = vld [vmem:[#allocation2 + $0x3] sm:$0x1]  ;;  %v1545_v55 = vrot.slane %v4855_v49, 5  ;;  %v1560_v38 = vrot.slane %v4868_v24, 4  ;;  %v2103_v59 = vrot.slane %v2093_v53, 1  ;;  %v1561_v37 = vrot.slane %v4870_v34, 3 }
 0x13c   : > { %v1533_v21 = vld [vmem:[#allocation2 + $0x5] sm:$0x1]  ;;  %v1563_v60 = vrot.slane %v4872_v9, 2  ;;  %v1565_v19 = vrot.slane %v4881_v36, 1  ;;  %v2100_v8 = vsel %vm723_vm4, %v2099_v26, %v2098_v27  ;;  %v946_v4 = vsel %vm702_vm3, %v945_v10, %v937_v58  ;;  %v4902_v16 = vld [vmem:[#allocation2 + $0x1d] sm:$0x1] }
 0x13d   : > { %v4904_v17 = vld [vmem:[#allocation2 + $0x35] sm:$0x1]  ;;  %v4906_v62 = vld [vmem:[#allocation2 + $0x4d] sm:$0x1]  ;;  %v2102_v47 = vsel %vm726_vm6, %v2101_v42, %v2100_v8  ;;  %v948_v6 = vsel %vm705_vm5, %v947_v48, %v946_v4  ;;  %v967_v27 = vsel %vm726_vm6, %v966_v29, %v965_v50  ;;  %v983_v52 = vsel %vm702_vm3, %v982_v43, %v974_v56  ;;  %v4914_v10 = vld [vmem:[#allocation2 + $0x6] sm:$0x1] }
 0x13e   : > { %v4916_v39 = vld [vmem:[#allocation2 + $0x1e] sm:$0x1]  ;;  %v4918_v63 = vld [vmem:[#allocation2 + $0x36] sm:$0x1]  ;;  %v2104_v25 = vsel %vm729_vm8, %v2103_v59, %v2102_v47  ;;  %v950_v57 = vsel %vm708_vm7, %v949_v20, %v948_v6  ;;  %v969_v40 = vsel %vm729_vm8, %v968_v7, %v967_v27  ;;  %v985_v48 = vsel %vm705_vm5, %v984_v12, %v983_v52  ;;  %v693_v43 = vld [vmem:[#allocation2] sm:$0x1] }
 0x13f   : > { %v1002_v29 = vsel %vm723_vm4, %v1001_v5, %v1000_v32  ;;  %2106 = vst.msk [vmem:[#allocation3 + $0x18] sm:$0xf0] %vm734_vm10, %v2104_v25  ;;  %v694_v54 = vld [vmem:[#allocation2 + $0x18] sm:$0x1]  ;;  %v695_v14 = vld [vmem:[#allocation2 + $0x30] sm:$0x1]  ;;  %951 = vrot.lane.b32.xlu0 %v950_v57, %s3857_s10  ;;  %970 = vrot.lane.b32.xlu1 %v969_v40, %s3859_s14  ;;  %v987_v45 = vsel %vm708_vm7, %v986_v35, %v985_v48 }
 0x140   : > { %v1004_v51 = vsel %vm726_vm6, %v1003_v22, %v1002_v29  ;;  %v4942_v20 = vld [vmem:[#allocation2 + $0x4e] sm:$0x1]  ;;  %v696_v3 = vld [vmem:[#allocation2 + $0x48] sm:$0x1]  ;;  %v701_v46 = vrot.slane %v694_v54, 7  ;;  %v704_v7 = vrot.slane %v695_v14, 6  ;;  %v1542_v32 = vsel %vm702_vm3, %v1541_v41, %v1533_v21  ;;  %v2087_v22 = vpop.permute.xlu1 %2086 }
 0x141   : > { %v1006_v12 = vsel %vm729_vm8, %v1005_v0, %v1004_v51  ;;  %v1572_v5 = vld [vmem:[#allocation2 + $0x5] sm:$0x1]  ;;  %v1580_v18 = vrot.slane %v4902_v16, 7  ;;  %v4949_v33 = vld [vmem:[#allocation2 + $0x23] sm:$0x1]  ;;  %v707_v1 = vrot.slane %v696_v3, 5  ;;  %v1544_v26 = vsel %vm705_vm5, %v1543_v23, %v1542_v32 }
 0x142   : > { %v4951_v35 = vld [vmem:[#allocation2 + $0x3b] sm:$0x1]  ;;  %v1582_v13 = vrot.slane %v4904_v17, 6  ;;  %v1584_v31 = vrot.slane %v4906_v62, 5  ;;  %v1598_v30 = vrot.slane %v4914_v10, 4  ;;  %v703_v0 = vsel %vm702_vm3, %v701_v46, %v693_v43  ;;  %s3874_s9 = smov 94  }
 0x143   : > { %v4956_v15 = vld [vmem:[#allocation2 + $0x53] sm:$0x1]  ;;  %2089 = vst.msk [vmem:[#allocation3 + $0x18] sm:$0xf] %vm5740_vm9, %v2087_v22  ;;  %v1599_v44 = vrot.slane %v4916_v39, 3  ;;  %v1601_v2 = vrot.slane %v4918_v63, 2  ;;  %v706_v53 = vsel %vm705_vm5, %v704_v7, %v703_v0  ;;  %988 = vrot.lane.b32.xlu0 %v987_v45, %s3858_s11  ;;  %1007 = vrot.lane.b32.xlu1 %v1006_v12, %s3857_s10  ;;  %v1546_v8 = vsel %vm708_vm7, %v1545_v55, %v1544_v26 }
 0x144   : > { %2071 = vst.msk [vmem:[#allocation3 + $0x8] sm:$0xf0] %vm734_vm10, %v2069_v11  ;;  %v1603_v58 = vrot.slane %v4942_v20, 1  ;;  %v4964_v41 = vld [vmem:[#allocation2 + $0xb] sm:$0x1]  ;;  %v2445_v42 = vrot.slane %v4949_v33, 7  ;;  %v709_v59 = vsel %vm708_vm7, %v707_v1, %v706_v53  ;;  %v1562_v61 = vsel %vm723_vm4, %v1561_v37, %v1560_v38 }
 0x145   : > { %v2447_v28 = vrot.slane %v4951_v35, 6  ;;  %v2456_v56 = vld [vmem:[#allocation2 + $0x23] sm:$0x1]  ;;  %v755_v21 = vld [vmem:[#allocation2 + $0x19] sm:$0x1]  ;;  %v2449_v23 = vrot.slane %v4956_v15, 5  ;;  %v1564_v17 = vsel %vm726_vm6, %v1563_v60, %v1562_v61  ;;  %v1581_v49 = vsel %vm702_vm3, %v1580_v18, %v1572_v5 }
 0x146   : > { %712 = vst.msk [vmem:[#allocation3] sm:$0xf] %vm5740_vm9, %v709_v59  ;;  %v756_v4 = vld [vmem:[#allocation2 + $0x31] sm:$0x1]  ;;  %v757_v50 = vld [vmem:[#allocation2 + $0x49] sm:$0x1]  ;;  %v1566_v38 = vsel %vm729_vm8, %v1565_v19, %v1564_v17  ;;  %v1583_v37 = vsel %vm705_vm5, %v1582_v13, %v1581_v49  ;;  %v1600_v60 = vsel %vm723_vm4, %v1599_v44, %v1598_v30 }
 0x147   : > { %v763_v16 = vrot.slane %v755_v21, 3  ;;  %v2457_v55 = vld [vmem:[#allocation2 + $0x3b] sm:$0x1]  ;;  %v2463_v24 = vrot.slane %v4964_v41, 4  ;;  %v765_v62 = vrot.slane %v756_v4, 2  ;;  %v767_v27 = vrot.slane %v757_v50, 1  ;;  %1547 = vrot.lane.b32.xlu0 %v1546_v8, %s3869_s6  ;;  %1567 = vrot.lane.b32.xlu1 %v1566_v38, %s3870_s8 }
 0x148   : > { %v754_v34 = vld [vmem:[#allocation2 + $0x1] sm:$0x1]  ;;  %v2458_v47 = vld [vmem:[#allocation2 + $0x53] sm:$0x1]  ;;  %v2475_v6 = vld [vmem:[#allocation2 + $0x24] sm:$0x1]  ;;  %v1585_v9 = vsel %vm708_vm7, %v1584_v31, %v1583_v37  ;;  %v1602_v36 = vsel %vm726_vm6, %v1601_v2, %v1600_v60 }
 0x149   : > { %v762_v52 = vrot.slane %v754_v34, 4  ;;  %v2476_v10 = vld [vmem:[#allocation2 + $0x3c] sm:$0x1]  ;;  %v2477_v39 = vld [vmem:[#allocation2 + $0x54] sm:$0x1]  ;;  %v2464_v19 = vrot.slane %v2456_v56, 3  ;;  %v1604_v29 = vsel %vm729_vm8, %v1603_v58, %v1602_v36 }
 0x14a   : > { %v2492_v63 = vld [vmem:[#allocation2 + $0xc] sm:$0x1]  ;;  %v2466_v25 = vrot.slane %v2457_v55, 2  ;;  %v2493_v57 = vld [vmem:[#allocation2 + $0x24] sm:$0x1]  ;;  %v2468_v43 = vrot.slane %v2458_v47, 1 }
 0x14b   : > { %v2494_v40 = vld [vmem:[#allocation2 + $0x3c] sm:$0x1]  ;;  %v764_v48 = vsel %vm723_vm4, %v763_v16, %v762_v52  ;;  %v2482_v54 = vrot.slane %v2475_v6, 7  ;;  %v2495_v14 = vld [vmem:[#allocation2 + $0x54] sm:$0x1]  ;;  %v2484_v3 = vrot.slane %v2476_v10, 6  ;;  %1586 = vrot.lane.b32.xlu0 %v1585_v9, %s3871_s12  ;;  %1605 = vrot.lane.b32.xlu1 %v1604_v29, %s3869_s6  ;;  %v2465_v11 = vsel %vm723_vm4, %v2464_v19, %v2463_v24 }
 0x14c   : > { %v5001_v45 = vld [vmem:[#allocation2 + $0x26] sm:$0x1]  ;;  %v766_v51 = vsel %vm726_vm6, %v765_v62, %v764_v48  ;;  %v2437_v20 = vld [vmem:[#allocation2 + $0xb] sm:$0x1]  ;;  %v2486_v46 = vrot.slane %v2477_v39, 5  ;;  %v2500_v7 = vrot.slane %v2492_v63, 4  ;;  %v2467_v2 = vsel %vm726_vm6, %v2466_v25, %v2465_v11 }
 0x14d   : > { %v768_v12 = vsel %vm729_vm8, %v767_v27, %v766_v51  ;;  %v2446_v32 = vsel %vm702_vm3, %v2445_v42, %v2437_v20  ;;  %v2474_v5 = vld [vmem:[#allocation2 + $0xc] sm:$0x1]  ;;  %v2501_v18 = vrot.slane %v2493_v57, 3  ;;  %v2503_v33 = vrot.slane %v2494_v40, 2  ;;  %v3045_v35 = vld [vmem:[#allocation2 + $0xe] sm:$0x1] }
 0x14e   : > { %v3046_v1 = vld [vmem:[#allocation2 + $0x26] sm:$0x1]  ;;  %770 = vst.msk [vmem:[#allocation3 + $0x10] sm:$0xf0] %vm734_vm10, %v768_v12  ;;  %v2448_v22 = vsel %vm705_vm5, %v2447_v28, %v2446_v32  ;;  %v2505_v13 = vrot.slane %v2495_v14, 1  ;;  %v3035_v15 = vrot.slane %v5001_v45, 7  ;;  %v2469_v26 = vsel %vm729_vm8, %v2468_v43, %v2467_v2  ;;  %v2231_v14 = vpop.permute.xlu1 %2230  ;;  %v2212_v45 = vpop.permute.xlu0 %2211 }
 0x14f   : > { %v3029_v31 = vld [vmem:[#allocation2 + $0x3e] sm:$0x1]  ;;  %v3030_v30 = vld [vmem:[#allocation2 + $0x56] sm:$0x1]  ;;  %v2450_v44 = vsel %vm708_vm7, %v2449_v23, %v2448_v22  ;;  %v3082_v41 = vld [vmem:[#allocation2 + $0xf] sm:$0x1]  ;;  %v2483_v42 = vsel %vm702_vm3, %v2482_v54, %v2474_v5  ;;  %2470 = vrot.lane.b32.xlu1 %v2469_v26, %s3862_s23  ;;  %v2502_v61 = vsel %vm723_vm4, %v2501_v18, %v2500_v7 }
 0x150   : > { %v3047_v0 = vld [vmem:[#allocation2 + $0x3e] sm:$0x1]  ;;  %v3048_v58 = vld [vmem:[#allocation2 + $0x56] sm:$0x1]  ;;  %v3083_v53 = vld [vmem:[#allocation2 + $0x27] sm:$0x1]  ;;  %2451 = vrot.lane.b32.xlu0 %v2450_v44, %s3860_s15  ;;  %v2485_v8 = vsel %vm705_vm5, %v2484_v3, %v2483_v42  ;;  %v2504_v17 = vsel %vm726_vm6, %v2503_v33, %v2502_v61 }
 0x151   : > { %v3053_v28 = vrot.slane %v3045_v35, 4  ;;  %v3054_v56 = vrot.slane %v3046_v1, 3  ;;  %v3065_v59 = vld [vmem:[#allocation2 + $0x26] sm:$0x1]  ;;  %v3066_v21 = vld [vmem:[#allocation2 + $0x3e] sm:$0x1]  ;;  %v2487_v16 = vsel %vm708_vm7, %v2486_v46, %v2485_v8  ;;  %v2506_v34 = vsel %vm729_vm8, %v2505_v13, %v2504_v17 }
 0x152   : > { %v5020_v23 = vld [vmem:[#allocation2 + $0x56] sm:$0x1]  ;;  %v3084_v4 = vld [vmem:[#allocation2 + $0x3f] sm:$0x1]  ;;  %v5022_v50 = vld [vmem:[#allocation2 + $0x57] sm:$0x1] }
 0x153   : > { %v3090_v49 = vrot.slane %v3082_v41, 4  ;;  %v3091_v55 = vrot.slane %v3083_v53, 3  ;;  %v5026_v24 = vld [vmem:[#allocation2 + $0x1b] sm:$0x1]  ;;  %v5028_v62 = vld [vmem:[#allocation2 + $0x33] sm:$0x1]  ;;  %2507 = vrot.lane.b32.xlu1 %v2506_v34, %s3860_s15  ;;  %v3055_v40 = vsel %vm723_vm4, %v3054_v56, %v3053_v28  ;;  %v2268_v41 = vpop.permute.xlu1 %2267  ;;  %v2249_v53 = vpop.permute.xlu0 %2248 }
 0x154   : > { %v3027_v38 = vld [vmem:[#allocation2 + $0xe] sm:$0x1]  ;;  %v3037_v37 = vrot.slane %v3029_v31, 6  ;;  %v3039_v47 = vrot.slane %v3030_v30, 5  ;;  %v3056_v6 = vrot.slane %v3047_v0, 2  ;;  %v3058_v27 = vrot.slane %v3048_v58, 1  ;;  %2488 = vrot.lane.b32.xlu0 %v2487_v16, %s3861_s21 }
 0x155   : > { %v3064_v52 = vld [vmem:[#allocation2 + $0xe] sm:$0x1]  ;;  %v3072_v9 = vrot.slane %v3065_v59, 7  ;;  %v3074_v60 = vrot.slane %v3066_v21, 6  ;;  %v3076_v10 = vrot.slane %v5020_v23, 5  ;;  %v3093_v39 = vrot.slane %v3084_v4, 2 }
 0x156   : > { %v3095_v63 = vrot.slane %v5022_v50, 1  ;;  %v5035_v36 = vld [vmem:[#allocation2 + $0x4b] sm:$0x1]  ;;  %v1113_v19 = vrot.slane %v5026_v24, 7  ;;  %v1115_v25 = vrot.slane %v5028_v62, 6  ;;  %v3036_v57 = vsel %vm702_vm3, %v3035_v15, %v3027_v38  ;;  %s3875_s10 = smov 112  }
 0x157   : > { %v3092_v48 = vsel %vm723_vm4, %v3091_v55, %v3090_v49  ;;  %v1123_v29 = vld [vmem:[#allocation2 + $0x3] sm:$0x1]  ;;  %v1124_v43 = vld [vmem:[#allocation2 + $0x1b] sm:$0x1]  ;;  %v1125_v54 = vld [vmem:[#allocation2 + $0x33] sm:$0x1]  ;;  %v3038_v51 = vsel %vm705_vm5, %v3037_v37, %v3036_v57  ;;  %v3057_v20 = vsel %vm726_vm6, %v3056_v6, %v3055_v40  ;;  %v3073_v5 = vsel %vm702_vm3, %v3072_v9, %v3064_v52  ;;  %v876_v52 = vpop.permute.xlu0 %875 }
 0x158   : > { %v1126_v3 = vld [vmem:[#allocation2 + $0x4b] sm:$0x1]  ;;  %v1143_v46 = vld [vmem:[#allocation2 + $0x1c] sm:$0x1]  ;;  %v5044_v7 = vld [vmem:[#allocation2 + $0x34] sm:$0x1]  ;;  %v3040_v12 = vsel %vm708_vm7, %v3039_v47, %v3038_v51  ;;  %v3059_v32 = vsel %vm729_vm8, %v3058_v27, %v3057_v20  ;;  %v3075_v1 = vsel %vm705_vm5, %v3074_v60, %v3073_v5  ;;  %v3094_v22 = vsel %vm726_vm6, %v3093_v39, %v3092_v48  ;;  %v896_v27 = vpop.permute.xlu1 %895 }
 0x159   : > { %2233 = vst.msk [vmem:[#allocation3 + $0x8] sm:$0xf0] %vm898_vm11, %v2231_v14  ;;  %v5051_v18 = vld [vmem:[#allocation2 + $0x4c] sm:$0x1]  ;;  %v1160_v33 = vld [vmem:[#allocation2 + $0x4] sm:$0x1]  ;;  %3041 = vrot.lane.b32.xlu0 %v3040_v12, %s3872_s13  ;;  %3060 = vrot.lane.b32.xlu1 %v3059_v32, %s3873_s26  ;;  %v3077_v21 = vsel %vm708_vm7, %v3076_v10, %v3075_v1  ;;  %v3096_v8 = vsel %vm729_vm8, %v3095_v63, %v3094_v22 }
 0x15a   : > { %2214 = vst.msk [vmem:[#allocation3 + $0x8] sm:$0xf] %vm5741_vm12, %v2212_v45  ;;  %v1161_v35 = vld [vmem:[#allocation2 + $0x1c] sm:$0x1]  ;;  %v1131_v11 = vrot.slane %v1123_v29, 4  ;;  %v1132_v13 = vrot.slane %v1124_v43, 3 }
 0x15b   : > { %v5057_v31 = vld [vmem:[#allocation2 + $0x34] sm:$0x1]  ;;  %v5059_v30 = vld [vmem:[#allocation2 + $0x4c] sm:$0x1]  ;;  %v1105_v15 = vld [vmem:[#allocation2 + $0x3] sm:$0x1]  ;;  %v915_v12 = vpop.permute.xlu0 %914 }
 0x15c   : > { %v1117_v0 = vrot.slane %v5035_v36, 5  ;;  %v1134_v44 = vrot.slane %v1125_v54, 2  ;;  %v1136_v2 = vrot.slane %v1126_v3, 1  ;;  %v1150_v58 = vrot.slane %v1143_v46, 7  ;;  %v1142_v26 = vld [vmem:[#allocation2 + $0x4] sm:$0x1] }
 0x15d   : > { %v1152_v42 = vrot.slane %v5044_v7, 6  ;;  %v1154_v28 = vrot.slane %v5051_v18, 5  ;;  %v1168_v56 = vrot.slane %v1160_v33, 4  ;;  %v1169_v59 = vrot.slane %v1161_v35, 3  ;;  %2270 = vst.msk [vmem:[#allocation3 + $0x18] sm:$0xf0] %vm898_vm11, %v2268_v41  ;;  %3078 = vrot.lane.b32.xlu0 %v3077_v21, %s3874_s9  ;;  %3097 = vrot.lane.b32.xlu1 %v3096_v8, %s3872_s13  ;;  %v934_v7 = vpop.permute.xlu1 %933 }
 0x15e   : > { %2251 = vst.msk [vmem:[#allocation3 + $0x18] sm:$0xf] %vm5741_vm12, %v2249_v53  ;;  %v1171_v61 = vrot.slane %v5057_v31, 2  ;;  %v1173_v23 = vrot.slane %v5059_v30, 1  ;;  %v1702_v4 = vld [vmem:[#allocation2 + $0x1e] sm:$0x1]  ;;  %v1114_v16 = vsel %vm702_vm3, %v1113_v19, %v1105_v15  ;;  %v1133_v17 = vsel %vm723_vm4, %v1132_v13, %v1131_v11 }
 0x15f   : > { %v5070_v50 = vld [vmem:[#allocation2 + $0x36] sm:$0x1]  ;;  %v5076_v49 = vld [vmem:[#allocation2 + $0x4e] sm:$0x1]  ;;  %v1720_v55 = vld [vmem:[#allocation2 + $0x6] sm:$0x1]  ;;  %v1116_v34 = vsel %vm705_vm5, %v1115_v25, %v1114_v16  ;;  %v1135_v38 = vsel %vm726_vm6, %v1134_v44, %v1133_v17  ;;  %v1151_v10 = vsel %vm702_vm3, %v1150_v58, %v1142_v26  ;;  %v1170_v36 = vsel %vm723_vm4, %v1169_v59, %v1168_v56 }
 0x160   : > { %v1721_v24 = vld [vmem:[#allocation2 + $0x1e] sm:$0x1]  ;;  %v1722_v37 = vld [vmem:[#allocation2 + $0x36] sm:$0x1]  ;;  %v5082_v47 = vld [vmem:[#allocation2 + $0x4e] sm:$0x1]  ;;  %v1118_v9 = vsel %vm708_vm7, %v1117_v0, %v1116_v34  ;;  %v1137_v60 = vsel %vm729_vm8, %v1136_v2, %v1135_v38  ;;  %v1153_v32 = vsel %vm705_vm5, %v1152_v42, %v1151_v10  ;;  %v1172_v5 = vsel %vm726_vm6, %v1171_v61, %v1170_v36  ;;  %v2378_v61 = vpop.permute.xlu0 %2377 }
 0x161   : > { %v5084_v6 = vld [vmem:[#allocation2 + $0x1e] sm:$0x1]  ;;  %v5089_v39 = vld [vmem:[#allocation2 + $0x36] sm:$0x1]  ;;  %v1758_v62 = vld [vmem:[#allocation2 + $0x7] sm:$0x1]  ;;  %1119 = vrot.lane.b32.xlu0 %v1118_v9, %s3860_s15  ;;  %1138 = vrot.lane.b32.xlu1 %v1137_v60, %s3862_s23  ;;  %v1155_v22 = vsel %vm708_vm7, %v1154_v28, %v1153_v32  ;;  %v1174_v11 = vsel %vm729_vm8, %v1173_v23, %v1172_v5  ;;  %v2397_v8 = vpop.permute.xlu1 %2396 }
 0x162   : > { %v1759_v63 = vld [vmem:[#allocation2 + $0x1f] sm:$0x1]  ;;  %899 = vst.msk [vmem:[#allocation3] sm:$0xf0] %vm898_vm11, %v896_v27  ;;  %v1701_v19 = vld [vmem:[#allocation2 + $0x6] sm:$0x1] }
 0x163   : > { %879 = vst.msk [vmem:[#allocation3] sm:$0xf] %vm5741_vm12, %v876_v52  ;;  %v1709_v25 = vrot.slane %v1702_v4, 7  ;;  %v1711_v57 = vrot.slane %v5070_v50, 6  ;;  %v1713_v40 = vrot.slane %v5076_v49, 5  ;;  %v1728_v48 = vrot.slane %v1720_v55, 4 }
 0x164   : > { %v1729_v29 = vrot.slane %v1721_v24, 3  ;;  %v1731_v43 = vrot.slane %v1722_v37, 2  ;;  %v1733_v54 = vrot.slane %v5082_v47, 1  ;;  %v5099_v14 = vld [vmem:[#allocation2 + $0x4e] sm:$0x1]  ;;  %v1748_v45 = vrot.slane %v5084_v6, 7 }
 0x165   : > { %v1750_v51 = vrot.slane %v5089_v39, 6  ;;  %v1760_v20 = vld [vmem:[#allocation2 + $0x37] sm:$0x1]  ;;  %v1766_v3 = vrot.slane %v1758_v62, 4  ;;  %v1767_v46 = vrot.slane %v1759_v63, 3  ;;  %v1710_v13 = vsel %vm702_vm3, %v1709_v25, %v1701_v19  ;;  %1156 = vrot.lane.b32.xlu0 %v1155_v22, %s3861_s21  ;;  %1175 = vrot.lane.b32.xlu1 %v1174_v11, %s3860_s15  ;;  %v2434_v19 = vpop.permute.xlu1 %2433  ;;  %v2415_v25 = vpop.permute.xlu0 %2414  ;;  %s3876_s11 = smov 111  }
 0x166   : > { %v5105_v33 = vld [vmem:[#allocation2 + $0x4f] sm:$0x1]  ;;  %v5107_v35 = vld [vmem:[#allocation2 + $0x24] sm:$0x1]  ;;  %v5109_v1 = vld [vmem:[#allocation2 + $0x3c] sm:$0x1]  ;;  %v1712_v44 = vsel %vm705_vm5, %v1711_v57, %v1710_v13  ;;  %v1730_v18 = vsel %vm723_vm4, %v1729_v29, %v1728_v48 }
 0x167   : > { %936 = vst.msk [vmem:[#allocation3 + $0x10] sm:$0xf0] %vm898_vm11, %v934_v7  ;;  %v1740_v31 = vld [vmem:[#allocation2 + $0x6] sm:$0x1]  ;;  %v5118_v30 = vld [vmem:[#allocation2 + $0x54] sm:$0x1]  ;;  %v1732_v26 = vsel %vm726_vm6, %v1731_v43, %v1730_v18  ;;  %v1768_v42 = vsel %vm723_vm4, %v1767_v46, %v1766_v3  ;;  %v1714_v17 = vsel %vm708_vm7, %v1713_v40, %v1712_v44 }
 0x168   : > { %917 = vst.msk [vmem:[#allocation3 + $0x10] sm:$0xf] %vm5741_vm12, %v915_v12  ;;  %v5120_v15 = vld [vmem:[#allocation2 + $0xc] sm:$0x1]  ;;  %v5122_v0 = vld [vmem:[#allocation2 + $0x24] sm:$0x1]  ;;  %v1734_v49 = vsel %vm729_vm8, %v1733_v54, %v1732_v26  ;;  %v1749_v37 = vsel %vm702_vm3, %v1748_v45, %v1740_v31 }
 0x169   : > { %v1752_v2 = vrot.slane %v5099_v14, 5  ;;  %v1769_v58 = vrot.slane %v1760_v20, 2  ;;  %v5129_v41 = vld [vmem:[#allocation2 + $0x3c] sm:$0x1]  ;;  %v5131_v53 = vld [vmem:[#allocation2 + $0x54] sm:$0x1]  ;;  %1715 = vrot.lane.b32.xlu0 %v1714_v17, %s3872_s13  ;;  %1735 = vrot.lane.b32.xlu1 %v1734_v49, %s3873_s26  ;;  %v1751_v10 = vsel %vm705_vm5, %v1750_v51, %v1749_v37  ;;  %v1064_v31 = vpop.permute.xlu1 %1063 }
 0x16a   : > { %v1771_v28 = vrot.slane %v5105_v33, 1  ;;  %v2611_v56 = vrot.slane %v5107_v35, 7  ;;  %v5137_v59 = vld [vmem:[#allocation2 + $0x25] sm:$0x1]  ;;  %v5139_v21 = vld [vmem:[#allocation2 + $0x3d] sm:$0x1] }
 0x16b   : > { %v2613_v23 = vrot.slane %v5109_v1, 6  ;;  %v2615_v4 = vrot.slane %v5118_v30, 5  ;;  %v2629_v50 = vrot.slane %v5120_v15, 4  ;;  %v2630_v16 = vrot.slane %v5122_v0, 3  ;;  %2399 = vst.msk [vmem:[#allocation3 + $0x8] sm:$0xf0] %vm1066_vm13, %v2397_v8  ;;  %v1044_v30 = vpop.permute.xlu0 %1043 }
 0x16c   : > { %2380 = vst.msk [vmem:[#allocation3 + $0x8] sm:$0xf] %vm1046_vm14, %v2378_v61  ;;  %v2632_v55 = vrot.slane %v5129_v41, 2  ;;  %v2634_v24 = vrot.slane %v5131_v53, 1  ;;  %v5151_v34 = vld [vmem:[#allocation2 + $0x55] sm:$0x1]  ;;  %v1770_v47 = vsel %vm726_vm6, %v1769_v58, %v1768_v42  ;;  %v1753_v57 = vsel %vm708_vm7, %v1752_v2, %v1751_v10 }
 0x16d   : > { %v5153_v38 = vld [vmem:[#allocation2 + $0xd] sm:$0x1]  ;;  %v2603_v6 = vld [vmem:[#allocation2 + $0xc] sm:$0x1]  ;;  %v2648_v27 = vrot.slane %v5137_v59, 7  ;;  %v2650_v52 = vrot.slane %v5139_v21, 6  ;;  %v1772_v54 = vsel %vm729_vm8, %v1771_v28, %v1770_v47  ;;  %1754 = vrot.lane.b32.xlu0 %v1753_v57, %s3874_s9  ;;  %v2631_v7 = vsel %vm723_vm4, %v2630_v16, %v2629_v50 }
 0x16e   : > { %v2659_v9 = vld [vmem:[#allocation2 + $0x25] sm:$0x1]  ;;  %v3194_v60 = vld [vmem:[#allocation2 + $0x27] sm:$0x1]  ;;  %v2640_v39 = vld [vmem:[#allocation2 + $0xd] sm:$0x1]  ;;  %v2612_v14 = vsel %vm702_vm3, %v2611_v56, %v2603_v6  ;;  %1773 = vrot.lane.b32.xlu1 %v1772_v54, %s3872_s13  ;;  %v2633_v1 = vsel %vm726_vm6, %v2632_v55, %v2631_v7 }
 0x16f   : > { %v5162_v62 = vld [vmem:[#allocation2 + $0x3d] sm:$0x1]  ;;  %v3211_v63 = vld [vmem:[#allocation2 + $0xf] sm:$0x1]  ;;  %v3212_v36 = vld [vmem:[#allocation2 + $0x27] sm:$0x1]  ;;  %v2614_v46 = vsel %vm705_vm5, %v2613_v23, %v2612_v14  ;;  %v2635_v15 = vsel %vm729_vm8, %v2634_v24, %v2633_v1  ;;  %v2649_v0 = vsel %vm702_vm3, %v2648_v27, %v2640_v39  ;;  %v1102_v24 = vpop.permute.xlu1 %1101 }
 0x170   : > { %v2652_v40 = vrot.slane %v5151_v34, 5  ;;  %v5166_v48 = vld [vmem:[#allocation2 + $0x55] sm:$0x1]  ;;  %v2666_v29 = vrot.slane %v5153_v38, 4  ;;  %v3193_v43 = vld [vmem:[#allocation2 + $0xf] sm:$0x1]  ;;  %v2616_v35 = vsel %vm708_vm7, %v2615_v4, %v2614_v46  ;;  %v1083_v38 = vpop.permute.xlu0 %1082  ;;  %v2651_v37 = vsel %vm705_vm5, %v2650_v52, %v2649_v0 }
 0x171   : > { %2436 = vst.msk [vmem:[#allocation3 + $0x18] sm:$0xf0] %vm1066_vm13, %v2434_v19  ;;  %v2667_v45 = vrot.slane %v2659_v9, 3  ;;  %v3195_v51 = vld [vmem:[#allocation2 + $0x3f] sm:$0x1]  ;;  %v3201_v3 = vrot.slane %v3194_v60, 7  ;;  %2617 = vrot.lane.b32.xlu0 %v2616_v35, %s3863_s24 }
 0x172   : > { %2417 = vst.msk [vmem:[#allocation3 + $0x18] sm:$0xf] %vm1046_vm14, %v2415_v25  ;;  %v5173_v20 = vld [vmem:[#allocation2 + $0x57] sm:$0x1]  ;;  %v3213_v12 = vld [vmem:[#allocation2 + $0x3f] sm:$0x1]  ;;  %2636 = vrot.lane.b32.xlu1 %v2635_v15, %s3865_s28  ;;  %v2653_v60 = vsel %vm708_vm7, %v2652_v40, %v2651_v37 }
 0x173   : > { %v5179_v32 = vld [vmem:[#allocation2 + $0x57] sm:$0x1]  ;;  %v3219_v5 = vrot.slane %v3211_v63, 4  ;;  %v3220_v33 = vrot.slane %v3212_v36, 3  ;;  %v3231_v22 = vld [vmem:[#allocation2 + $0x27] sm:$0x1]  ;;  %v3202_v41 = vsel %vm702_vm3, %v3201_v3, %v3193_v43  ;;  %v2668_v4 = vsel %vm723_vm4, %v2667_v45, %v2666_v29  ;;  %v2563_v29 = vpop.permute.xlu1 %2562 }
 0x174   : > { %v3248_v11 = vld [vmem:[#allocation2 + $0x10] sm:$0x1]  ;;  %v3249_v13 = vld [vmem:[#allocation2 + $0x28] sm:$0x1]  ;;  %v2669_v44 = vrot.slane %v5162_v62, 2  ;;  %v2671_v18 = vrot.slane %v5166_v48, 1  ;;  %v2544_v43 = vpop.permute.xlu0 %2543 }
 0x175   : > { %v5187_v2 = vld [vmem:[#allocation2 + $0x3f] sm:$0x1]  ;;  %v3250_v58 = vld [vmem:[#allocation2 + $0x40] sm:$0x1]  ;;  %1067 = vst.msk [vmem:[#allocation3] sm:$0xf0] %vm1066_vm13, %v1064_v31  ;;  %v3221_v50 = vsel %vm723_vm4, %v3220_v33, %v3219_v5  ;;  %2654 = vrot.lane.b32.xlu0 %v2653_v60, %s3864_s25 }
 0x176   : > { %1047 = vst.msk [vmem:[#allocation3] sm:$0xf] %vm1046_vm14, %v1044_v30  ;;  %v3203_v53 = vrot.slane %v3195_v51, 6  ;;  %v3205_v26 = vrot.slane %v5173_v20, 5  ;;  %v3222_v42 = vrot.slane %v3213_v12, 2  ;;  %v3224_v56 = vrot.slane %v5179_v32, 1 }
 0x177   : > { %v3230_v28 = vld [vmem:[#allocation2 + $0xf] sm:$0x1]  ;;  %v3233_v59 = vld [vmem:[#allocation2 + $0x57] sm:$0x1]  ;;  %v3238_v8 = vrot.slane %v3231_v22, 7  ;;  %v3256_v61 = vrot.slane %v3248_v11, 4  ;;  %v2670_v47 = vsel %vm726_vm6, %v2669_v44, %v2668_v4  ;;  %v2600_v0 = vpop.permute.xlu1 %2599 }
 0x178   : > { %v3257_v23 = vrot.slane %v3249_v13, 3  ;;  %v3240_v16 = vrot.slane %v5187_v2, 6  ;;  %v3251_v17 = vld [vmem:[#allocation2 + $0x58] sm:$0x1]  ;;  %v3259_v49 = vrot.slane %v3250_v58, 2  ;;  %v2672_v21 = vsel %vm729_vm8, %v2671_v18, %v2670_v47  ;;  %v2581_v44 = vpop.permute.xlu0 %2580  ;;  %s3877_s15 = smov 110  }
 0x179   : > { %v1274_v55 = vld [vmem:[#allocation2 + $0x1c] sm:$0x1]  ;;  %v5203_v6 = vld [vmem:[#allocation2 + $0x34] sm:$0x1]  ;;  %v5205_v27 = vld [vmem:[#allocation2 + $0x4c] sm:$0x1]  ;;  %v3204_v52 = vsel %vm705_vm5, %v3203_v53, %v3202_v41  ;;  %2673 = vrot.lane.b32.xlu1 %v2672_v21, %s3863_s24  ;;  %v3223_v63 = vsel %vm726_vm6, %v3222_v42, %v3221_v50  ;;  %v3239_v34 = vsel %vm702_vm3, %v3238_v8, %v3230_v28 }
 0x17a   : > { %v5207_v9 = vld [vmem:[#allocation2 + $0x4] sm:$0x1]  ;;  %1104 = vst.msk [vmem:[#allocation3 + $0x10] sm:$0xf0] %vm1066_vm13, %v1102_v24  ;;  %v5216_v10 = vld [vmem:[#allocation2 + $0x1c] sm:$0x1]  ;;  %v3258_v19 = vsel %vm723_vm4, %v3257_v23, %v3256_v61  ;;  %v3206_v3 = vsel %vm708_vm7, %v3205_v26, %v3204_v52  ;;  %v3225_v46 = vsel %vm729_vm8, %v3224_v56, %v3223_v63  ;;  %v3241_v33 = vsel %vm705_vm5, %v3240_v16, %v3239_v34 }
 0x17b   : > { %1085 = vst.msk [vmem:[#allocation3 + $0x10] sm:$0xf] %vm1046_vm14, %v1083_v38  ;;  %v5218_v39 = vld [vmem:[#allocation2 + $0x34] sm:$0x1]  ;;  %v5220_v62 = vld [vmem:[#allocation2 + $0x4c] sm:$0x1]  ;;  %v3260_v7 = vsel %vm726_vm6, %v3259_v49, %v3258_v19  ;;  %3207 = vrot.lane.b32.xlu0 %v3206_v3, %s3875_s10 }
 0x17c   : > { %v3242_v36 = vrot.slane %v3233_v59, 5  ;;  %v3261_v25 = vrot.slane %v3251_v17, 1  ;;  %v1281_v57 = vrot.slane %v1274_v55, 7  ;;  %v1283_v40 = vrot.slane %v5203_v6, 6  ;;  %v1273_v54 = vld [vmem:[#allocation2 + $0x4] sm:$0x1] }
 0x17d   : > { %v1285_v48 = vrot.slane %v5205_v27, 5  ;;  %v1299_v14 = vrot.slane %v5207_v9, 4  ;;  %v1300_v45 = vrot.slane %v5216_v10, 3  ;;  %v1302_v51 = vrot.slane %v5218_v39, 2  ;;  %2565 = vst.msk [vmem:[#allocation3 + $0x8] sm:$0xf0] %vm1234_vm15, %v2563_v29  ;;  %3226 = vrot.lane.b32.xlu1 %v3225_v46, %s3876_s11  ;;  %v1232_v27 = vpop.permute.xlu1 %1231  ;;  %v1212_v9 = vpop.permute.xlu0 %1211 }
 0x17e   : > { %v1304_v20 = vrot.slane %v5220_v62, 1  ;;  %2546 = vst.msk [vmem:[#allocation3 + $0x8] sm:$0xf] %vm1214_vm0, %v2544_v43  ;;  %v1311_v12 = vld [vmem:[#allocation2 + $0x1d] sm:$0x1]  ;;  %v3243_v11 = vsel %vm708_vm7, %v3242_v36, %v3241_v33  ;;  %v3262_v18 = vsel %vm729_vm8, %v3261_v25, %v3260_v7  ;;  %v1282_v2 = vsel %vm702_vm3, %v1281_v57, %v1273_v54  ;;  %s3677_s21 = sshll.u32 %s5757_s18, 4 }
 0x17f   : > { %v1328_v32 = vld [vmem:[#allocation2 + $0x5] sm:$0x1]  ;;  %v1329_v5 = vld [vmem:[#allocation2 + $0x1d] sm:$0x1]  ;;  %v1870_v35 = vld [vmem:[#allocation2 + $0x1f] sm:$0x1]  ;;  %3244 = vrot.lane.b32.xlu0 %v3243_v11, %s3877_s15  ;;  %v1284_v23 = vsel %vm705_vm5, %v1283_v40, %v1282_v2  ;;  %v1301_v4 = vsel %vm723_vm4, %v1300_v45, %v1299_v14 }
 0x180   : > { %v1888_v1 = vld [vmem:[#allocation2 + $0x7] sm:$0x1]  ;;  %v1889_v22 = vld [vmem:[#allocation2 + $0x1f] sm:$0x1]  ;;  %v1310_v13 = vld [vmem:[#allocation2 + $0x5] sm:$0x1]  ;;  %v1286_v55 = vsel %vm708_vm7, %v1285_v48, %v1284_v23  ;;  %v1303_v24 = vsel %vm726_vm6, %v1302_v51, %v1301_v4 }
 0x181   : > { %v1312_v31 = vld [vmem:[#allocation2 + $0x35] sm:$0x1]  ;;  %v5242_v30 = vld [vmem:[#allocation2 + $0x4d] sm:$0x1]  ;;  %v1318_v58 = vrot.slane %v1311_v12, 7  ;;  %v1336_v53 = vrot.slane %v1328_v32, 4  ;;  %3263 = vrot.lane.b32.xlu1 %v3262_v18, %s3875_s10  ;;  %v1305_v60 = vsel %vm729_vm8, %v1304_v20, %v1303_v24  ;;  %v1270_v20 = vpop.permute.xlu1 %1269  ;;  %v1251_v3 = vpop.permute.xlu0 %1250 }
 0x182   : > { %v1330_v15 = vld [vmem:[#allocation2 + $0x35] sm:$0x1]  ;;  %v5246_v41 = vld [vmem:[#allocation2 + $0x4d] sm:$0x1]  ;;  %v1871_v26 = vld [vmem:[#allocation2 + $0x37] sm:$0x1] }
 0x183   : > { %2602 = vst.msk [vmem:[#allocation3 + $0x18] sm:$0xf0] %vm1234_vm15, %v2600_v0  ;;  %v1337_v42 = vrot.slane %v1329_v5, 3  ;;  %v1877_v28 = vrot.slane %v1870_v35, 7  ;;  %v1890_v56 = vld [vmem:[#allocation2 + $0x37] sm:$0x1]  ;;  %v1319_v21 = vsel %vm702_vm3, %v1318_v58, %v1310_v13  ;;  %1287 = vrot.lane.b32.xlu0 %v1286_v55, %s3863_s24 }
 0x184   : > { %2583 = vst.msk [vmem:[#allocation3 + $0x18] sm:$0xf] %vm1214_vm0, %v2581_v44  ;;  %v1896_v59 = vrot.slane %v1888_v1, 4  ;;  %v1897_v8 = vrot.slane %v1889_v22, 3  ;;  %v5250_v61 = vld [vmem:[#allocation2 + $0x8] sm:$0x1] }
 0x185   : > { %v1320_v50 = vrot.slane %v1312_v31, 6  ;;  %v1339_v16 = vrot.slane %v1330_v15, 2  ;;  %v1869_v17 = vld [vmem:[#allocation2 + $0x7] sm:$0x1]  ;;  %v1909_v49 = vld [vmem:[#allocation2 + $0x1f] sm:$0x1]  ;;  %v1338_v63 = vsel %vm723_vm4, %v1337_v42, %v1336_v53  ;;  %1306 = vrot.lane.b32.xlu1 %v1305_v60, %s3865_s28  ;;  %v2122_v42 = vpop.permute.xlu0 %2121 }
 0x186   : > { %v1322_v38 = vrot.slane %v5242_v30, 5  ;;  %v1341_v37 = vrot.slane %v5246_v41, 1  ;;  %v1872_v47 = vld [vmem:[#allocation2 + $0x4f] sm:$0x1]  ;;  %v1879_v52 = vrot.slane %v1871_v26, 6  ;;  %v1899_v10 = vrot.slane %v1890_v56, 2  ;;  %v2141_v26 = vpop.permute.xlu1 %2140 }
 0x187   : > { %v1891_v6 = vld [vmem:[#allocation2 + $0x4f] sm:$0x1]  ;;  %v1910_v39 = vld [vmem:[#allocation2 + $0x37] sm:$0x1]  ;;  %1235 = vst.msk [vmem:[#allocation3] sm:$0xf0] %vm1234_vm15, %v1232_v27  ;;  %v1878_v34 = vsel %vm702_vm3, %v1877_v28, %v1869_v17  ;;  %v1898_v36 = vsel %vm723_vm4, %v1897_v8, %v1896_v59  ;;  %v1321_v40 = vsel %vm705_vm5, %v1320_v50, %v1319_v21  ;;  %v1340_v48 = vsel %vm726_vm6, %v1339_v16, %v1338_v63 }
 0x188   : > { %v5262_v62 = vld [vmem:[#allocation2 + $0x4f] sm:$0x1]  ;;  %1215 = vst.msk [vmem:[#allocation3] sm:$0xf] %vm1214_vm0, %v1212_v9  ;;  %v1916_v19 = vrot.slane %v1909_v49, 7  ;;  %v1934_v43 = vrot.slane %v5250_v61, 4  ;;  %v1880_v46 = vsel %vm705_vm5, %v1879_v52, %v1878_v34  ;;  %v1900_v7 = vsel %vm726_vm6, %v1899_v10, %v1898_v36 }
 0x189   : > { %v1927_v25 = vld [vmem:[#allocation2 + $0x20] sm:$0x1]  ;;  %v5269_v57 = vld [vmem:[#allocation2 + $0x38] sm:$0x1]  ;;  %v1908_v29 = vld [vmem:[#allocation2 + $0x7] sm:$0x1]  ;;  %v1323_v35 = vsel %vm708_vm7, %v1322_v38, %v1321_v40  ;;  %v1342_v1 = vsel %vm729_vm8, %v1341_v37, %v1340_v48  ;;  %v2176_v52 = vpop.permute.xlu0 %2175 }
 0x18a   : > { %v1881_v54 = vrot.slane %v1872_v47, 5  ;;  %v1901_v14 = vrot.slane %v1891_v6, 1  ;;  %v1918_v45 = vrot.slane %v1910_v39, 6  ;;  %v1920_v51 = vrot.slane %v5262_v62, 5  ;;  %v1929_v12 = vld [vmem:[#allocation2 + $0x50] sm:$0x1]  ;;  %1324 = vrot.lane.b32.xlu0 %v1323_v35, %s3864_s25  ;;  %1343 = vrot.lane.b32.xlu1 %v1342_v1, %s3863_s24  ;;  %v2710_v21 = vpop.permute.xlu1 %2709  ;;  %s279_s25 = scalar_lea.vmem %s5737_s2, %s3677_s21 }
 0x18b   : > { %v1935_v32 = vrot.slane %v1927_v25, 3  ;;  %v1937_v5 = vrot.slane %v5269_v57, 2  ;;  %v2770_v33 = vld [vmem:[#allocation2 + $0x25] sm:$0x1]  ;;  %1272 = vst.msk [vmem:[#allocation3 + $0x10] sm:$0xf0] %vm1234_vm15, %v1270_v20  ;;  %v1917_v22 = vsel %vm702_vm3, %v1916_v19, %v1908_v29 }
 0x18c   : > { %1253 = vst.msk [vmem:[#allocation3 + $0x10] sm:$0xf] %vm1214_vm0, %v1251_v3  ;;  %v2771_v11 = vld [vmem:[#allocation2 + $0x3d] sm:$0x1]  ;;  %v5285_v13 = vld [vmem:[#allocation2 + $0x55] sm:$0x1]  ;;  %v1882_v44 = vsel %vm708_vm7, %v1881_v54, %v1880_v46  ;;  %v1902_v18 = vsel %vm729_vm8, %v1901_v14, %v1900_v7  ;;  %v1919_v28 = vsel %vm705_vm5, %v1918_v45, %v1917_v22 }
 0x18d   : > { %v2787_v31 = vld [vmem:[#allocation2 + $0xd] sm:$0x1]  ;;  %vm1402_vm2 = vcmask 654852   ;;  %v2788_v30 = vld [vmem:[#allocation2 + $0x25] sm:$0x1]  ;;  %v1939_v2 = vrot.slane %v1929_v12, 1  ;;  %v1936_v56 = vsel %vm723_vm4, %v1935_v32, %v1934_v43  ;;  %v1921_v10 = vsel %vm708_vm7, %v1920_v51, %v1919_v28 }
 0x18e   : > { %v5289_v15 = vld [vmem:[#allocation2 + $0x3d] sm:$0x1]  ;;  %v5291_v0 = vld [vmem:[#allocation2 + $0x55] sm:$0x1]  ;;  %v2777_v58 = vrot.slane %v2770_v33, 7  ;;  %v2779_v59 = vrot.slane %v2771_v11, 6  ;;  %1883 = vrot.lane.b32.xlu0 %v1882_v44, %s3875_s10  ;;  %1903 = vrot.lane.b32.xlu1 %v1902_v18, %s3876_s11  ;;  %v1938_v47 = vsel %vm726_vm6, %v1937_v5, %v1936_v56  ;;  %v2747_v5 = vpop.permute.xlu1 %2746  ;;  %v2729_v33 = vpop.permute.xlu0 %2728 }
 0x18f   : > { %v5295_v41 = vld [vmem:[#allocation2 + $0x26] sm:$0x1]  ;;  %v5297_v53 = vld [vmem:[#allocation2 + $0x3e] sm:$0x1]  ;;  %v2781_v8 = vrot.slane %v5285_v13, 5  ;;  %v2795_v50 = vrot.slane %v2787_v31, 4  ;;  %v1940_v39 = vsel %vm729_vm8, %v1939_v2, %v1938_v47 }
 0x190   : > { %v5302_v61 = vld [vmem:[#allocation2 + $0x56] sm:$0x1]  ;;  %v2824_v23 = vld [vmem:[#allocation2 + $0xe] sm:$0x1]  ;;  %2143 = vst.msk [vmem:[#allocation3 + $0x28] sm:$0xf0] %vm734_vm10, %v2141_v26 }
 0x191   : > { %2124 = vst.msk [vmem:[#allocation3 + $0x28] sm:$0xf] %vm5740_vm9, %v2122_v42  ;;  %v2769_v4 = vld [vmem:[#allocation2 + $0xd] sm:$0x1]  ;;  %v2796_v16 = vrot.slane %v2788_v30, 3  ;;  %v2798_v17 = vrot.slane %v5289_v15, 2 }
 0x192   : > { %v2800_v49 = vrot.slane %v5291_v0, 1  ;;  %v2814_v55 = vrot.slane %v5295_v41, 7  ;;  %v2816_v24 = vrot.slane %v5297_v53, 6  ;;  %v2825_v38 = vld [vmem:[#allocation2 + $0x26] sm:$0x1]  ;;  %v2818_v6 = vrot.slane %v5302_v61, 5  ;;  %1922 = vrot.lane.b32.xlu0 %v1921_v10, %s3877_s15  ;;  %1941 = vrot.lane.b32.xlu1 %v1940_v39, %s3875_s10 }
 0x193   : > { %v2826_v37 = vld [vmem:[#allocation2 + $0x3e] sm:$0x1]  ;;  %v2827_v27 = vld [vmem:[#allocation2 + $0x56] sm:$0x1]  ;;  %v2832_v9 = vrot.slane %v2824_v23, 4  ;;  %v2778_v62 = vsel %vm702_vm3, %v2777_v58, %v2769_v4  ;;  %v2797_v57 = vsel %vm723_vm4, %v2796_v16, %v2795_v50  ;;  %v2833_v40 = vrot.slane %v2825_v38, 3  ;;  %v2766_v16 = vpop.permute.xlu0 %2765 }
 0x194   : > { %v5314_v60 = vld [vmem:[#allocation2 + $0x1d] sm:$0x1]  ;;  %v2806_v63 = vld [vmem:[#allocation2 + $0xe] sm:$0x1]  ;;  %v5319_v34 = vld [vmem:[#allocation2 + $0x35] sm:$0x1]  ;;  %v2780_v25 = vsel %vm705_vm5, %v2779_v59, %v2778_v62  ;;  %v2799_v1 = vsel %vm726_vm6, %v2798_v17, %v2797_v57  ;;  %v786_v17 = vpop.permute.xlu1 %785 }
 0x195   : > { %v5321_v36 = vld [vmem:[#allocation2 + $0x4d] sm:$0x1]  ;;  %v2145_v19 = vld [vmem:[#allocation2 + $0x22] sm:$0x1]  ;;  %2712 = vst.msk [vmem:[#allocation3 + $0x8] sm:$0xf] %vm1382_vm1, %v2710_v21  ;;  %v2782_v35 = vsel %vm708_vm7, %v2781_v8, %v2780_v25  ;;  %v2801_v30 = vsel %vm729_vm8, %v2800_v49, %v2799_v1  ;;  %v2815_v15 = vsel %vm702_vm3, %v2814_v55, %v2806_v63  ;;  %v2834_v0 = vsel %vm723_vm4, %v2833_v40, %v2832_v9 }
 0x196   : > { %2178 = vst.msk [vmem:[#allocation3 + $0x38] sm:$0xf0] %vm734_vm10, %v2176_v52  ;;  %v2146_v48 = vld [vmem:[#allocation2 + $0x3a] sm:$0x1]  ;;  %v2147_v29 = vld [vmem:[#allocation2 + $0x52] sm:$0x1]  ;;  %2783 = vrot.lane.b32.xlu0 %v2782_v35, %s3868_s5  ;;  %2802 = vrot.lane.b32.xlu1 %v2801_v30, %s3867_s30  ;;  %v2817_v53 = vsel %vm705_vm5, %v2816_v24, %v2815_v15 }
 0x197   : > { %v2152_v43 = vrot.slane %v2145_v19, 7  ;;  %v2835_v54 = vrot.slane %v2826_v37, 2  ;;  %v2837_v14 = vrot.slane %v2827_v27, 1  ;;  %v2144_v45 = vld [vmem:[#allocation2 + $0xa] sm:$0x1]  ;;  %v2154_v51 = vrot.slane %v2146_v48, 6  ;;  %v805_v40 = vpop.permute.xlu0 %804 }
 0x198   : > { %v2156_v20 = vrot.slane %v2147_v29, 5  ;;  %v1449_v3 = vrot.slane %v5314_v60, 7  ;;  %v1451_v46 = vrot.slane %v5319_v34, 6  ;;  %v1453_v7 = vrot.slane %v5321_v36, 5  ;;  %v1459_v12 = vld [vmem:[#allocation2 + $0x5] sm:$0x1]  ;;  %v840_v48 = vpop.permute.xlu1 %839 }
 0x199   : > { %v2153_v32 = vsel %vm702_vm3, %v2152_v43, %v2144_v45  ;;  %v1460_v22 = vld [vmem:[#allocation2 + $0x1d] sm:$0x1]  ;;  %v1461_v11 = vld [vmem:[#allocation2 + $0x35] sm:$0x1]  ;;  %v5335_v13 = vld [vmem:[#allocation2 + $0x4d] sm:$0x1]  ;;  %v2836_v26 = vsel %vm726_vm6, %v2835_v54, %v2834_v0  ;;  %v2819_v59 = vsel %vm708_vm7, %v2818_v6, %v2817_v53 }
 0x19a   : > { %v2155_v31 = vsel %vm705_vm5, %v2154_v51, %v2153_v32  ;;  %2749 = vst.msk [vmem:[#allocation3 + $0x18] sm:$0xf] %vm1382_vm1, %v2747_v5  ;;  %v1441_v44 = vld [vmem:[#allocation2 + $0x5] sm:$0x1]  ;;  %v1479_v18 = vld [vmem:[#allocation2 + $0x1e] sm:$0x1]  ;;  %v2838_v8 = vsel %vm729_vm8, %v2837_v14, %v2836_v26  ;;  %2820 = vrot.lane.b32.xlu0 %v2819_v59, %s3866_s29 }
 0x19b   : > { %2731 = vst.msk [vmem:[#allocation3 + $0x8] sm:$0xf0] %vm1402_vm2, %v2729_v33  ;;  %v1480_v2 = vld [vmem:[#allocation2 + $0x36] sm:$0x1]  ;;  %v5343_v58 = vld [vmem:[#allocation2 + $0x4e] sm:$0x1]  ;;  %v2157_v41 = vsel %vm708_vm7, %v2156_v20, %v2155_v31  ;;  %2839 = vrot.lane.b32.xlu1 %v2838_v8, %s3868_s5  ;;  %v1450_v60 = vsel %vm702_vm3, %v1449_v3, %v1441_v44  ;;  %v1380_v44 = vpop.permute.xlu0 %1379 }
 0x19c   : > { %v1496_v42 = vld [vmem:[#allocation2 + $0x6] sm:$0x1]  ;;  %v1497_v28 = vld [vmem:[#allocation2 + $0x1e] sm:$0x1]  ;;  %v1498_v56 = vld [vmem:[#allocation2 + $0x36] sm:$0x1]  ;;  %v1452_v62 = vsel %vm705_vm5, %v1451_v46, %v1450_v60 }
 0x19d   : > { %2159 = vst.msk [vmem:[#allocation3 + $0x38] sm:$0xf] %vm5740_vm9, %v2157_v41  ;;  %v1467_v61 = vrot.slane %v1459_v12, 4  ;;  %v1468_v23 = vrot.slane %v1460_v22, 3  ;;  %v5353_v4 = vld [vmem:[#allocation2 + $0x4e] sm:$0x1]  ;;  %v1454_v29 = vsel %vm708_vm7, %v1453_v7, %v1452_v62 }
 0x19e   : > { %v5355_v50 = vld [vmem:[#allocation2 + $0x26] sm:$0x1]  ;;  %v1470_v49 = vrot.slane %v1461_v11, 2  ;;  %v1472_v55 = vrot.slane %v5335_v13, 1  ;;  %v1486_v24 = vrot.slane %v1479_v18, 7  ;;  %v1488_v38 = vrot.slane %v1480_v2, 6  ;;  %1455 = vrot.lane.b32.xlu0 %v1454_v29, %s3868_s5  ;;  %v1400_v18 = vpop.permute.xlu1 %1399 }
 0x19f   : > { %2768 = vst.msk [vmem:[#allocation3 + $0x18] sm:$0xf0] %vm1402_vm2, %v2766_v16  ;;  %v1478_v37 = vld [vmem:[#allocation2 + $0x6] sm:$0x1]  ;;  %v1490_v47 = vrot.slane %v5343_v58, 5  ;;  %v1504_v6 = vrot.slane %v1496_v42, 4  ;;  %v1469_v63 = vsel %vm723_vm4, %v1468_v23, %v1467_v61 }
 0x1a0   : > { %788 = vst.msk [vmem:[#allocation3 + $0x20] sm:$0xf] %vm5740_vm9, %v786_v17  ;;  %v1505_v27 = vrot.slane %v1497_v28, 3  ;;  %v1507_v9 = vrot.slane %v1498_v56, 2  ;;  %v1509_v21 = vrot.slane %v5353_v4, 1  ;;  %v2943_v10 = vrot.slane %v5355_v50, 7 }
 0x1a1   : > { %v2937_v52 = vld [vmem:[#allocation2 + $0x3e] sm:$0x1]  ;;  %v2953_v39 = vld [vmem:[#allocation2 + $0xe] sm:$0x1]  ;;  %v5368_v34 = vld [vmem:[#allocation2 + $0x56] sm:$0x1]  ;;  %v1471_v43 = vsel %vm726_vm6, %v1470_v49, %v1469_v63  ;;  %v1487_v54 = vsel %vm702_vm3, %v1486_v24, %v1478_v37 }
 0x1a2   : > { %v2954_v19 = vld [vmem:[#allocation2 + $0x26] sm:$0x1]  ;;  %v2955_v25 = vld [vmem:[#allocation2 + $0x3e] sm:$0x1]  ;;  %v2973_v57 = vld [vmem:[#allocation2 + $0x27] sm:$0x1]  ;;  %v1473_v3 = vsel %vm729_vm8, %v1472_v55, %v1471_v43  ;;  %v1489_v46 = vsel %vm705_vm5, %v1488_v38, %v1487_v54  ;;  %v1506_v33 = vsel %vm723_vm4, %v1505_v27, %v1504_v6 }
 0x1a3   : > { %v2935_v14 = vld [vmem:[#allocation2 + $0xe] sm:$0x1]  ;;  %v2956_v45 = vld [vmem:[#allocation2 + $0x56] sm:$0x1]  ;;  %v2990_v51 = vld [vmem:[#allocation2 + $0xf] sm:$0x1]  ;;  %1474 = vrot.lane.b32.xlu1 %v1473_v3, %s3867_s30  ;;  %v1491_v5 = vsel %vm708_vm7, %v1490_v47, %v1489_v46  ;;  %v1508_v13 = vsel %vm726_vm6, %v1507_v9, %v1506_v33 }
 0x1a4   : > { %v2991_v20 = vld [vmem:[#allocation2 + $0x27] sm:$0x1]  ;;  %807 = vst.msk [vmem:[#allocation3 + $0x20] sm:$0xf0] %vm734_vm10, %v805_v40  ;;  %842 = vst.msk [vmem:[#allocation3 + $0x30] sm:$0xf0] %vm734_vm10, %v840_v48  ;;  %v1510_v42 = vsel %vm729_vm8, %v1509_v21, %v1508_v13  ;;  %v2944_v28 = vsel %vm702_vm3, %v2943_v10, %v2935_v14  ;;  %1492 = vrot.lane.b32.xlu0 %v1491_v5, %s3866_s29  ;;  %v1419_v21 = vpop.permute.xlu0 %1418 }
 0x1a5   : > { %v2945_v12 = vrot.slane %v2937_v52, 6  ;;  %v2961_v36 = vrot.slane %v2953_v39, 4  ;;  %v2974_v32 = vld [vmem:[#allocation2 + $0x3f] sm:$0x1]  ;;  %v5379_v7 = vld [vmem:[#allocation2 + $0x57] sm:$0x1]  ;;  %v1438_v52 = vpop.permute.xlu1 %1437 }
 0x1a6   : > { %v2962_v35 = vrot.slane %v2954_v19, 3  ;;  %v2980_v1 = vrot.slane %v2973_v57, 7  ;;  %v2992_v22 = vld [vmem:[#allocation2 + $0x3f] sm:$0x1]  ;;  %v5385_v11 = vld [vmem:[#allocation2 + $0x57] sm:$0x1] }
 0x1a7   : > { %v2964_v31 = vrot.slane %v2955_v25, 2  ;;  %v2972_v30 = vld [vmem:[#allocation2 + $0xf] sm:$0x1]  ;;  %v2998_v15 = vrot.slane %v2990_v51, 4  ;;  %v2999_v0 = vrot.slane %v2991_v20, 3  ;;  %v2947_v2 = vrot.slane %v5368_v34, 5  ;;  %1511 = vrot.lane.b32.xlu1 %v1510_v42, %s3868_s5 }
 0x1a8   : > { %v2966_v58 = vrot.slane %v2956_v45, 1  ;;  %v2982_v41 = vrot.slane %v2974_v32, 6  ;;  %v2984_v53 = vrot.slane %v5379_v7, 5  ;;  %v5390_v26 = vld [vmem:[#allocation2 + $0x1e] sm:$0x1]  ;;  %v3001_v56 = vrot.slane %v2992_v22, 2  ;;  %v2286_v33 = vpop.permute.xlu0 %2285 }
 0x1a9   : > { %1383 = vst.msk [vmem:[#allocation3] sm:$0xf] %vm1382_vm1, %v1380_v44  ;;  %v3003_v59 = vrot.slane %v5385_v11, 1  ;;  %v5397_v8 = vld [vmem:[#allocation2 + $0x36] sm:$0x1]  ;;  %v2946_v23 = vsel %vm705_vm5, %v2945_v12, %v2944_v28  ;;  %v2963_v4 = vsel %vm723_vm4, %v2962_v35, %v2961_v36  ;;  %v2981_v50 = vsel %vm702_vm3, %v2980_v1, %v2972_v30  ;;  %v2305_v35 = vpop.permute.xlu1 %2304 }
 0x1aa   : > { %1403 = vst.msk [vmem:[#allocation3] sm:$0xf0] %vm1402_vm2, %v1400_v18  ;;  %v5399_v61 = vld [vmem:[#allocation2 + $0x1f] sm:$0x1]  ;;  %v5406_v16 = vld [vmem:[#allocation2 + $0x4e] sm:$0x1]  ;;  %v2965_v37 = vsel %vm726_vm6, %v2964_v31, %v2963_v4  ;;  %v3000_v47 = vsel %vm723_vm4, %v2999_v0, %v2998_v15  ;;  %v2948_v10 = vsel %vm708_vm7, %v2947_v2, %v2946_v23  ;;  %v2983_v57 = vsel %vm705_vm5, %v2982_v41, %v2981_v50 }
 0x1ab   : > { %v5408_v17 = vld [vmem:[#allocation2 + $0x6] sm:$0x1]  ;;  %v5410_v49 = vld [vmem:[#allocation2 + $0x1e] sm:$0x1]  ;;  %v5412_v55 = vld [vmem:[#allocation2 + $0x7] sm:$0x1]  ;;  %v2967_v39 = vsel %vm729_vm8, %v2966_v58, %v2965_v37  ;;  %2949 = vrot.lane.b32.xlu0 %v2948_v10, %s3870_s8  ;;  %v3002_v14 = vsel %vm726_vm6, %v3001_v56, %v3000_v47  ;;  %v2985_v1 = vsel %vm708_vm7, %v2984_v53, %v2983_v57 }
 0x1ac   : > { %v1665_v24 = vld [vmem:[#allocation2 + $0x1f] sm:$0x1]  ;;  %v809_v38 = vld [vmem:[#allocation2 + $0x1a] sm:$0x1]  ;;  %v1617_v6 = vrot.slane %v5390_v26, 7  ;;  %v1619_v40 = vrot.slane %v5397_v8, 6  ;;  %2968 = vrot.lane.b32.xlu1 %v2967_v39, %s3871_s12  ;;  %v3004_v22 = vsel %vm729_vm8, %v3003_v59, %v3002_v14  ;;  %v2323_v8 = vpop.permute.xlu0 %2322 }
 0x1ad   : > { %v810_v27 = vld [vmem:[#allocation2 + $0x32] sm:$0x1]  ;;  %v811_v9 = vld [vmem:[#allocation2 + $0x4a] sm:$0x1]  ;;  %v816_v60 = vrot.slane %v809_v38, 7  ;;  %v1654_v43 = vrot.slane %v5399_v61, 7  ;;  %v2342_v61 = vpop.permute.xlu1 %2341 }
 0x1ae   : > { %v1609_v62 = vld [vmem:[#allocation2 + $0x6] sm:$0x1]  ;;  %v1629_v63 = vld [vmem:[#allocation2 + $0x36] sm:$0x1]  ;;  %v808_v34 = vld [vmem:[#allocation2 + $0x2] sm:$0x1] }
 0x1af   : > { %v818_v19 = vrot.slane %v810_v27, 6  ;;  %v820_v25 = vrot.slane %v811_v9, 5  ;;  %1421 = vst.msk [vmem:[#allocation3 + $0x10] sm:$0xf] %vm1382_vm1, %v1419_v21  ;;  %v1630_v48 = vld [vmem:[#allocation2 + $0x4e] sm:$0x1]  ;;  %v817_v54 = vsel %vm702_vm3, %v816_v60, %v808_v34  ;;  %v1618_v15 = vsel %vm702_vm3, %v1617_v6, %v1609_v62  ;;  %2986 = vrot.lane.b32.xlu0 %v2985_v1, %s3869_s6 }
 0x1b0   : > { %1440 = vst.msk [vmem:[#allocation3 + $0x10] sm:$0xf0] %vm1402_vm2, %v1438_v52  ;;  %v1648_v29 = vld [vmem:[#allocation2 + $0x37] sm:$0x1]  ;;  %v1646_v45 = vld [vmem:[#allocation2 + $0x7] sm:$0x1]  ;;  %3005 = vrot.lane.b32.xlu1 %v3004_v22, %s3870_s8  ;;  %v1620_v41 = vsel %vm705_vm5, %v1619_v40, %v1618_v15  ;;  %v2876_v34 = vpop.permute.xlu0 %2875 }
 0x1b1   : > { %v1666_v51 = vld [vmem:[#allocation2 + $0x37] sm:$0x1]  ;;  %v1672_v20 = vrot.slane %v5412_v55, 4  ;;  %v1673_v3 = vrot.slane %v1665_v24, 3  ;;  %v819_v46 = vsel %vm705_vm5, %v818_v19, %v817_v54  ;;  %v1621_v12 = vrot.slane %v5406_v16, 5  ;;  %v2895_v19 = vpop.permute.xlu1 %2894 }
 0x1b2   : > { %v1635_v36 = vrot.slane %v5408_v17, 4  ;;  %v1636_v32 = vrot.slane %v5410_v49, 3  ;;  %v1649_v7 = vld [vmem:[#allocation2 + $0x4f] sm:$0x1]  ;;  %v821_v5 = vsel %vm708_vm7, %v820_v25, %v819_v46  ;;  %v1638_v11 = vrot.slane %v1629_v63, 2 }
 0x1b3   : > { %v1656_v13 = vrot.slane %v1648_v29, 6  ;;  %v1667_v31 = vld [vmem:[#allocation2 + $0x4f] sm:$0x1]  ;;  %v5436_v30 = vld [vmem:[#allocation2 + $0x22] sm:$0x1]  ;;  %v1640_v0 = vrot.slane %v1630_v48, 1  ;;  %v1655_v44 = vsel %vm702_vm3, %v1654_v43, %v1646_v45  ;;  %v1674_v53 = vsel %vm723_vm4, %v1673_v3, %v1672_v20 }
 0x1b4   : > { %823 = vst.msk [vmem:[#allocation3 + $0x30] sm:$0xf] %vm5740_vm9, %v821_v5  ;;  %v1675_v18 = vrot.slane %v1666_v51, 2  ;;  %v5443_v2 = vld [vmem:[#allocation2 + $0x3a] sm:$0x1]  ;;  %vm1550_vm10 = vcmask 781952   ;;  %v1637_v26 = vsel %vm723_vm4, %v1636_v32, %v1635_v36  ;;  %v1622_v55 = vsel %vm708_vm7, %v1621_v12, %v1620_v41 }
 0x1b5   : > { %2288 = vst.msk [vmem:[#allocation3 + $0x28] sm:$0xf] %vm5741_vm12, %v2286_v33  ;;  %v3102_v58 = vld [vmem:[#allocation2 + $0x27] sm:$0x1]  ;;  %vm1570_vm9 = vcmask 786052   ;;  %v1658_v42 = vrot.slane %v1649_v7, 5  ;;  %v1639_v23 = vsel %vm726_vm6, %v1638_v11, %v1637_v26  ;;  %v1657_v4 = vsel %vm705_vm5, %v1656_v13, %v1655_v44  ;;  %1623 = vrot.lane.b32.xlu0 %v1622_v55, %s3870_s8  ;;  %v2913_v11 = vpop.permute.xlu0 %2912  ;;  %v2932_v13 = vpop.permute.xlu1 %2931 }
 0x1b6   : > { %2307 = vst.msk [vmem:[#allocation3 + $0x28] sm:$0xf0] %vm898_vm11, %v2305_v35  ;;  %v1677_v28 = vrot.slane %v1667_v31, 1  ;;  %v2182_v56 = vld [vmem:[#allocation2 + $0x52] sm:$0x1]  ;;  %v2187_v59 = vrot.slane %v5436_v30, 7  ;;  %v1641_v24 = vsel %vm729_vm8, %v1640_v0, %v1639_v23  ;;  %v1676_v38 = vsel %vm726_vm6, %v1675_v18, %v1674_v53 }
 0x1b7   : > { %v2189_v50 = vrot.slane %v5443_v2, 6  ;;  %v3103_v16 = vld [vmem:[#allocation2 + $0x3f] sm:$0x1]  ;;  %v3109_v17 = vrot.slane %v3102_v58, 7  ;;  %v3139_v49 = vld [vmem:[#allocation2 + $0x28] sm:$0x1]  ;;  %1642 = vrot.lane.b32.xlu1 %v1641_v24, %s3871_s12  ;;  %v1659_v21 = vsel %vm708_vm7, %v1658_v42, %v1657_v4 }
 0x1b8   : > { %2325 = vst.msk [vmem:[#allocation3 + $0x38] sm:$0xf] %vm5741_vm12, %v2323_v8  ;;  %v3101_v37 = vld [vmem:[#allocation2 + $0xf] sm:$0x1]  ;;  %v3104_v47 = vld [vmem:[#allocation2 + $0x57] sm:$0x1]  ;;  %v1678_v25 = vsel %vm729_vm8, %v1677_v28, %v1676_v38 }
 0x1b9   : > { %2344 = vst.msk [vmem:[#allocation3 + $0x38] sm:$0xf0] %vm898_vm11, %v2342_v61  ;;  %v3119_v6 = vld [vmem:[#allocation2 + $0xf] sm:$0x1]  ;;  %v3120_v27 = vld [vmem:[#allocation2 + $0x27] sm:$0x1]  ;;  %v3110_v40 = vsel %vm702_vm3, %v3109_v17, %v3101_v37  ;;  %1660 = vrot.lane.b32.xlu0 %v1659_v21, %s3869_s6  ;;  %v952_v17 = vpop.permute.xlu0 %951 }
 0x1ba   : > { %v3156_v9 = vld [vmem:[#allocation2 + $0x10] sm:$0x1]  ;;  %v3157_v60 = vld [vmem:[#allocation2 + $0x28] sm:$0x1]  ;;  %v2179_v52 = vld [vmem:[#allocation2 + $0xa] sm:$0x1] }
 0x1bb   : > { %v3111_v10 = vrot.slane %v3103_v16, 6  ;;  %v3121_v39 = vld [vmem:[#allocation2 + $0x3f] sm:$0x1]  ;;  %v3140_v62 = vld [vmem:[#allocation2 + $0x40] sm:$0x1]  ;;  %v3146_v63 = vrot.slane %v3139_v49, 7  ;;  %1679 = vrot.lane.b32.xlu1 %v1678_v25, %s3870_s8  ;;  %v2188_v3 = vsel %vm702_vm3, %v2187_v59, %v2179_v52  ;;  %v971_v49 = vpop.permute.xlu1 %970 }
 0x1bc   : > { %v2191_v57 = vrot.slane %v2182_v56, 5  ;;  %v3113_v48 = vrot.slane %v3104_v47, 5  ;;  %v3122_v29 = vld [vmem:[#allocation2 + $0x57] sm:$0x1]  ;;  %v3138_v43 = vld [vmem:[#allocation2 + $0x10] sm:$0x1]  ;;  %v2190_v7 = vsel %vm705_vm5, %v2189_v50, %v2188_v3 }
 0x1bd   : > { %2878 = vst.msk [vmem:[#allocation3 + $0x8] sm:$0xf] %vm1550_vm10, %v2876_v34  ;;  %v3127_v54 = vrot.slane %v3119_v6, 4  ;;  %v3128_v14 = vrot.slane %v3120_v27, 3  ;;  %v3158_v45 = vld [vmem:[#allocation2 + $0x40] sm:$0x1]  ;;  %v3112_v5 = vsel %vm705_vm5, %v3111_v10, %v3110_v40  ;;  %v3147_v33 = vsel %vm702_vm3, %v3146_v63, %v3138_v43  ;;  %v989_v43 = vpop.permute.xlu0 %988 }
 0x1be   : > { %2897 = vst.msk [vmem:[#allocation3 + $0x8] sm:$0xf0] %vm1570_vm9, %v2895_v19  ;;  %v3164_v51 = vrot.slane %v3156_v9, 4  ;;  %v3165_v20 = vrot.slane %v3157_v60, 3  ;;  %v3130_v46 = vrot.slane %v3121_v39, 2  ;;  %v3148_v36 = vrot.slane %v3140_v62, 6 }
 0x1bf   : > { %v3141_v12 = vld [vmem:[#allocation2 + $0x58] sm:$0x1]  ;;  %v1778_v32 = vld [vmem:[#allocation2 + $0x1f] sm:$0x1]  ;;  %v844_v1 = vld [vmem:[#allocation2 + $0x1a] sm:$0x1]  ;;  %v2192_v31 = vsel %vm708_vm7, %v2191_v57, %v2190_v7  ;;  %v3114_v30 = vsel %vm708_vm7, %v3113_v48, %v3112_v5  ;;  %v3129_v2 = vsel %vm723_vm4, %v3128_v14, %v3127_v54  ;;  %v1008_v54 = vpop.permute.xlu1 %1007 }
 0x1c0   : > { %v3159_v35 = vld [vmem:[#allocation2 + $0x58] sm:$0x1]  ;;  %v845_v22 = vld [vmem:[#allocation2 + $0x32] sm:$0x1]  ;;  %v3132_v15 = vrot.slane %v3122_v29, 1  ;;  %v3167_v0 = vrot.slane %v3158_v45, 2  ;;  %v3166_v41 = vsel %vm723_vm4, %v3165_v20, %v3164_v51  ;;  %2193 = vrot.lane.b32.xlu0 %v2192_v31, %s3855_s7  ;;  %3115 = vrot.lane.b32.xlu1 %v3114_v30, %s3873_s26  ;;  %v3149_v28 = vsel %vm705_vm5, %v3148_v36, %v3147_v33 }
 0x1c1   : > { %v1795_v44 = vld [vmem:[#allocation2 + $0x7] sm:$0x1]  ;;  %v1796_v18 = vld [vmem:[#allocation2 + $0x1f] sm:$0x1]  ;;  %2915 = vst.msk [vmem:[#allocation3 + $0x18] sm:$0xf] %vm1550_vm10, %v2913_v11  ;;  %v3131_v55 = vsel %vm726_vm6, %v3130_v46, %v3129_v2 }
 0x1c2   : > { %2934 = vst.msk [vmem:[#allocation3 + $0x18] sm:$0xf0] %vm1570_vm9, %v2932_v13  ;;  %v3150_v58 = vrot.slane %v3141_v12, 5  ;;  %v846_v53 = vld [vmem:[#allocation2 + $0x4a] sm:$0x1]  ;;  %v1785_v42 = vrot.slane %v1778_v32, 7  ;;  %v3168_v24 = vsel %vm726_vm6, %v3167_v0, %v3166_v41  ;;  %v3133_v27 = vsel %vm729_vm8, %v3132_v15, %v3131_v55 }
 0x1c3   : > { %v1779_v26 = vld [vmem:[#allocation2 + $0x37] sm:$0x1]  ;;  %v3169_v56 = vrot.slane %v3159_v35, 1  ;;  %v851_v59 = vrot.slane %v844_v1, 7  ;;  %v853_v8 = vrot.slane %v845_v22, 6  ;;  %v1803_v4 = vrot.slane %v1795_v44, 4  ;;  %v1548_v44 = vpop.permute.xlu0 %1547 }
 0x1c4   : > { %v1777_v61 = vld [vmem:[#allocation2 + $0x7] sm:$0x1]  ;;  %v1797_v23 = vld [vmem:[#allocation2 + $0x37] sm:$0x1]  ;;  %v1804_v50 = vrot.slane %v1796_v18, 3  ;;  %v855_v37 = vrot.slane %v846_v53, 5  ;;  %v3151_v9 = vsel %vm708_vm7, %v3150_v58, %v3149_v28  ;;  %3134 = vrot.lane.b32.xlu0 %v3133_v27, %s3874_s9  ;;  %v1568_v18 = vpop.permute.xlu1 %1567 }
 0x1c5   : > { %v1815_v16 = vld [vmem:[#allocation2 + $0x20] sm:$0x1]  ;;  %v843_v38 = vld [vmem:[#allocation2 + $0x2] sm:$0x1]  ;;  %v1780_v47 = vld [vmem:[#allocation2 + $0x4f] sm:$0x1]  ;;  %v1786_v60 = vsel %vm702_vm3, %v1785_v42, %v1777_v61  ;;  %3152 = vrot.lane.b32.xlu1 %v3151_v9, %s3872_s13  ;;  %v3170_v25 = vsel %vm729_vm8, %v3169_v56, %v3168_v24 }
 0x1c6   : > { %v1787_v6 = vrot.slane %v1779_v26, 6  ;;  %954 = vst.msk [vmem:[#allocation3 + $0x20] sm:$0xf] %vm5741_vm12, %v952_v17  ;;  %v1798_v21 = vld [vmem:[#allocation2 + $0x4f] sm:$0x1]  ;;  %v852_v39 = vsel %vm702_vm3, %v851_v59, %v843_v38  ;;  %v1806_v62 = vrot.slane %v1797_v23, 2  ;;  %v1805_v40 = vsel %vm723_vm4, %v1804_v50, %v1803_v4 }
 0x1c7   : > { %973 = vst.msk [vmem:[#allocation3 + $0x20] sm:$0xf0] %vm898_vm11, %v971_v49  ;;  %v1816_v52 = vld [vmem:[#allocation2 + $0x38] sm:$0x1]  ;;  %v1833_v10 = vld [vmem:[#allocation2 + $0x20] sm:$0x1]  ;;  %v854_v57 = vsel %vm705_vm5, %v853_v8, %v852_v39 }
 0x1c8   : > { %v1817_v63 = vld [vmem:[#allocation2 + $0x50] sm:$0x1]  ;;  %v1822_v34 = vrot.slane %v1815_v16, 7  ;;  %v1832_v19 = vld [vmem:[#allocation2 + $0x8] sm:$0x1]  ;;  %v856_v14 = vsel %vm708_vm7, %v855_v37, %v854_v57  ;;  %v1788_v45 = vsel %vm705_vm5, %v1787_v6, %v1786_v60  ;;  %v1789_v51 = vrot.slane %v1780_v47, 5  ;;  %3171 = vrot.lane.b32.xlu0 %v3170_v25, %s3873_s26  ;;  %v1587_v37 = vpop.permute.xlu0 %1586  ;;  %v1606_v47 = vpop.permute.xlu1 %1605 }
 0x1c9   : > { %v1834_v48 = vld [vmem:[#allocation2 + $0x38] sm:$0x1]  ;;  %v1835_v29 = vld [vmem:[#allocation2 + $0x50] sm:$0x1]  ;;  %v1841_v20 = vrot.slane %v1833_v10, 3  ;;  %v1808_v12 = vrot.slane %v1798_v21, 1  ;;  %857 = vrot.lane.b32.xlu1 %v856_v14, %s3855_s7  ;;  %v1807_v33 = vsel %vm726_vm6, %v1806_v62, %v1805_v40 }
 0x1ca   : > { %v5496_v3 = vld [vmem:[#allocation2 + $0x23] sm:$0x1]  ;;  %v3268_v46 = vld [vmem:[#allocation2 + $0x28] sm:$0x1]  ;;  %991 = vst.msk [vmem:[#allocation3 + $0x30] sm:$0xf] %vm5741_vm12, %v989_v43  ;;  %v1790_v2 = vsel %vm708_vm7, %v1789_v51, %v1788_v45 }
 0x1cb   : > { %1010 = vst.msk [vmem:[#allocation3 + $0x30] sm:$0xf0] %vm898_vm11, %v1008_v54  ;;  %v1814_v36 = vld [vmem:[#allocation2 + $0x8] sm:$0x1]  ;;  %v1824_v32 = vrot.slane %v1816_v52, 6  ;;  %v1826_v7 = vrot.slane %v1817_v63, 5  ;;  %v1809_v42 = vsel %vm729_vm8, %v1808_v12, %v1807_v33 }
 0x1cc   : > { %v1840_v5 = vrot.slane %v1832_v19, 4  ;;  %v1823_v35 = vsel %vm702_vm3, %v1822_v34, %v1814_v36  ;;  %v1843_v1 = vrot.slane %v1834_v48, 2  ;;  %v1845_v22 = vrot.slane %v1835_v29, 1  ;;  %v3269_v11 = vld [vmem:[#allocation2 + $0x40] sm:$0x1]  ;;  %1791 = vrot.lane.b32.xlu0 %v1790_v2, %s3873_s26  ;;  %v2452_v54 = vpop.permute.xlu0 %2451  ;;  %v2471_v14 = vpop.permute.xlu1 %2470 }
 0x1cd   : > { %v3305_v13 = vld [vmem:[#allocation2 + $0x29] sm:$0x1]  ;;  %v2347_v31 = vld [vmem:[#allocation2 + $0x3b] sm:$0x1]  ;;  %v5504_v30 = vld [vmem:[#allocation2 + $0x53] sm:$0x1]  ;;  %v1825_v28 = vsel %vm705_vm5, %v1824_v32, %v1823_v35  ;;  %1810 = vrot.lane.b32.xlu1 %v1809_v42, %s3874_s9 }
 0x1ce   : > { %v2353_v15 = vrot.slane %v5496_v3, 7  ;;  %v3275_v0 = vrot.slane %v3268_v46, 7  ;;  %v1842_v58 = vsel %vm723_vm4, %v1841_v20, %v1840_v5  ;;  %v3267_v41 = vld [vmem:[#allocation2 + $0x10] sm:$0x1]  ;;  %v3286_v26 = vld [vmem:[#allocation2 + $0x28] sm:$0x1]  ;;  %v1827_v23 = vsel %vm708_vm7, %v1826_v7, %v1825_v28 }
 0x1cf   : > { %v3285_v53 = vld [vmem:[#allocation2 + $0x10] sm:$0x1]  ;;  %1551 = vst.msk [vmem:[#allocation3] sm:$0xf] %vm1550_vm10, %v1548_v44  ;;  %v3270_v56 = vld [vmem:[#allocation2 + $0x58] sm:$0x1]  ;;  %v1844_v17 = vsel %vm726_vm6, %v1843_v1, %v1842_v58 }
 0x1d0   : > { %1571 = vst.msk [vmem:[#allocation3] sm:$0xf0] %vm1570_vm9, %v1568_v18  ;;  %v3277_v59 = vrot.slane %v3269_v11, 6  ;;  %v3306_v8 = vld [vmem:[#allocation2 + $0x41] sm:$0x1]  ;;  %v3312_v61 = vrot.slane %v3305_v13, 7  ;;  %v3276_v49 = vsel %vm702_vm3, %v3275_v0, %v3267_v41  ;;  %v1846_v6 = vsel %vm729_vm8, %v1845_v22, %v1844_v17  ;;  %1828 = vrot.lane.b32.xlu0 %v1827_v23, %s3872_s13  ;;  %v2489_v0 = vpop.permute.xlu0 %2488  ;;  %v2508_v44 = vpop.permute.xlu1 %2507 }
 0x1d1   : > { %v3304_v4 = vld [vmem:[#allocation2 + $0x11] sm:$0x1]  ;;  %v3323_v16 = vld [vmem:[#allocation2 + $0x29] sm:$0x1]  ;;  %v3287_v55 = vld [vmem:[#allocation2 + $0x40] sm:$0x1]  ;;  %1847 = vrot.lane.b32.xlu1 %v1846_v6, %s3873_s26 }
 0x1d2   : > { %v3322_v50 = vld [vmem:[#allocation2 + $0x11] sm:$0x1]  ;;  %v3293_v24 = vrot.slane %v3285_v53, 4  ;;  %v3294_v38 = vrot.slane %v3286_v26, 3  ;;  %v2355_v27 = vrot.slane %v2347_v31, 6  ;;  %v2357_v9 = vrot.slane %v5504_v30, 5 }
 0x1d3   : > { %v3307_v60 = vld [vmem:[#allocation2 + $0x59] sm:$0x1]  ;;  %v3314_v21 = vrot.slane %v3306_v8, 6  ;;  %1589 = vst.msk [vmem:[#allocation3 + $0x10] sm:$0xf] %vm1550_vm10, %v1587_v37  ;;  %v3279_v52 = vrot.slane %v3270_v56, 5  ;;  %v3313_v10 = vsel %vm702_vm3, %v3312_v61, %v3304_v4  ;;  %v3278_v19 = vsel %vm705_vm5, %v3277_v59, %v3276_v49 }
 0x1d4   : > { %1608 = vst.msk [vmem:[#allocation3 + $0x10] sm:$0xf0] %vm1570_vm9, %v1606_v47  ;;  %v3324_v39 = vld [vmem:[#allocation2 + $0x41] sm:$0x1]  ;;  %v3330_v62 = vrot.slane %v3322_v50, 4  ;;  %v3331_v63 = vrot.slane %v3323_v16, 3  ;;  %v3295_v48 = vsel %vm723_vm4, %v3294_v38, %v3293_v24  ;;  %v3042_v24 = vpop.permute.xlu0 %3041  ;;  %v3061_v38 = vpop.permute.xlu1 %3060 }
 0x1d5   : > { %v2345_v34 = vld [vmem:[#allocation2 + $0xb] sm:$0x1]  ;;  %v3288_v25 = vld [vmem:[#allocation2 + $0x58] sm:$0x1]  ;;  %v3296_v57 = vrot.slane %v3287_v55, 2  ;;  %v3316_v29 = vrot.slane %v3307_v60, 5  ;;  %v3315_v51 = vsel %vm705_vm5, %v3314_v21, %v3313_v10  ;;  %v3280_v36 = vsel %vm708_vm7, %v3279_v52, %v3278_v19 }
 0x1d6   : > { %v2354_v40 = vsel %vm702_vm3, %v2353_v15, %v2345_v34  ;;  %v1012_v43 = vld [vmem:[#allocation2 + $0x1b] sm:$0x1]  ;;  %v3325_v20 = vld [vmem:[#allocation2 + $0x59] sm:$0x1]  ;;  %v3333_v3 = vrot.slane %v3324_v39, 2  ;;  %v3298_v32 = vrot.slane %v3288_v25, 1  ;;  %v3332_v7 = vsel %vm723_vm4, %v3331_v63, %v3330_v62  ;;  %3281 = vrot.lane.b32.xlu1 %v3280_v36, %s3876_s11 }
 0x1d7   : > { %v2356_v45 = vsel %vm705_vm5, %v2355_v27, %v2354_v40  ;;  %v1013_v46 = vld [vmem:[#allocation2 + $0x33] sm:$0x1]  ;;  %2454 = vst.msk [vmem:[#allocation3 + $0x28] sm:$0xf] %vm1046_vm14, %v2452_v54  ;;  %v1014_v5 = vld [vmem:[#allocation2 + $0x4b] sm:$0x1]  ;;  %v3297_v33 = vsel %vm726_vm6, %v3296_v57, %v3295_v48  ;;  %v3317_v11 = vsel %vm708_vm7, %v3316_v29, %v3315_v51 }
 0x1d8   : > { %2473 = vst.msk [vmem:[#allocation3 + $0x28] sm:$0xf0] %vm1066_vm13, %v2471_v14  ;;  %v2358_v12 = vsel %vm708_vm7, %v2357_v9, %v2356_v45  ;;  %v1019_v35 = vrot.slane %v1012_v43, 7  ;;  %v1946_v1 = vld [vmem:[#allocation2 + $0x20] sm:$0x1]  ;;  %v3335_v13 = vrot.slane %v3325_v20, 1  ;;  %v3334_v18 = vsel %vm726_vm6, %v3333_v3, %v3332_v7  ;;  %v3079_v48 = vpop.permute.xlu0 %3078  ;;  %v3098_v29 = vpop.permute.xlu1 %3097 }
 0x1d9   : > { %2359 = vrot.lane.b32.xlu0 %v2358_v12, %s3859_s14  ;;  %v1964_v22 = vld [vmem:[#allocation2 + $0x20] sm:$0x1]  ;;  %v1021_v31 = vrot.slane %v1013_v46, 6  ;;  %v5539_v30 = vld [vmem:[#allocation2 + $0x50] sm:$0x1]  ;;  %vm1718_vm11 = vcmask 913152   ;;  %v3299_v41 = vsel %vm729_vm8, %v3298_v32, %v3297_v33 }
 0x1da   : > { %v1963_v15 = vld [vmem:[#allocation2 + $0x8] sm:$0x1]  ;;  %vm1738_vm12 = vcmask 917252   ;;  %v1011_v2 = vld [vmem:[#allocation2 + $0x3] sm:$0x1]  ;;  %v1023_v58 = vrot.slane %v1014_v5, 5  ;;  %3318 = vrot.lane.b32.xlu1 %v3317_v11, %s3875_s10  ;;  %v3336_v50 = vsel %vm729_vm8, %v3335_v13, %v3334_v18 }
 0x1db   : > { %2491 = vst.msk [vmem:[#allocation3 + $0x38] sm:$0xf] %vm1046_vm14, %v2489_v0  ;;  %v1947_v53 = vld [vmem:[#allocation2 + $0x38] sm:$0x1]  ;;  %v1953_v26 = vrot.slane %v1946_v1, 7  ;;  %v1972_v28 = vrot.slane %v1964_v22, 3  ;;  %v1020_v56 = vsel %vm702_vm3, %v1019_v35, %v1011_v2 }
 0x1dc   : > { %2510 = vst.msk [vmem:[#allocation3 + $0x38] sm:$0xf0] %vm1066_vm13, %v2508_v44  ;;  %v1965_v42 = vld [vmem:[#allocation2 + $0x38] sm:$0x1]  ;;  %v1945_v59 = vld [vmem:[#allocation2 + $0x8] sm:$0x1]  ;;  %v1022_v16 = vsel %vm705_vm5, %v1021_v31, %v1020_v56  ;;  %v1120_v0 = vpop.permute.xlu0 %1119  ;;  %v1139_v44 = vpop.permute.xlu1 %1138 }
 0x1dd   : > { %3300 = vrot.lane.b32.xlu0 %v3299_v41, %s3877_s15  ;;  %v1957_v8 = vrot.slane %v5539_v30, 5  ;;  %v1966_v61 = vld [vmem:[#allocation2 + $0x50] sm:$0x1]  ;;  %v1971_v23 = vrot.slane %v1963_v15, 4  ;;  %v1983_v4 = vld [vmem:[#allocation2 + $0x21] sm:$0x1]  ;;  %v1024_v37 = vsel %vm708_vm7, %v1023_v58, %v1022_v16  ;;  %v1954_v9 = vsel %vm702_vm3, %v1953_v26, %v1945_v59 }
 0x1de   : > { %v1984_v17 = vld [vmem:[#allocation2 + $0x39] sm:$0x1]  ;;  %v1985_v49 = vld [vmem:[#allocation2 + $0x51] sm:$0x1]  ;;  %v2001_v55 = vld [vmem:[#allocation2 + $0x21] sm:$0x1]  ;;  %1025 = vrot.lane.b32.xlu1 %v1024_v37, %s3859_s14 }
 0x1df   : > { %v2000_v47 = vld [vmem:[#allocation2 + $0x9] sm:$0x1]  ;;  %v2002_v6 = vld [vmem:[#allocation2 + $0x39] sm:$0x1]  ;;  %v2003_v27 = vld [vmem:[#allocation2 + $0x51] sm:$0x1]  ;;  %v1973_v60 = vsel %vm723_vm4, %v1972_v28, %v1971_v23 }
 0x1e0   : > { %3044 = vst.msk [vmem:[#allocation3 + $0x8] sm:$0xf] %vm1718_vm11, %v3042_v24  ;;  %v1976_v21 = vrot.slane %v1966_v61, 1  ;;  %v1990_v52 = vrot.slane %v1983_v4, 7  ;;  %v1955_v10 = vrot.slane %v1947_v53, 6  ;;  %v1974_v39 = vrot.slane %v1965_v42, 2  ;;  %v1157_v37 = vpop.permute.xlu0 %1156 }
 0x1e1   : > { %3063 = vst.msk [vmem:[#allocation3 + $0x8] sm:$0xf0] %vm1738_vm12, %v3061_v38  ;;  %3337 = vrot.lane.b32.xlu0 %v3336_v50, %s3876_s11  ;;  %v1992_v62 = vrot.slane %v1984_v17, 6  ;;  %v2009_v63 = vrot.slane %v2001_v55, 3  ;;  %v1982_v34 = vld [vmem:[#allocation2 + $0x9] sm:$0x1] }
 0x1e2   : > { %v1994_v19 = vrot.slane %v1985_v49, 5  ;;  %v2008_v25 = vrot.slane %v2000_v47, 4  ;;  %v2011_v57 = vrot.slane %v2002_v6, 2  ;;  %v2013_v40 = vrot.slane %v2003_v27, 1  ;;  %v2512_v14 = vld [vmem:[#allocation2 + $0x24] sm:$0x1]  ;;  %v1176_v47 = vpop.permute.xlu1 %1175 }
 0x1e3   : > { %v1956_v43 = vsel %vm705_vm5, %v1955_v10, %v1954_v9  ;;  %v1975_v54 = vsel %vm726_vm6, %v1974_v39, %v1973_v60  ;;  %v2513_v45 = vld [vmem:[#allocation2 + $0x3c] sm:$0x1]  ;;  %3081 = vst.msk [vmem:[#allocation3 + $0x18] sm:$0xf] %vm1718_vm11, %v3079_v48  ;;  %v1991_v46 = vsel %vm702_vm3, %v1990_v52, %v1982_v34  ;;  %v2514_v12 = vld [vmem:[#allocation2 + $0x54] sm:$0x1] }
 0x1e4   : > { %v1180_v51 = vld [vmem:[#allocation2 + $0x1c] sm:$0x1]  ;;  %3100 = vst.msk [vmem:[#allocation3 + $0x18] sm:$0xf0] %vm1738_vm12, %v3098_v29  ;;  %v1958_v20 = vsel %vm708_vm7, %v1957_v8, %v1956_v43  ;;  %v1977_v3 = vsel %vm729_vm8, %v1976_v21, %v1975_v54  ;;  %v1181_v36 = vld [vmem:[#allocation2 + $0x34] sm:$0x1]  ;;  %v1993_v7 = vsel %vm705_vm5, %v1992_v62, %v1991_v46  ;;  %v2010_v5 = vsel %vm723_vm4, %v2009_v63, %v2008_v25 }
 0x1e5   : > { %v1182_v32 = vld [vmem:[#allocation2 + $0x4c] sm:$0x1]  ;;  %1959 = vrot.lane.b32.xlu0 %v1958_v20, %s3876_s11  ;;  %1978 = vrot.lane.b32.xlu1 %v1977_v3, %s3877_s15  ;;  %v2678_v33 = vld [vmem:[#allocation2 + $0x25] sm:$0x1]  ;;  %v5569_v35 = vld [vmem:[#allocation2 + $0x3d] sm:$0x1]  ;;  %v1995_v22 = vsel %vm708_vm7, %v1994_v19, %v1993_v7  ;;  %v2012_v11 = vsel %vm726_vm6, %v2011_v57, %v2010_v5 }
 0x1e6   : > { %v5571_v1 = vld [vmem:[#allocation2 + $0x55] sm:$0x1]  ;;  %v2519_v13 = vrot.slane %v2512_v14, 7  ;;  %v1187_v31 = vrot.slane %v1180_v51, 7  ;;  %v1348_v30 = vld [vmem:[#allocation2 + $0x1d] sm:$0x1]  ;;  %v2014_v18 = vsel %vm729_vm8, %v2013_v40, %v2012_v11  ;;  %v1716_v51 = vpop.permute.xlu0 %1715  ;;  %v1736_v20 = vpop.permute.xlu1 %1735 }
 0x1e7   : > { %v1349_v15 = vld [vmem:[#allocation2 + $0x35] sm:$0x1]  ;;  %v2521_v2 = vrot.slane %v2513_v45, 6  ;;  %v2523_v58 = vrot.slane %v2514_v12, 5  ;;  %v1179_v41 = vld [vmem:[#allocation2 + $0x4] sm:$0x1] }
 0x1e8   : > { %v1189_v53 = vrot.slane %v1181_v36, 6  ;;  %1122 = vst.msk [vmem:[#allocation3 + $0x20] sm:$0xf] %vm1046_vm14, %v1120_v0  ;;  %v2511_v26 = vld [vmem:[#allocation2 + $0xc] sm:$0x1]  ;;  %v1191_v42 = vrot.slane %v1182_v32, 5  ;;  %v1188_v49 = vsel %vm702_vm3, %v1187_v31, %v1179_v41 }
 0x1e9   : > { %1141 = vst.msk [vmem:[#allocation3 + $0x20] sm:$0xf0] %vm1066_vm13, %v1139_v44  ;;  %v2685_v28 = vrot.slane %v2678_v33, 7  ;;  %v2687_v56 = vrot.slane %v5569_v35, 6  ;;  %v2689_v59 = vrot.slane %v5571_v1, 5  ;;  %1996 = vrot.lane.b32.xlu0 %v1995_v22, %s3875_s10  ;;  %2015 = vrot.lane.b32.xlu1 %v2014_v18, %s3876_s11  ;;  %v1355_v4 = vrot.slane %v1348_v30, 7 }
 0x1ea   : > { %v2677_v8 = vld [vmem:[#allocation2 + $0xd] sm:$0x1]  ;;  %v1347_v61 = vld [vmem:[#allocation2 + $0x5] sm:$0x1]  ;;  %v1357_v50 = vrot.slane %v1349_v15, 6  ;;  %v2520_v17 = vsel %vm702_vm3, %v2519_v13, %v2511_v26  ;;  %v1190_v27 = vsel %vm705_vm5, %v1189_v53, %v1188_v49  ;;  %v1755_v41 = vpop.permute.xlu0 %1754  ;;  %v1774_v53 = vpop.permute.xlu1 %1773  ;;  %vm1886_vm4 = vcmask 1044352  }
 0x1eb   : > { %v1350_v23 = vld [vmem:[#allocation2 + $0x4d] sm:$0x1]  ;;  %v2844_v16 = vld [vmem:[#allocation2 + $0x26] sm:$0x1]  ;;  %v2845_v55 = vld [vmem:[#allocation2 + $0x3e] sm:$0x1]  ;;  %v2522_v6 = vsel %vm705_vm5, %v2521_v2, %v2520_v17  ;;  %v1192_v10 = vsel %vm708_vm7, %v1191_v42, %v1190_v27  ;;  %v2686_v48 = vsel %vm702_vm3, %v2685_v28, %v2677_v8  ;;  %v1356_v29 = vsel %vm702_vm3, %v1355_v4, %v1347_v61 }
 0x1ec   : > { %v5584_v24 = vld [vmem:[#allocation2 + $0x56] sm:$0x1]  ;;  %v1516_v38 = vld [vmem:[#allocation2 + $0x1e] sm:$0x1]  ;;  %v2843_v9 = vld [vmem:[#allocation2 + $0xe] sm:$0x1]  ;;  %v2524_v52 = vsel %vm708_vm7, %v2523_v58, %v2522_v6  ;;  %v2688_v3 = vsel %vm705_vm5, %v2687_v56, %v2686_v48  ;;  %v1358_v46 = vsel %vm705_vm5, %v1357_v50, %v1356_v29 }
 0x1ed   : > { %v1517_v60 = vld [vmem:[#allocation2 + $0x36] sm:$0x1]  ;;  %v1684_v21 = vld [vmem:[#allocation2 + $0x1f] sm:$0x1]  ;;  %1159 = vst.msk [vmem:[#allocation3 + $0x30] sm:$0xf] %vm1046_vm14, %v1157_v37  ;;  %2525 = vrot.lane.b32.xlu0 %v2524_v52, %s3862_s23  ;;  %1193 = vrot.lane.b32.xlu1 %v1192_v10, %s3862_s23  ;;  %v2690_v5 = vsel %vm708_vm7, %v2689_v59, %v2688_v3 }
 0x1ee   : > { %1178 = vst.msk [vmem:[#allocation3 + $0x30] sm:$0xf0] %vm1066_vm13, %v1176_v47  ;;  %v1359_v39 = vrot.slane %v1350_v23, 5  ;;  %v2851_v62 = vrot.slane %v2844_v16, 7  ;;  %v1518_v63 = vld [vmem:[#allocation2 + $0x4e] sm:$0x1]  ;;  %v2618_v27 = vpop.permute.xlu0 %2617 }
 0x1ef   : > { %v3010_v34 = vld [vmem:[#allocation2 + $0x27] sm:$0x1]  ;;  %v2853_v19 = vrot.slane %v2845_v55, 6  ;;  %v2855_v25 = vrot.slane %v5584_v24, 5  ;;  %v1515_v57 = vld [vmem:[#allocation2 + $0x6] sm:$0x1] }
 0x1f0   : > { %v1523_v40 = vrot.slane %v1516_v38, 7  ;;  %v1525_v43 = vrot.slane %v1517_v60, 6  ;;  %v3011_v54 = vld [vmem:[#allocation2 + $0x3f] sm:$0x1]  ;;  %v1685_v14 = vld [vmem:[#allocation2 + $0x37] sm:$0x1]  ;;  %v1360_v33 = vsel %vm708_vm7, %v1359_v39, %v1358_v46  ;;  %v2852_v35 = vsel %vm702_vm3, %v2851_v62, %v2843_v9  ;;  %v2637_v9 = vpop.permute.xlu1 %2636 }
 0x1f1   : > { %v1691_v45 = vrot.slane %v1684_v21, 7  ;;  %v1527_v12 = vrot.slane %v1518_v63, 5  ;;  %v3017_v36 = vrot.slane %v3010_v34, 7  ;;  %v1683_v32 = vld [vmem:[#allocation2 + $0x7] sm:$0x1]  ;;  %2691 = vrot.lane.b32.xlu0 %v2690_v5, %s3865_s28  ;;  %1361 = vrot.lane.b32.xlu1 %v1360_v33, %s3865_s28  ;;  %v2854_v13 = vsel %vm705_vm5, %v2853_v19, %v2852_v35  ;;  %s3669_s28 = sshll.u32 %s5757_s18, 3 }
 0x1f2   : > { %v3176_v7 = vld [vmem:[#allocation2 + $0x28] sm:$0x1]  ;;  %1719 = vst.msk [vmem:[#allocation3] sm:$0xf] %vm1718_vm11, %v1716_v51  ;;  %v3009_v1 = vld [vmem:[#allocation2 + $0xf] sm:$0x1]  ;;  %v1524_v0 = vsel %vm702_vm3, %v1523_v40, %v1515_v57  ;;  %v2856_v8 = vsel %vm708_vm7, %v2855_v25, %v2854_v13  ;;  %s286_s5 = scalar_lea.vmem %s5738_s3, %s3669_s28 }
 0x1f3   : > { %1739 = vst.msk [vmem:[#allocation3] sm:$0xf0] %vm1738_vm12, %v1736_v20  ;;  %v3012_v22 = vld [vmem:[#allocation2 + $0x57] sm:$0x1]  ;;  %v1686_v11 = vld [vmem:[#allocation2 + $0x4f] sm:$0x1]  ;;  %v1692_v18 = vsel %vm702_vm3, %v1691_v45, %v1683_v32  ;;  %v1526_v26 = vsel %vm705_vm5, %v1525_v43, %v1524_v0  ;;  %v3018_v42 = vsel %vm702_vm3, %v3017_v36, %v3009_v1 }
 0x1f4   : > { %v1693_v31 = vrot.slane %v1685_v14, 6  ;;  %v1852_v30 = vld [vmem:[#allocation2 + $0x20] sm:$0x1]  ;;  %v3342_v15 = vld [vmem:[#allocation2 + $0x29] sm:$0x1]  ;;  %v3019_v44 = vrot.slane %v3011_v54, 6  ;;  %v1528_v61 = vsel %vm708_vm7, %v1527_v12, %v1526_v26  ;;  %v2655_v54 = vpop.permute.xlu0 %2654  ;;  %v2674_v14 = vpop.permute.xlu1 %2673 }
 0x1f5   : > { %v3177_v2 = vld [vmem:[#allocation2 + $0x40] sm:$0x1]  ;;  %v3183_v58 = vrot.slane %v3176_v7, 7  ;;  %v3021_v28 = vrot.slane %v3012_v22, 5  ;;  %v1695_v56 = vrot.slane %v1686_v11, 5  ;;  %v1859_v4 = vrot.slane %v1852_v30, 7  ;;  %2857 = vrot.lane.b32.xlu0 %v2856_v8, %s3867_s30  ;;  %1529 = vrot.lane.b32.xlu1 %v1528_v61, %s3867_s30 }
 0x1f6   : > { %v3175_v59 = vld [vmem:[#allocation2 + $0x10] sm:$0x1]  ;;  %1757 = vst.msk [vmem:[#allocation3 + $0x10] sm:$0xf] %vm1718_vm11, %v1755_v41  ;;  %v3178_v23 = vld [vmem:[#allocation2 + $0x58] sm:$0x1]  ;;  %v1694_v17 = vsel %vm705_vm5, %v1693_v31, %v1692_v18  ;;  %v3020_v38 = vsel %vm705_vm5, %v3019_v44, %v3018_v42 }
 0x1f7   : > { %1776 = vst.msk [vmem:[#allocation3 + $0x10] sm:$0xf0] %vm1738_vm12, %v1774_v53  ;;  %v3343_v50 = vld [vmem:[#allocation2 + $0x41] sm:$0x1]  ;;  %v3349_v16 = vrot.slane %v3342_v15, 7  ;;  %v3185_v49 = vrot.slane %v3177_v2, 6  ;;  %v3184_v37 = vsel %vm702_vm3, %v3183_v58, %v3175_v59  ;;  %v3022_v60 = vsel %vm708_vm7, %v3021_v28, %v3020_v38 }
 0x1f8   : > { %v1854_v55 = vld [vmem:[#allocation2 + $0x50] sm:$0x1]  ;;  %v3341_v24 = vld [vmem:[#allocation2 + $0x11] sm:$0x1]  ;;  %v1851_v47 = vld [vmem:[#allocation2 + $0x8] sm:$0x1]  ;;  %v1696_v62 = vsel %vm708_vm7, %v1695_v56, %v1694_v17  ;;  %v3208_v5 = vpop.permute.xlu0 %3207  ;;  %v3227_v33 = vpop.permute.xlu1 %3226 }
 0x1f9   : > { %v1853_v6 = vld [vmem:[#allocation2 + $0x38] sm:$0x1]  ;;  %v3187_v21 = vrot.slane %v3178_v23, 5  ;;  %v3344_v52 = vld [vmem:[#allocation2 + $0x59] sm:$0x1]  ;;  %v3351_v10 = vrot.slane %v3343_v50, 6  ;;  %v1860_v63 = vsel %vm702_vm3, %v1859_v4, %v1851_v47  ;;  %v3350_v19 = vsel %vm702_vm3, %v3349_v16, %v3341_v24  ;;  %3023 = vrot.lane.b32.xlu0 %v3022_v60, %s3871_s12  ;;  %1697 = vrot.lane.b32.xlu1 %v1696_v62, %s3871_s12  ;;  %s293_s12 = scalar_lea.vmem %s5739_s4, %s3669_s28 }
 0x1fa   : > { %v2020_v39 = vld [vmem:[#allocation2 + $0x21] sm:$0x1]  ;;  %2620 = vst.msk [vmem:[#allocation3 + $0x28] sm:$0xf] %vm1214_vm0, %v2618_v27  ;;  %v1863_v34 = vrot.slane %v1854_v55, 5  ;;  %v3186_v57 = vsel %vm705_vm5, %v3185_v49, %v3184_v37  ;;  %v1861_v40 = vrot.slane %v1853_v6, 6 }
 0x1fb   : > { %2639 = vst.msk [vmem:[#allocation3 + $0x28] sm:$0xf0] %vm1234_vm15, %v2637_v9  ;;  %v2021_v25 = vld [vmem:[#allocation2 + $0x39] sm:$0x1]  ;;  %v2022_v48 = vld [vmem:[#allocation2 + $0x51] sm:$0x1]  ;;  %v3352_v51 = vsel %vm705_vm5, %v3351_v10, %v3350_v19  ;;  %v3188_v3 = vsel %vm708_vm7, %v3187_v21, %v3186_v57 }
 0x1fc   : > { %v3353_v29 = vrot.slane %v3344_v52, 5  ;;  %v2027_v43 = vrot.slane %v2020_v39, 7  ;;  %v1862_v45 = vsel %vm705_vm5, %v1861_v40, %v1860_v63  ;;  %v2029_v20 = vrot.slane %v2021_v25, 6  ;;  %2657 = vst.msk [vmem:[#allocation3 + $0x38] sm:$0xf] %vm1214_vm0, %v2655_v54  ;;  %v3245_v22 = vpop.permute.xlu0 %3244  ;;  %v3264_v11 = vpop.permute.xlu1 %3263 }
 0x1fd   : > { %2676 = vst.msk [vmem:[#allocation3 + $0x38] sm:$0xf0] %vm1234_vm15, %v2674_v14  ;;  %v1864_v46 = vsel %vm708_vm7, %v1863_v34, %v1862_v45  ;;  %v2031_v12 = vrot.slane %v2022_v48, 5  ;;  %3189 = vrot.lane.b32.xlu0 %v3188_v3, %s3874_s9  ;;  %vm1906_vm6 = vcmask 1048452   ;;  %v2019_v36 = vld [vmem:[#allocation2 + $0x9] sm:$0x1] }
 0x1fe   : > { %1865 = vrot.lane.b32.xlu1 %v1864_v46, %s3874_s9  ;;  %v3354_v32 = vsel %vm708_vm7, %v3353_v29, %v3352_v51  ;;  %v2028_v7 = vsel %vm702_vm3, %v2027_v43, %v2019_v36  ;;  %3210 = vst.msk [vmem:[#allocation3 + $0x8] sm:$0xf] %vm1886_vm4, %v3208_v5  ;;  %3247 = vst.msk [vmem:[#allocation3 + $0x18] sm:$0xf] %vm1886_vm4, %v3245_v22  ;;  %vm5745_vm3 = vcmask 125952   ;;  %vm3455_vm13 = vcmask 7168  }
 0x1ff   : > { %v2030_v35 = vsel %vm705_vm5, %v2029_v20, %v2028_v7  ;;  %3229 = vst.msk [vmem:[#allocation3 + $0x8] sm:$0xf0] %vm1906_vm6, %v3227_v33  ;;  %3266 = vst.msk [vmem:[#allocation3 + $0x18] sm:$0xf0] %vm1906_vm6, %v3264_v11 }
 0x200   : > { %v2032_v1 = vsel %vm708_vm7, %v2031_v12, %v2030_v35  ;;  %v1288_v13 = vpop.permute.xlu0 %1287  ;;  %v1307_v31 = vpop.permute.xlu1 %1306  ;;  %vm5746_vm5 = vmmov %vm5745_vm3  ;;  %vm5747_vm7 = vcmask 257152  }
 0x201   : > { %3355 = vrot.lane.b32.xlu0 %v3354_v32, %s3877_s15  ;;  %1290 = vst.msk [vmem:[#allocation3 + $0x20] sm:$0xf] %vm1214_vm0, %v1288_v13  ;;  %vm5748_vm8 = vmmov %vm5747_vm7 }
 0x202   : > { %2033 = vrot.lane.b32.xlu1 %v2032_v1, %s3877_s15  ;;  %1309 = vst.msk [vmem:[#allocation3 + $0x20] sm:$0xf0] %vm1234_vm15, %v1307_v31 }
 0x204   : > { %v1325_v30 = vpop.permute.xlu0 %1324  ;;  %v1344_v15 = vpop.permute.xlu1 %1343 }
 0x205   : > { %1327 = vst.msk [vmem:[#allocation3 + $0x30] sm:$0xf] %vm1214_vm0, %v1325_v30 }
 0x206   : > { %v3361_v0 = vld [vmem:[#allocation3 + $0x8] sm:$0xff]  ;;  %v3363_v44 = vld [vmem:[#allocation3 + $0x18] sm:$0xff]  ;;  %1346 = vst.msk [vmem:[#allocation3 + $0x30] sm:$0xf0] %vm1234_vm15, %v1344_v15 }
 0x207   : > { %v3678_v18 = vpack.c.bf16 %v3363_v44, %v3361_v0 }
 0x208   : > { %v1884_v2 = vpop.permute.xlu0 %1883  ;;  %v1904_v58 = vpop.permute.xlu1 %1903 }
 0x209   : > { %3679 = vmatprep.subr.bf16.mxu0 %v3678_v18  ;;  %1887 = vst.msk [vmem:[#allocation3] sm:$0xf] %vm1886_vm4, %v1884_v2  ;;  %v3359_v18 = vld [vmem:[%s5736_s1] sm:$0xff] }
 0x20a   : > { %1907 = vst.msk [vmem:[#allocation3] sm:$0xf0] %vm1906_vm6, %v1904_v58 }
 0x20c   : > { %v1923_v41 = vpop.permute.xlu0 %1922  ;;  %v1942_v53 = vpop.permute.xlu1 %1941 }
 0x20d   : > { %1925 = vst.msk [vmem:[#allocation3 + $0x10] sm:$0xf] %vm1886_vm4, %v1923_v41 }
 0x20e   : > { %1944 = vst.msk [vmem:[#allocation3 + $0x10] sm:$0xf0] %vm1906_vm6, %v1942_v53 }
 0x210   : > { %v2784_v26 = vpop.permute.xlu0 %2783  ;;  %v2803_v42 = vpop.permute.xlu1 %2802 }
 0x211   : > { %2786 = vst.msk [vmem:[#allocation3 + $0x28] sm:$0xf] %vm1382_vm1, %v2784_v26  ;;  %v3360_v59 = vld [vmem:[#allocation3] sm:$0xff] }
 0x212   : > { %2805 = vst.msk [vmem:[#allocation3 + $0x28] sm:$0xf0] %vm1402_vm2, %v2803_v42 }
 0x214   : > { %v2821_v28 = vpop.permute.xlu0 %2820  ;;  %v2840_v56 = vpop.permute.xlu1 %2839 }
 0x215   : > { %v3362_v8 = vld [vmem:[#allocation3 + $0x10] sm:$0xff]  ;;  %2823 = vst.msk [vmem:[#allocation3 + $0x38] sm:$0xf] %vm1382_vm1, %v2821_v28 }
 0x216   : > { %2842 = vst.msk [vmem:[#allocation3 + $0x38] sm:$0xf0] %vm1402_vm2, %v2840_v56  ;;  %v3680_v61 = vpack.c.bf16 %v3362_v8, %v3360_v59 }
 0x218   : > { %3681 = vmatpush1.bf16.msra.mxu0 %v3680_v61  ;;  %v1456_v23 = vpop.permute.xlu0 %1455  ;;  %v1475_v4 = vpop.permute.xlu1 %1474 }
 0x219   : > { %1458 = vst.msk [vmem:[#allocation3 + $0x20] sm:$0xf] %vm1382_vm1, %v1456_v23 }
 0x21a   : > { %1477 = vst.msk [vmem:[#allocation3 + $0x20] sm:$0xf0] %vm1402_vm2, %v1475_v4 }
 0x21c   : > { %v1493_v50 = vpop.permute.xlu0 %1492  ;;  %v1512_v16 = vpop.permute.xlu1 %1511 }
 0x21d   : > { %1495 = vst.msk [vmem:[#allocation3 + $0x30] sm:$0xf] %vm1382_vm1, %v1493_v50 }
 0x21e   : > { %1514 = vst.msk [vmem:[#allocation3 + $0x30] sm:$0xf0] %vm1402_vm2, %v1512_v16 }
 0x220   : > { %v2950_v17 = vpop.permute.xlu0 %2949  ;;  %v2969_v49 = vpop.permute.xlu1 %2968 }
 0x221   : > { %2952 = vst.msk [vmem:[#allocation3 + $0x28] sm:$0xf] %vm1550_vm10, %v2950_v17 }
 0x222   : > { %2971 = vst.msk [vmem:[#allocation3 + $0x28] sm:$0xf0] %vm1570_vm9, %v2969_v49 }
 0x224   : > { %v2987_v55 = vpop.permute.xlu0 %2986  ;;  %v3006_v24 = vpop.permute.xlu1 %3005 }
 0x225   : > { %2989 = vst.msk [vmem:[#allocation3 + $0x38] sm:$0xf] %vm1550_vm10, %v2987_v55 }
 0x226   : > { %3008 = vst.msk [vmem:[#allocation3 + $0x38] sm:$0xf0] %vm1570_vm9, %v3006_v24 }
 0x228   : > { %v1624_v38 = vpop.permute.xlu0 %1623 }
 0x229   : > { %v1643_v37 = vpop.permute.xlu1 %1642  ;;  %1626 = vst.msk [vmem:[#allocation3 + $0x20] sm:$0xf] %vm1550_vm10, %v1624_v38 }
 0x22a   : > { %1645 = vst.msk [vmem:[#allocation3 + $0x20] sm:$0xf0] %vm1570_vm9, %v1643_v37 }
 0x22c   : > { %v1661_v47 = vpop.permute.xlu0 %1660 }
 0x22d   : > { %v1680_v6 = vpop.permute.xlu1 %1679  ;;  %1663 = vst.msk [vmem:[#allocation3 + $0x30] sm:$0xf] %vm1550_vm10, %v1661_v47 }
 0x22e   : > { %1682 = vst.msk [vmem:[#allocation3 + $0x30] sm:$0xf0] %vm1570_vm9, %v1680_v6  ;;  %vm3374_vm9 = vcmask 1043456  }
 0x232   : > { %v2194_v27 = vpop.permute.xlu0 %2193  ;;  %v3116_v9 = vpop.permute.xlu1 %3115 }
 0x233   : > { %2196 = vst.msk [vmem:[#allocation3 + $0x48] sm:$0xf] %vm5745_vm3, %v2194_v27 }
 0x234   : > { %3118 = vst.msk [vmem:[#allocation3 + $0x28] sm:$0xf] %vm1718_vm11, %v3116_v9 }
 0x236   : > { %v3135_v60 = vpop.permute.xlu0 %3134 }
 0x237   : > { %v3153_v21 = vpop.permute.xlu1 %3152  ;;  %3137 = vst.msk [vmem:[#allocation3 + $0x28] sm:$0xf0] %vm1738_vm12, %v3135_v60 }
 0x238   : > { %3155 = vst.msk [vmem:[#allocation3 + $0x38] sm:$0xf] %vm1718_vm11, %v3153_v21 }
 0x23a   : > { %v3172_v52 = vpop.permute.xlu0 %3171 }
 0x23b   : > { %v858_v10 = vpop.permute.xlu1 %857  ;;  %3174 = vst.msk [vmem:[#allocation3 + $0x38] sm:$0xf0] %vm1738_vm12, %v3172_v52 }
 0x23c   : > { %860 = vst.msk [vmem:[#allocation3 + $0x40] sm:$0xf] %vm5746_vm5, %v858_v10 }
 0x23e   : > { %v1792_v39 = vpop.permute.xlu0 %1791 }
 0x23f   : > { %v1811_v62 = vpop.permute.xlu1 %1810  ;;  %1794 = vst.msk [vmem:[#allocation3 + $0x20] sm:$0xf] %vm1718_vm11, %v1792_v39 }
 0x240   : > { %1813 = vst.msk [vmem:[#allocation3 + $0x20] sm:$0xf0] %vm1738_vm12, %v1811_v62 }
 0x242   : > { %v1829_v63 = vpop.permute.xlu0 %1828 }
 0x243   : > { %v1848_v34 = vpop.permute.xlu1 %1847  ;;  %1831 = vst.msk [vmem:[#allocation3 + $0x30] sm:$0xf] %vm1718_vm11, %v1829_v63 }
 0x244   : > { %1850 = vst.msk [vmem:[#allocation3 + $0x30] sm:$0xf0] %vm1738_vm12, %v1848_v34  ;;  %vm3370_vm12 = vcmask 293888  }
 0x248   : > { %v3282_v25 = vpop.permute.xlu1 %3281 }
 0x249   : > { %3284 = vst.msk [vmem:[#allocation3 + $0x28] sm:$0xf] %vm1886_vm4, %v3282_v25 }
 0x24b   : > { %v2360_v19 = vpop.permute.xlu0 %2359 }
 0x24c   : > { %2362 = vst.msk [vmem:[#allocation3 + $0x48] sm:$0xf] %vm5747_vm7, %v2360_v19  ;;  %v3319_v40 = vpop.permute.xlu1 %3318 }
 0x24d   : > { %3321 = vst.msk [vmem:[#allocation3 + $0x38] sm:$0xf] %vm1886_vm4, %v3319_v40 }
 0x24f   : > { %v3301_v57 = vpop.permute.xlu0 %3300 }
 0x250   : > { %3303 = vst.msk [vmem:[#allocation3 + $0x28] sm:$0xf0] %vm1906_vm6, %v3301_v57  ;;  %v1026_v29 = vpop.permute.xlu1 %1025 }
 0x251   : > { %1028 = vst.msk [vmem:[#allocation3 + $0x40] sm:$0xf] %vm5748_vm8, %v1026_v29 }
 0x253   : > { %v3338_v48 = vpop.permute.xlu0 %3337 }
 0x254   : > { %3340 = vst.msk [vmem:[#allocation3 + $0x38] sm:$0xf0] %vm1906_vm6, %v3338_v48 }
 0x257   : > { %v1960_v43 = vpop.permute.xlu0 %1959  ;;  %v1979_v54 = vpop.permute.xlu1 %1978  ;;  %v3365_v51 = vld [vmem:[#allocation3 + $0x28] sm:$0xff] }
 0x258   : > { %1962 = vst.msk [vmem:[#allocation3 + $0x20] sm:$0xf] %vm1886_vm4, %v1960_v43 }
 0x259   : > { %1981 = vst.msk [vmem:[#allocation3 + $0x20] sm:$0xf0] %vm1906_vm6, %v1979_v54 }
 0x25b   : > { %v1997_v14 = vpop.permute.xlu0 %1996  ;;  %v2016_v45 = vpop.permute.xlu1 %2015  ;;  %v3367_v20 = vld [vmem:[#allocation3 + $0x38] sm:$0xff] }
 0x25c   : > { %1999 = vst.msk [vmem:[#allocation3 + $0x30] sm:$0xf] %vm1886_vm4, %v1997_v14  ;;  %v3682_v3 = vpack.c.bf16 %v3367_v20, %v3365_v51 }
 0x25d   : > { %2018 = vst.msk [vmem:[#allocation3 + $0x30] sm:$0xf0] %vm1906_vm6, %v2016_v45 }
 0x25e   : > { %3683 = vmatprep.subr.bf16.mxu0 %v3682_v3 }
 0x25f   : > { %v2526_v46 = vpop.permute.xlu0 %2525  ;;  %v1194_v12 = vpop.permute.xlu1 %1193 }
 0x260   : > { %2528 = vst.msk [vmem:[#allocation3 + $0x48] sm:$0xf] %vm1046_vm14, %v2526_v46  ;;  %1196 = vst.msk [vmem:[#allocation3 + $0x40] sm:$0xf] %vm1046_vm14, %v1194_v12  ;;  %v3364_v7 = vld [vmem:[#allocation3 + $0x20] sm:$0xff] }
 0x263   : > { %v2692_v36 = vpop.permute.xlu0 %2691  ;;  %v1362_v32 = vpop.permute.xlu1 %1361 }
 0x264   : > { %v3366_v5 = vld [vmem:[#allocation3 + $0x30] sm:$0xff]  ;;  %2694 = vst.msk [vmem:[#allocation3 + $0x48] sm:$0xf] %vm1214_vm0, %v2692_v36  ;;  %1364 = vst.msk [vmem:[#allocation3 + $0x40] sm:$0xf] %vm1214_vm0, %v1362_v32 }
 0x265   : > { %v3684_v33 = vpack.c.bf16 %v3366_v5, %v3364_v7 }
 0x267   : > { %3685 = vmatpush1.bf16.msra.mxu0 %v3684_v33  ;;  %v2858_v35 = vpop.permute.xlu0 %2857  ;;  %v1530_v1 = vpop.permute.xlu1 %1529 }
 0x268   : > { %2860 = vst.msk [vmem:[#allocation3 + $0x48] sm:$0xf] %vm1382_vm1, %v2858_v35  ;;  %1532 = vst.msk [vmem:[#allocation3 + $0x40] sm:$0xf] %vm1382_vm1, %v1530_v1 }
 0x26b   : > { %v3024_v22 = vpop.permute.xlu0 %3023  ;;  %v1698_v11 = vpop.permute.xlu1 %1697 }
 0x26c   : > { %3026 = vst.msk [vmem:[#allocation3 + $0x48] sm:$0xf] %vm1550_vm10, %v3024_v22  ;;  %1700 = vst.msk [vmem:[#allocation3 + $0x40] sm:$0xf] %vm1550_vm10, %v1698_v11 }
 0x26f   : > { %v3190_v13 = vpop.permute.xlu0 %3189 }
 0x270   : > { %v1866_v31 = vpop.permute.xlu1 %1865  ;;  %3192 = vst.msk [vmem:[#allocation3 + $0x48] sm:$0xf] %vm1718_vm11, %v3190_v13 }
 0x271   : > { %1868 = vst.msk [vmem:[#allocation3 + $0x40] sm:$0xf] %vm1718_vm11, %v1866_v31 }
 0x273   : > { %v3356_v30 = vpop.permute.xlu0 %3355 }
 0x274   : > { %v2034_v15 = vpop.permute.xlu1 %2033  ;;  %3358 = vst.msk [vmem:[#allocation3 + $0x48] sm:$0xf] %vm1886_vm4, %v3356_v30 }
 0x275   : > { %2036 = vst.msk [vmem:[#allocation3 + $0x40] sm:$0xf] %vm1886_vm4, %v2034_v15 }
 0x27b   : > { %v3369_v0 = vld [vmem:[#allocation3 + $0x48] sm:$0xf] }
 0x27c   : > { %v3368_v44 = vld [vmem:[#allocation3 + $0x40] sm:$0xf]  ;;  %3671 = vmatprep.subr.msk.mxu0 %vm3374_vm9, %v3369_v0 }
 0x27d   : > { %3672 = vmatpush1.msk.msra.mxu0 %vm3374_vm9, %v3368_v44 }
 0x27e   : > { %3673 = vmatmul.mubr.msk.f32.vlgmr.msra.gmra.mrb[0].mxu0 %vm3370_vm12, %v3359_v18 }
 0x351   : > { %v3447_v2 = vpop.f32.mrb[0].mxu0 }
 0x352   : > { %v3457_v58 = vmul.f32 %v3447_v2, %v3447_v2  ;;  %3463 = vst [vmem:[%s279_s25] sm:$0xff] %v3447_v2  ;;  %v3449_v41 = vpop.f32.mrb[1].mxu0 }
 0x353   : > { %v3452_v53 = vadd.f32 %v3449_v41, %v3447_v2  ;;  %v3458_v26 = vmul.f32 %v3449_v41, %v3449_v41  ;;  %3464 = vst [vmem:[%s279_s25 + $0x8] sm:$0xff] %v3449_v41 }
 0x355   : > { %v3459_v42 = vadd.f32 %v3458_v26, %v3457_v58  ;;  %3453 = vadd.xlane.f32.xlu0 %v3452_v53 }
 0x357   : > { %3460 = vadd.xlane.f32.xlu1 %v3459_v42 }
 0x3e2   : > { %v3454_v28 = vpop.xlane.xlu0 %3453 }
 0x3e3   : > { %3456 = vst.msk [vmem:[%s286_s5] sm:$0xff] %vm3455_vm13, %v3454_v28 }
 0x3e4   : > { %v3461_v56 = vpop.xlane.xlu1 %3460 }
 0x3e5   : > { %3462 = vst.msk [vmem:[%s293_s12] sm:$0xff] %vm3455_vm13, %v3461_v56 }
 0x3e6 PF: > { %s18_s20 = sadd.s32 1, %s3848_s20   ;;  %s5749_s15 = smov %s3832_s16 }
 0x3e7   : > { %p15_p9 = scmp.ge.s32.totalorder %s18_s20, 4   ;;  %s5750_s16 = smov %s3836_s17 }
 0x3e8   : > { %s5751_s17 = smov %s3952_s27  ;;  %s5752_s18 = smov %s3844_s19 }
 0x3e9   : > { %s5753_s19 = smov %s5755_s22  ;;  %17 = sbr.rel (!%p15_p9) target bundleno = 4 (0x4), region = 95 }
 0x3f0   :  { %3534 = vsyncpa [#allocation5], 1 }
 0x3f1   :  { %3536 = vsyncpa [#allocation5 + $0x1], 1 }

</bundles_post_ra>
